<compile_context>
chip_gen: v7x
topology: tpu7x:2x2x1
jax: 0.10.0
libtpu: 0.0.40
codegen_flags: <defaults>
</compile_context>

<pallas_src>
import functools
import math

import jax
import jax.numpy as jnp
import numpy as np
from jax import lax
from jax.experimental import pallas as pl
from jax.experimental.pallas import tpu as pltpu


def _cond_resample_kernel(neg_log_k, flags_ref, weight_ref, state_ref, aux_ref,
                          out_state_ref, out_weight_ref, used_weight_ref):
    """One grid step == one block of BB batch elements.

    flags_ref : SMEM (num_blocks,) int32, 1 iff any batch in the block resamples
    weight_ref: (BB, K) f32 log-weights (particle axis on lanes)
    state_ref : (BB, K, D) f32 particles
    aux_ref   : (BB, 2) f32, col 0 = systematic offset u0, col 1 = batch mask
    """
    BB, K = weight_ref.shape

    logw = weight_ref[...]                  # (BB, K)
    state = state_ref[...]                  # (BB, K, D)
    u0 = aux_ref[:, 0:1]                    # (BB, 1)
    resample = aux_ref[:, 1:2] != 0.0       # (BB, 1) per-batch condition

    block_resamples = flags_ref[pl.program_id(0)] != 0      # SMEM scalar

    # ---------------------------------------------------------------- fast --
    # No batch in this block resamples -> plain passthrough, skip all KxK work.
    @pl.when(jnp.logical_not(block_resamples))
    def _passthrough():
        out_state_ref[...] = state
        out_weight_ref[...] = logw
        used_weight_ref[...] = logw

    # ---------------------------------------------------------------- slow --
    @pl.when(block_resamples)
    def _resample():
        # normalised log-weights (log-sum-exp); everything lane-dense (BB, K)
        m = jnp.max(logw, axis=-1, keepdims=True)             # (BB,1)
        w_un = jnp.exp(logw - m)                              # (BB,K)
        z = jnp.sum(w_un, axis=-1, keepdims=True)             # (BB,1)
        log_norm = (logw - m) - jnp.log(z)                    # (BB,K)

        lane = lax.broadcasted_iota(jnp.int32, (1, K), 1)

        # inclusive prefix sum along lanes: log-depth Hillis-Steele (XLU rolls)
        cdf = w_un
        step = 1
        while step < K:
            rolled = pltpu.roll(cdf, shift=step, axis=1)      # rolled[j]=cdf[j-s]
            cdf = cdf + jnp.where(lane >= step, rolled, 0.0)
            step *= 2

        # scaled cdf so the positions are the plain integers i:
        #   t_i = (i + u0) * z / K   <=>   compare i against cdf*K/z - u0
        inv_z = pl.reciprocal(z, approx=True)
        cdf_s = cdf * (jnp.float32(K) * inv_z) - u0           # (BB,K)

        # monotone exclusive prefix (running max) -> exactly one hit per row
        # even if the reassociated f32 scan has ULP-level inversions.
        mono = cdf_s
        step = 1
        while step < K:
            rolled = pltpu.roll(mono, shift=step, axis=1)
            mono = jnp.where(lane >= step, jnp.maximum(mono, rolled), mono)
            step *= 2
        prev = jnp.where(lane == 0, jnp.float32(-1.0),
                         pltpu.roll(mono, shift=1, axis=1))   # (BB,K)
        # guard: last column catches i beyond the top of the cdf (fp rounding)
        cdf_g = jnp.where(lane == K - 1, jnp.float32(K), cdf_s)

        # fused searchsorted + one-hot: onehot[b,i,j] = (prev_j < i <= cdf_g_j)
        i_pos = lax.broadcasted_iota(jnp.int32, (BB, K, K), 1).astype(jnp.float32)
        onehot = jnp.logical_and(prev[:, None, :] < i_pos,
                                 cdf_g[:, None, :] >= i_pos).astype(jnp.bfloat16)

        # exact gather: 3-way bf16 split of the f32 state, three single-pass
        # bf16 MXU matmuls accumulated in f32 (one-hot stays bf16, half the
        # VMEM of an f32 one-hot; exact because the one-hot rows select one
        # element and hi+mid+lo reconstructs the f32 value to ~1 ULP).
        hi = state.astype(jnp.bfloat16)
        r1 = state - hi.astype(jnp.float32)
        mid = r1.astype(jnp.bfloat16)
        lo = (r1 - mid.astype(jnp.float32)).astype(jnp.bfloat16)
        gathered = (
            jnp.einsum('bij,bjd->bid', onehot, hi,
                       preferred_element_type=jnp.float32)
            + jnp.einsum('bij,bjd->bid', onehot, mid,
                         preferred_element_type=jnp.float32)
            + jnp.einsum('bij,bjd->bid', onehot, lo,
                         preferred_element_type=jnp.float32))  # (BB,K,D) f32

        res_logw = jnp.full_like(logw, neg_log_k)

        # conditional write-back: out[mask] = resampled, else original
        out_state_ref[...] = jnp.where(resample[:, :, None], gathered, state)
        out_weight_ref[...] = jnp.where(resample, res_logw, logw)
        used_weight_ref[...] = jnp.where(resample, log_norm, logw)


def _pick_block(B, K, D, batch_block, vmem_budget_bytes):
    """Largest batch block that divides B, respects Mosaic's (8,*) block rule
    on the 2-D weight arrays (bb % 8 == 0 or bb == B), keeps >=2 (preferably
    even) grid steps, and keeps the estimated VMEM footprint under budget."""
    d_pad = ((max(D, 1) + 127) // 128) * 128
    per_batch = (
        4 * K * d_pad * 4        # state in (2 bufs) + out (2 bufs), lane padded
        + 3 * K * d_pad * 2      # hi/mid/lo bf16 splits
        + K * d_pad * 4          # gathered f32
        + 3 * K * K * 4          # position iota + compare temporaries
        + K * K * 2              # bf16 one-hot
        + 16 * K * 4)            # weight-sized temporaries
    cap = max(1, vmem_budget_bytes // per_batch)
    limit = min(batch_block, cap)
    cands = [d for d in range(1, B + 1)
             if B % d == 0 and (d % 8 == 0 or d == B)]
    good = [d for d in cands if d <= limit and B // d >= 2]
    if good:
        even = [d for d in good if (B // d) % 2 == 0]   # keep both v7x TCs busy
        return max(even) if even else max(good)
    return min(cands)


def conditional_resample(state, weight, u0, *, ess_threshold=0.5,
                         batch_block=32, vmem_budget_bytes=24 * 1024 * 1024):
    """Conditionally (ESS < thr*K) systematic-resample each batch.

    Returns (out_state, out_weight, cache) with
    cache = {'used_weight': (B, K), 'mask': (B,) bool}.
    """
    B, K, D = state.shape
    assert weight.shape == (B, K)
    state = state.astype(jnp.float32)
    weight = weight.astype(jnp.float32)
    u0 = jnp.asarray(u0, jnp.float32).reshape(B)

    # --- the module's `condition` callable (tiny (B,K) math, done in JAX) ---
    m = jnp.max(weight, axis=-1, keepdims=True)
    w_un = jnp.exp(weight - m)
    z = jnp.sum(w_un, axis=-1)
    s2 = jnp.sum(w_un * w_un, axis=-1)
    resample_mask = (z * z) < (ess_threshold * K) * s2          # (B,) bool

    bb = _pick_block(B, K, D, batch_block, vmem_budget_bytes)
    num_blocks = B // bb

    # per-grid-block "any batch resamples" flag -> SMEM scalar prefetch
    block_flags = jnp.any(resample_mask.reshape(num_blocks, bb),
                          axis=1).astype(jnp.int32)
    # u0 + per-batch mask packed into one tiny (B, 2) input (single small DMA)
    aux = jnp.stack([u0, resample_mask.astype(jnp.float32)], axis=-1)

    kernel = functools.partial(_cond_resample_kernel, -math.log(float(K)))

    # TODO(synk): add input_output_aliases={1: 0, 0: 1} when the caller can
    # donate state/weight (saves a full extra HBM state buffer).
    out_state, out_weight, used_weight = pl.pallas_call(
        kernel,
        out_shape=(
            jax.ShapeDtypeStruct((B, K, D), jnp.float32),   # resampled state
            jax.ShapeDtypeStruct((B, K), jnp.float32),      # resampled weight
            jax.ShapeDtypeStruct((B, K), jnp.float32),      # cache['used_weight']
        ),
        grid_spec=pltpu.PrefetchScalarGridSpec(
            num_scalar_prefetch=1,
            grid=(num_blocks,),
            in_specs=[
                pl.BlockSpec((bb, K), lambda b, flags: (b, 0)),         # weight
                pl.BlockSpec((bb, K, D), lambda b, flags: (b, 0, 0)),   # state
                pl.BlockSpec((bb, 2), lambda b, flags: (b, 0)),         # u0|mask
            ],
            out_specs=[
                pl.BlockSpec((bb, K, D), lambda b, flags: (b, 0, 0)),
                pl.BlockSpec((bb, K), lambda b, flags: (b, 0)),
                pl.BlockSpec((bb, K), lambda b, flags: (b, 0)),
            ],
        ),
        compiler_params=pltpu.CompilerParams(
            dimension_semantics=("parallel",),
            vmem_limit_bytes=32 * 1024 * 1024),
    )(block_flags, weight, state, aux)

    # TODO(synk): the PyTorch module mutates self.cache in place; returned
    # functionally here.
    cache = {"used_weight": used_weight, "mask": resample_mask}
    return out_state, out_weight, cache


if __name__ == "__main__":
    B, K, D = 4, 128, 16
    key = jax.random.PRNGKey(0)
    k1, k2, k3 = jax.random.split(key, 3)

    state = jax.random.normal(k1, (B, K, D), dtype=jnp.float32)

    # batch 0: uniform weights      -> ESS = K   -> NOT resampled
    # batch 1: mass on LAST particle -> ESS ~ 1  -> resampled (direction check)
    # batch 2: mass on FIRST particle-> ESS ~ 1  -> resampled
    # batch 3: random log-weights
    w_uniform = jnp.full((K,), -math.log(float(K)), dtype=jnp.float32)
    w_last = 5.0 * jnp.arange(K, dtype=jnp.float32)
    w_first = -5.0 * jnp.arange(K, dtype=jnp.float32)
    w_rand = jax.random.normal(k2, (K,), dtype=jnp.float32)
    weight = jnp.stack([w_uniform, w_last, w_first, w_rand], axis=0)

    u0 = jax.random.uniform(k3, (B,), dtype=jnp.float32)

    out_state, out_weight, cache = conditional_resample(state, weight, u0)
    jax.block_until_ready((out_state, out_weight,
                           cache["used_weight"], cache["mask"]))

    mask = np.asarray(cache["mask"])
    os_ = np.asarray(out_state)
    ow_ = np.asarray(out_weight)
    uw_ = np.asarray(cache["used_weight"])
    s_, w_ = np.asarray(state), np.asarray(weight)

    w64 = w_.astype(np.float64)
    m64 = w64.max(-1, keepdims=True)
    lse = m64 + np.log(np.exp(w64 - m64).sum(-1, keepdims=True))
    lognorm_ref = w64 - lse

    for b in range(B):
        if mask[b]:
            # resampled batches: uniform log-weights, particles from original set
            np.testing.assert_allclose(ow_[b], -math.log(float(K)),
                                       rtol=1e-5, atol=1e-5)
            assert np.all(np.isfinite(os_[b]))
            d0 = np.abs(os_[b][:, None, :] - s_[b][None, :, :]).max(-1).min(-1)
            assert np.all(d0 < 1e-5)
            np.testing.assert_allclose(uw_[b], lognorm_ref[b],
                                       rtol=2e-5, atol=1e-4)
        else:
            # non-resampled batches are returned untouched (clone semantics)
            np.testing.assert_array_equal(os_[b], s_[b])
            np.testing.assert_array_equal(ow_[b], w_[b])
            np.testing.assert_array_equal(uw_[b], w_[b])

    assert (not bool(mask[0])) and bool(mask[1]) and bool(mask[2])
    # degenerate batches: nearly all resampled particles equal the dominant one
    n_last = int(np.sum(np.all(np.abs(os_[1] - s_[1, K - 1]) < 1e-5, axis=-1)))
    n_first = int(np.sum(np.all(np.abs(os_[2] - s_[2, 0]) < 1e-5, axis=-1)))
    assert n_last >= K - 2, n_last
    assert n_first >= K - 2, n_first

    print("KERNEL_OK")
</pallas_src>

<mosaic_0001>
module attributes {stable_mosaic.version = 11 : i64} {
  func.func @_cond_resample_kernel(%arg0: i32, %arg1: memref<1xi32, #tpu.memory_space<smem>>, %arg2: memref<4x128xf32, #tpu.memory_space<vmem>>, %arg3: memref<4x128x16xf32, #tpu.memory_space<vmem>>, %arg4: memref<4x2xf32, #tpu.memory_space<vmem>>, %arg5: memref<4x128x16xf32, #tpu.memory_space<vmem>>, %arg6: memref<4x128xf32, #tpu.memory_space<vmem>>, %arg7: memref<4x128xf32, #tpu.memory_space<vmem>>) attributes {dimension_semantics = [#tpu.dimension_semantics<parallel>], iteration_bounds = array<i64: 1>, scalar_prefetch = 1 : i64, scratch_operands = 0 : i64, tpu.core_type = #tpu.core_type<tc>, window_params = [{transform_indices = @transform_0, window_bounds = array<i64: 4, 128>}, {transform_indices = @transform_1, window_bounds = array<i64: 4, 128, 16>}, {transform_indices = @transform_2, window_bounds = array<i64: 4, 2>}, {transform_indices = @transform_3, window_bounds = array<i64: 4, 128, 16>}, {transform_indices = @transform_4, window_bounds = array<i64: 4, 128>}, {transform_indices = @transform_5, window_bounds = array<i64: 4, 128>}]} {
    %c0 = arith.constant 0 : index
    %c0_0 = arith.constant 0 : index
    %0 = vector.load %arg2[%c0, %c0_0] : memref<4x128xf32, #tpu.memory_space<vmem>>, vector<4x128xf32>
    %c0_1 = arith.constant 0 : index
    %c0_2 = arith.constant 0 : index
    %c0_3 = arith.constant 0 : index
    %1 = vector.load %arg3[%c0_1, %c0_2, %c0_3] : memref<4x128x16xf32, #tpu.memory_space<vmem>>, vector<4x128x16xf32>
    %c0_4 = arith.constant 0 : index
    %c0_5 = arith.constant 0 : index
    %2 = vector.load %arg4[%c0_4, %c0_5] : memref<4x2xf32, #tpu.memory_space<vmem>>, vector<4x1xf32>
    %c0_6 = arith.constant 0 : index
    %c1 = arith.constant 1 : index
    %3 = vector.load %arg4[%c0_6, %c1] : memref<4x2xf32, #tpu.memory_space<vmem>>, vector<4x1xf32>
    %cst = arith.constant 0.000000e+00 : f32
    %4 = vector.broadcast %cst : f32 to vector<4x1xf32>
    %5 = arith.cmpf one, %3, %4 : vector<4x1xf32>
    %6 = arith.index_cast %arg0 : i32 to index
    %7 = memref.load %arg1[%6] : memref<1xi32, #tpu.memory_space<smem>>
    %c0_i32 = arith.constant 0 : i32
    %8 = arith.cmpi ne, %7, %c0_i32 : i32
    %true = arith.constant true
    %9 = arith.xori %8, %true : i1
    %10 = arith.extui %9 : i1 to i32
    %c0_i32_7 = arith.constant 0 : i32
    %11 = arith.cmpi ne, %10, %c0_i32_7 : i32
    scf.if %11 {
      %c0_9 = arith.constant 0 : index
      %c0_10 = arith.constant 0 : index
      %c0_11 = arith.constant 0 : index
      %14 = vector.load %arg5[%c0_9, %c0_10, %c0_11] : memref<4x128x16xf32, #tpu.memory_space<vmem>>, vector<4x128x16xf32>
      tpu.vector_store %arg5[%c0_9, %c0_10, %c0_11], %1 {strides = array<i32>} : memref<4x128x16xf32, #tpu.memory_space<vmem>>, vector<4x128x16xf32>,
      %c0_12 = arith.constant 0 : index
      %c0_13 = arith.constant 0 : index
      %15 = vector.load %arg6[%c0_12, %c0_13] : memref<4x128xf32, #tpu.memory_space<vmem>>, vector<4x128xf32>
      tpu.vector_store %arg6[%c0_12, %c0_13], %0 {strides = array<i32>} : memref<4x128xf32, #tpu.memory_space<vmem>>, vector<4x128xf32>,
      %c0_14 = arith.constant 0 : index
      %c0_15 = arith.constant 0 : index
      %16 = vector.load %arg7[%c0_14, %c0_15] : memref<4x128xf32, #tpu.memory_space<vmem>>, vector<4x128xf32>
      tpu.vector_store %arg7[%c0_14, %c0_15], %0 {strides = array<i32>} : memref<4x128xf32, #tpu.memory_space<vmem>>, vector<4x128xf32>,
    } else {
    }
    %12 = arith.extui %8 : i1 to i32
    %c0_i32_8 = arith.constant 0 : i32
    %13 = arith.cmpi ne, %12, %c0_i32_8 : i32
    scf.if %13 {
      %cst_9 = arith.constant dense<0xFF800000> : vector<4xf32>
      %14 = vector.multi_reduction <maximumf>, %0, %cst_9 [1] : vector<4x128xf32> to vector<4xf32>
      %15 = vector.shape_cast %14 : vector<4xf32> to vector<4x1xf32>
      %16 = vector.broadcast %15 : vector<4x1xf32> to vector<4x128xf32>
      %17 = arith.subf %0, %16 : vector<4x128xf32>
      %18 = math.exp %17 : vector<4x128xf32>
      %cst_10 = arith.constant dense<0.000000e+00> : vector<4xf32>
      %19 = vector.multi_reduction <add>, %18, %cst_10 [1] : vector<4x128xf32> to vector<4xf32>
      %20 = vector.shape_cast %19 : vector<4xf32> to vector<4x1xf32>
      %21 = vector.broadcast %15 : vector<4x1xf32> to vector<4x128xf32>
      %22 = arith.subf %0, %21 : vector<4x128xf32>
      %23 = math.log %20 : vector<4x1xf32>
      %24 = vector.broadcast %23 : vector<4x1xf32> to vector<4x128xf32>
      %25 = arith.subf %22, %24 : vector<4x128xf32>
      %26 = tpu.iota {dimensions = array<i32: 1>} : vector<1x128xi32>
      %c1_i32 = arith.constant 1 : i32
      %27 = tpu.dynamic_rotate %18 by %c1_i32 dim 1 : vector<4x128xf32>, i32 -> vector<4x128xf32>
      %c1_i32_11 = arith.constant 1 : i32
      %28 = vector.broadcast %c1_i32_11 : i32 to vector<1x128xi32>
      %29 = arith.cmpi sge, %26, %28 : vector<1x128xi32>
      %cst_12 = arith.constant 0.000000e+00 : f32
      %30 = vector.shape_cast %29 : vector<1x128xi1> to vector<1x128xi1>
      %31 = vector.broadcast %30 : vector<1x128xi1> to vector<4x128xi1>
      %32 = vector.broadcast %cst_12 : f32 to vector<4x128xf32>
      %33 = arith.select %31, %27, %32 : vector<4x128xi1>, vector<4x128xf32>
      %34 = arith.addf %18, %33 : vector<4x128xf32>
      %c2_i32 = arith.constant 2 : i32
      %35 = tpu.dynamic_rotate %34 by %c2_i32 dim 1 : vector<4x128xf32>, i32 -> vector<4x128xf32>
      %c2_i32_13 = arith.constant 2 : i32
      %36 = vector.broadcast %c2_i32_13 : i32 to vector<1x128xi32>
      %37 = arith.cmpi sge, %26, %36 : vector<1x128xi32>
      %cst_14 = arith.constant 0.000000e+00 : f32
      %38 = vector.shape_cast %37 : vector<1x128xi1> to vector<1x128xi1>
      %39 = vector.broadcast %38 : vector<1x128xi1> to vector<4x128xi1>
      %40 = vector.broadcast %cst_14 : f32 to vector<4x128xf32>
      %41 = arith.select %39, %35, %40 : vector<4x128xi1>, vector<4x128xf32>
      %42 = arith.addf %34, %41 : vector<4x128xf32>
      %c4_i32 = arith.constant 4 : i32
      %43 = tpu.dynamic_rotate %42 by %c4_i32 dim 1 : vector<4x128xf32>, i32 -> vector<4x128xf32>
      %c4_i32_15 = arith.constant 4 : i32
      %44 = vector.broadcast %c4_i32_15 : i32 to vector<1x128xi32>
      %45 = arith.cmpi sge, %26, %44 : vector<1x128xi32>
      %cst_16 = arith.constant 0.000000e+00 : f32
      %46 = vector.shape_cast %45 : vector<1x128xi1> to vector<1x128xi1>
      %47 = vector.broadcast %46 : vector<1x128xi1> to vector<4x128xi1>
      %48 = vector.broadcast %cst_16 : f32 to vector<4x128xf32>
      %49 = arith.select %47, %43, %48 : vector<4x128xi1>, vector<4x128xf32>
      %50 = arith.addf %42, %49 : vector<4x128xf32>
      %c8_i32 = arith.constant 8 : i32
      %51 = tpu.dynamic_rotate %50 by %c8_i32 dim 1 : vector<4x128xf32>, i32 -> vector<4x128xf32>
      %c8_i32_17 = arith.constant 8 : i32
      %52 = vector.broadcast %c8_i32_17 : i32 to vector<1x128xi32>
      %53 = arith.cmpi sge, %26, %52 : vector<1x128xi32>
      %cst_18 = arith.constant 0.000000e+00 : f32
      %54 = vector.shape_cast %53 : vector<1x128xi1> to vector<1x128xi1>
      %55 = vector.broadcast %54 : vector<1x128xi1> to vector<4x128xi1>
      %56 = vector.broadcast %cst_18 : f32 to vector<4x128xf32>
      %57 = arith.select %55, %51, %56 : vector<4x128xi1>, vector<4x128xf32>
      %58 = arith.addf %50, %57 : vector<4x128xf32>
      %c16_i32 = arith.constant 16 : i32
      %59 = tpu.dynamic_rotate %58 by %c16_i32 dim 1 : vector<4x128xf32>, i32 -> vector<4x128xf32>
      %c16_i32_19 = arith.constant 16 : i32
      %60 = vector.broadcast %c16_i32_19 : i32 to vector<1x128xi32>
      %61 = arith.cmpi sge, %26, %60 : vector<1x128xi32>
      %cst_20 = arith.constant 0.000000e+00 : f32
      %62 = vector.shape_cast %61 : vector<1x128xi1> to vector<1x128xi1>
      %63 = vector.broadcast %62 : vector<1x128xi1> to vector<4x128xi1>
      %64 = vector.broadcast %cst_20 : f32 to vector<4x128xf32>
      %65 = arith.select %63, %59, %64 : vector<4x128xi1>, vector<4x128xf32>
      %66 = arith.addf %58, %65 : vector<4x128xf32>
      %c32_i32 = arith.constant 32 : i32
      %67 = tpu.dynamic_rotate %66 by %c32_i32 dim 1 : vector<4x128xf32>, i32 -> vector<4x128xf32>
      %c32_i32_21 = arith.constant 32 : i32
      %68 = vector.broadcast %c32_i32_21 : i32 to vector<1x128xi32>
      %69 = arith.cmpi sge, %26, %68 : vector<1x128xi32>
      %cst_22 = arith.constant 0.000000e+00 : f32
      %70 = vector.shape_cast %69 : vector<1x128xi1> to vector<1x128xi1>
      %71 = vector.broadcast %70 : vector<1x128xi1> to vector<4x128xi1>
      %72 = vector.broadcast %cst_22 : f32 to vector<4x128xf32>
      %73 = arith.select %71, %67, %72 : vector<4x128xi1>, vector<4x128xf32>
      %74 = arith.addf %66, %73 : vector<4x128xf32>
      %c64_i32 = arith.constant 64 : i32
      %75 = tpu.dynamic_rotate %74 by %c64_i32 dim 1 : vector<4x128xf32>, i32 -> vector<4x128xf32>
      %c64_i32_23 = arith.constant 64 : i32
      %76 = vector.broadcast %c64_i32_23 : i32 to vector<1x128xi32>
      %77 = arith.cmpi sge, %26, %76 : vector<1x128xi32>
      %cst_24 = arith.constant 0.000000e+00 : f32
      %78 = vector.shape_cast %77 : vector<1x128xi1> to vector<1x128xi1>
      %79 = vector.broadcast %78 : vector<1x128xi1> to vector<4x128xi1>
      %80 = vector.broadcast %cst_24 : f32 to vector<4x128xf32>
      %81 = arith.select %79, %75, %80 : vector<4x128xi1>, vector<4x128xf32>
      %82 = arith.addf %74, %81 : vector<4x128xf32>
      %83 = tpu.reciprocal %20 {approx = true} : vector<4x1xf32> -> vector<4x1xf32>
      %cst_25 = arith.constant 1.280000e+02 : f32
      %84 = vector.broadcast %cst_25 : f32 to vector<4x1xf32>
      %85 = arith.mulf %84, %83 : vector<4x1xf32>
      %86 = vector.broadcast %85 : vector<4x1xf32> to vector<4x128xf32>
      %87 = arith.mulf %82, %86 : vector<4x128xf32>
      %88 = vector.broadcast %2 : vector<4x1xf32> to vector<4x128xf32>
      %89 = arith.subf %87, %88 : vector<4x128xf32>
      %c1_i32_26 = arith.constant 1 : i32
      %90 = tpu.dynamic_rotate %89 by %c1_i32_26 dim 1 : vector<4x128xf32>, i32 -> vector<4x128xf32>
      %c1_i32_27 = arith.constant 1 : i32
      %91 = vector.broadcast %c1_i32_27 : i32 to vector<1x128xi32>
      %92 = arith.cmpi sge, %26, %91 : vector<1x128xi32>
      %93 = arith.maximumf %89, %90 : vector<4x128xf32>
      %94 = vector.shape_cast %92 : vector<1x128xi1> to vector<1x128xi1>
      %95 = vector.broadcast %94 : vector<1x128xi1> to vector<4x128xi1>
      %96 = arith.select %95, %93, %89 : vector<4x128xi1>, vector<4x128xf32>
      %c2_i32_28 = arith.constant 2 : i32
      %97 = tpu.dynamic_rotate %96 by %c2_i32_28 dim 1 : vector<4x128xf32>, i32 -> vector<4x128xf32>
      %c2_i32_29 = arith.constant 2 : i32
      %98 = vector.broadcast %c2_i32_29 : i32 to vector<1x128xi32>
      %99 = arith.cmpi sge, %26, %98 : vector<1x128xi32>
      %100 = arith.maximumf %96, %97 : vector<4x128xf32>
      %101 = vector.shape_cast %99 : vector<1x128xi1> to vector<1x128xi1>
      %102 = vector.broadcast %101 : vector<1x128xi1> to vector<4x128xi1>
      %103 = arith.select %102, %100, %96 : vector<4x128xi1>, vector<4x128xf32>
      %c4_i32_30 = arith.constant 4 : i32
      %104 = tpu.dynamic_rotate %103 by %c4_i32_30 dim 1 : vector<4x128xf32>, i32 -> vector<4x128xf32>
      %c4_i32_31 = arith.constant 4 : i32
      %105 = vector.broadcast %c4_i32_31 : i32 to vector<1x128xi32>
      %106 = arith.cmpi sge, %26, %105 : vector<1x128xi32>
      %107 = arith.maximumf %103, %104 : vector<4x128xf32>
      %108 = vector.shape_cast %106 : vector<1x128xi1> to vector<1x128xi1>
      %109 = vector.broadcast %108 : vector<1x128xi1> to vector<4x128xi1>
      %110 = arith.select %109, %107, %103 : vector<4x128xi1>, vector<4x128xf32>
      %c8_i32_32 = arith.constant 8 : i32
      %111 = tpu.dynamic_rotate %110 by %c8_i32_32 dim 1 : vector<4x128xf32>, i32 -> vector<4x128xf32>
      %c8_i32_33 = arith.constant 8 : i32
      %112 = vector.broadcast %c8_i32_33 : i32 to vector<1x128xi32>
      %113 = arith.cmpi sge, %26, %112 : vector<1x128xi32>
      %114 = arith.maximumf %110, %111 : vector<4x128xf32>
      %115 = vector.shape_cast %113 : vector<1x128xi1> to vector<1x128xi1>
      %116 = vector.broadcast %115 : vector<1x128xi1> to vector<4x128xi1>
      %117 = arith.select %116, %114, %110 : vector<4x128xi1>, vector<4x128xf32>
      %c16_i32_34 = arith.constant 16 : i32
      %118 = tpu.dynamic_rotate %117 by %c16_i32_34 dim 1 : vector<4x128xf32>, i32 -> vector<4x128xf32>
      %c16_i32_35 = arith.constant 16 : i32
      %119 = vector.broadcast %c16_i32_35 : i32 to vector<1x128xi32>
      %120 = arith.cmpi sge, %26, %119 : vector<1x128xi32>
      %121 = arith.maximumf %117, %118 : vector<4x128xf32>
      %122 = vector.shape_cast %120 : vector<1x128xi1> to vector<1x128xi1>
      %123 = vector.broadcast %122 : vector<1x128xi1> to vector<4x128xi1>
      %124 = arith.select %123, %121, %117 : vector<4x128xi1>, vector<4x128xf32>
      %c32_i32_36 = arith.constant 32 : i32
      %125 = tpu.dynamic_rotate %124 by %c32_i32_36 dim 1 : vector<4x128xf32>, i32 -> vector<4x128xf32>
      %c32_i32_37 = arith.constant 32 : i32
      %126 = vector.broadcast %c32_i32_37 : i32 to vector<1x128xi32>
      %127 = arith.cmpi sge, %26, %126 : vector<1x128xi32>
      %128 = arith.maximumf %124, %125 : vector<4x128xf32>
      %129 = vector.shape_cast %127 : vector<1x128xi1> to vector<1x128xi1>
      %130 = vector.broadcast %129 : vector<1x128xi1> to vector<4x128xi1>
      %131 = arith.select %130, %128, %124 : vector<4x128xi1>, vector<4x128xf32>
      %c64_i32_38 = arith.constant 64 : i32
      %132 = tpu.dynamic_rotate %131 by %c64_i32_38 dim 1 : vector<4x128xf32>, i32 -> vector<4x128xf32>
      %c64_i32_39 = arith.constant 64 : i32
      %133 = vector.broadcast %c64_i32_39 : i32 to vector<1x128xi32>
      %134 = arith.cmpi sge, %26, %133 : vector<1x128xi32>
      %135 = arith.maximumf %131, %132 : vector<4x128xf32>
      %136 = vector.shape_cast %134 : vector<1x128xi1> to vector<1x128xi1>
      %137 = vector.broadcast %136 : vector<1x128xi1> to vector<4x128xi1>
      %138 = arith.select %137, %135, %131 : vector<4x128xi1>, vector<4x128xf32>
      %c0_i32_40 = arith.constant 0 : i32
      %139 = vector.broadcast %c0_i32_40 : i32 to vector<1x128xi32>
      %140 = arith.cmpi eq, %26, %139 : vector<1x128xi32>
      %c1_i32_41 = arith.constant 1 : i32
      %141 = tpu.dynamic_rotate %138 by %c1_i32_41 dim 1 : vector<4x128xf32>, i32 -> vector<4x128xf32>
      %cst_42 = arith.constant -1.000000e+00 : f32
      %142 = vector.shape_cast %140 : vector<1x128xi1> to vector<1x128xi1>
      %143 = vector.broadcast %142 : vector<1x128xi1> to vector<4x128xi1>
      %144 = vector.broadcast %cst_42 : f32 to vector<4x128xf32>
      %145 = arith.select %143, %144, %141 : vector<4x128xi1>, vector<4x128xf32>
      %c127_i32 = arith.constant 127 : i32
      %146 = vector.broadcast %c127_i32 : i32 to vector<1x128xi32>
      %147 = arith.cmpi eq, %26, %146 : vector<1x128xi32>
      %cst_43 = arith.constant 1.280000e+02 : f32
      %148 = vector.shape_cast %147 : vector<1x128xi1> to vector<1x128xi1>
      %149 = vector.broadcast %148 : vector<1x128xi1> to vector<4x128xi1>
      %150 = vector.broadcast %cst_43 : f32 to vector<4x128xf32>
      %151 = arith.select %149, %150, %89 : vector<4x128xi1>, vector<4x128xf32>
      %152 = tpu.iota {dimensions = array<i32: 1>} : vector<4x128x128xi32>
      %153 = arith.sitofp %152 : vector<4x128x128xi32> to vector<4x128x128xf32>
      %154 = vector.shape_cast %145 : vector<4x128xf32> to vector<4x1x128xf32>
      %155 = vector.broadcast %154 : vector<4x1x128xf32> to vector<4x128x128xf32>
      %156 = arith.cmpf olt, %155, %153 : vector<4x128x128xf32>
      %157 = vector.shape_cast %151 : vector<4x128xf32> to vector<4x1x128xf32>
      %158 = vector.broadcast %157 : vector<4x1x128xf32> to vector<4x128x128xf32>
      %159 = arith.cmpf oge, %158, %153 : vector<4x128x128xf32>
      %160 = arith.andi %156, %159 : vector<4x128x128xi1>
      %161 = arith.extui %160 : vector<4x128x128xi1> to vector<4x128x128xi32>
      %162 = arith.sitofp %161 : vector<4x128x128xi32> to vector<4x128x128xf32>
      %163 = arith.truncf %162 : vector<4x128x128xf32> to vector<4x128x128xbf16>
      %164 = arith.truncf %1 : vector<4x128x16xf32> to vector<4x128x16xbf16>
      %165 = arith.extf %164 : vector<4x128x16xbf16> to vector<4x128x16xf32>
      %166 = arith.subf %1, %165 : vector<4x128x16xf32>
      %167 = arith.truncf %166 : vector<4x128x16xf32> to vector<4x128x16xbf16>
      %168 = arith.extf %167 : vector<4x128x16xbf16> to vector<4x128x16xf32>
      %169 = arith.subf %166, %168 : vector<4x128x16xf32>
      %170 = arith.truncf %169 : vector<4x128x16xf32> to vector<4x128x16xbf16>
      "tpu.trace_start"() <{level = 10 : i32, message = "bij,bjd->bid"}> : () -> ()
      %cst_44 = arith.constant dense<0.000000e+00> : vector<4x128x16xf32>
      %171 = tpu.matmul %163, %164, %cst_44 {dimension_numbers = #tpu.dot_dimension_numbers<[2], [1], [1], [2], [0, 0, 0, 1, 1, 2], [0], [0]>} : vector<4x128x128xbf16>, vector<4x128x16xbf16>, vector<4x128x16xf32> -> vector<4x128x16xf32>
      %cst_45 = arith.constant dense<0.000000e+00> : vector<4x128x16xf32>
      %172 = tpu.matmul %163, %167, %cst_45 {dimension_numbers = #tpu.dot_dimension_numbers<[2], [1], [1], [2], [0, 0, 0, 1, 1, 2], [0], [0]>} : vector<4x128x128xbf16>, vector<4x128x16xbf16>, vector<4x128x16xf32> -> vector<4x128x16xf32>
      "tpu.trace_stop"() : () -> ()
      %173 = arith.addf %171, %172 : vector<4x128x16xf32>
      "tpu.trace_start"() <{level = 10 : i32, message = "bij,bjd->bid"}> : () -> ()
      %cst_46 = arith.constant dense<0.000000e+00> : vector<4x128x16xf32>
      %174 = tpu.matmul %163, %170, %cst_46 {dimension_numbers = #tpu.dot_dimension_numbers<[2], [1], [1], [2], [0, 0, 0, 1, 1, 2], [0], [0]>} : vector<4x128x128xbf16>, vector<4x128x16xbf16>, vector<4x128x16xf32> -> vector<4x128x16xf32>
      "tpu.trace_stop"() : () -> ()
      %175 = arith.addf %173, %174 : vector<4x128x16xf32>
      %cst_47 = arith.constant -4.85203028 : f32
      %176 = vector.broadcast %cst_47 : f32 to vector<4x128xf32>
      %177 = vector.shape_cast %5 : vector<4x1xi1> to vector<4x1x1xi1>
      %178 = vector.shape_cast %177 : vector<4x1x1xi1> to vector<4x1x1xi1>
      %179 = vector.broadcast %178 : vector<4x1x1xi1> to vector<4x128x16xi1>
      %180 = arith.select %179, %175, %1 : vector<4x128x16xi1>, vector<4x128x16xf32>
      %c0_48 = arith.constant 0 : index
      %c0_49 = arith.constant 0 : index
      %c0_50 = arith.constant 0 : index
      %181 = vector.load %arg5[%c0_48, %c0_49, %c0_50] : memref<4x128x16xf32, #tpu.memory_space<vmem>>, vector<4x128x16xf32>
      tpu.vector_store %arg5[%c0_48, %c0_49, %c0_50], %180 {strides = array<i32>} : memref<4x128x16xf32, #tpu.memory_space<vmem>>, vector<4x128x16xf32>,
      %182 = vector.shape_cast %5 : vector<4x1xi1> to vector<4x1xi1>
      %183 = vector.broadcast %182 : vector<4x1xi1> to vector<4x128xi1>
      %184 = arith.select %183, %176, %0 : vector<4x128xi1>, vector<4x128xf32>
      %c0_51 = arith.constant 0 : index
      %c0_52 = arith.constant 0 : index
      %185 = vector.load %arg6[%c0_51, %c0_52] : memref<4x128xf32, #tpu.memory_space<vmem>>, vector<4x128xf32>
      tpu.vector_store %arg6[%c0_51, %c0_52], %184 {strides = array<i32>} : memref<4x128xf32, #tpu.memory_space<vmem>>, vector<4x128xf32>,
      %186 = vector.shape_cast %5 : vector<4x1xi1> to vector<4x1xi1>
      %187 = vector.broadcast %186 : vector<4x1xi1> to vector<4x128xi1>
      %188 = arith.select %187, %25, %0 : vector<4x128xi1>, vector<4x128xf32>
      %c0_53 = arith.constant 0 : index
      %c0_54 = arith.constant 0 : index
      %189 = vector.load %arg7[%c0_53, %c0_54] : memref<4x128xf32, #tpu.memory_space<vmem>>, vector<4x128xf32>
      tpu.vector_store %arg7[%c0_53, %c0_54], %188 {strides = array<i32>} : memref<4x128xf32, #tpu.memory_space<vmem>>, vector<4x128xf32>,
    } else {
    }
    return
  }
  func.func @transform_0(%arg0: i32, %arg1: memref<1xi32, #tpu.memory_space<smem>>) -> (i32, i32) {
    %c0_i32 = arith.constant 0 : i32
    %c0_i32_0 = arith.constant 0 : i32
    return %arg0, %c0_i32 : i32, i32
  }
  func.func @transform_1(%arg0: i32, %arg1: memref<1xi32, #tpu.memory_space<smem>>) -> (i32, i32, i32) {
    %c0_i32 = arith.constant 0 : i32
    %c0_i32_0 = arith.constant 0 : i32
    %c0_i32_1 = arith.constant 0 : i32
    return %arg0, %c0_i32, %c0_i32_0 : i32, i32, i32
  }
  func.func @transform_2(%arg0: i32, %arg1: memref<1xi32, #tpu.memory_space<smem>>) -> (i32, i32) {
    %c0_i32 = arith.constant 0 : i32
    %c0_i32_0 = arith.constant 0 : i32
    return %arg0, %c0_i32 : i32, i32
  }
  func.func @transform_3(%arg0: i32, %arg1: memref<1xi32, #tpu.memory_space<smem>>) -> (i32, i32, i32) {
    %c0_i32 = arith.constant 0 : i32
    %c0_i32_0 = arith.constant 0 : i32
    %c0_i32_1 = arith.constant 0 : i32
    return %arg0, %c0_i32, %c0_i32_0 : i32, i32, i32
  }
  func.func @transform_4(%arg0: i32, %arg1: memref<1xi32, #tpu.memory_space<smem>>) -> (i32, i32) {
    %c0_i32 = arith.constant 0 : i32
    %c0_i32_0 = arith.constant 0 : i32
    return %arg0, %c0_i32 : i32, i32
  }
  func.func @transform_5(%arg0: i32, %arg1: memref<1xi32, #tpu.memory_space<smem>>) -> (i32, i32) {
    %c0_i32 = arith.constant 0 : i32
    %c0_i32_0 = arith.constant 0 : i32
    return %arg0, %c0_i32 : i32, i32
  }
}

</mosaic_0001>

<bundles_post_ra>
// kernel: tpu_custom_call.1
= control target key start
LH: loop header
LB: loop body
LE: loop exit
PB: predicated region body
PF: predicated region fallthrough
CT: control target
= control target key end

     0   :  { %13 = vsyncpa [#allocation5], 0  ;;  %s6563_s0 = inlined_call_operand.<no memory space> [shape: s32[1], index: 0, kind: input, shape index: {}]   ;;  %s6564_s1 = inlined_call_operand.vmem [shape: f32[4,128], index: 1, kind: input, shape index: {}]   ;;  %s6565_s2 = inlined_call_operand.vmem [shape: f32[4,128,16], index: 2, kind: input, shape index: {}]   ;;  %s6566_s3 = inlined_call_operand.vmem [shape: f32[4,2], index: 3, kind: input, shape index: {}]   ;;  %s6567_s4 = inlined_call_operand.vmem [shape: f32[4,128,16], index: 4, kind: output, shape index: {0}]   ;;  %s6568_s5 = inlined_call_operand.hbm [shape: f32[4,128], index: 5, kind: output, shape index: {1}]   ;;  %s6569_s6 = inlined_call_operand.hbm [shape: f32[4,128], index: 6, kind: output, shape index: {2}]  }
   0x1   :  { %14 = vsyncpa [#allocation7], 0  ;;  %v3648_v0 = vld [vmem:[%s6564_s1] sm:$0xf]  ;;  %v3658_v2 = vld [vmem:[%s6565_s2 + $0x8] sm:$0xff]  ;;  %p2565_p0 = scmp.ne.s32.totalorder %s6563_s0, 0 }
   0x2   :  { %6903 = vst [vmem:[#allocation10_spill] sm:$0xff] %v3648_v0  ;;  %v3653_v1 = vld [vmem:[%s6565_s2] sm:$0xff]  ;;  %6905 = vst [vmem:[#allocation12_spill] sm:$0xff] %v3658_v2  ;;  %v3663_v3 = vld [vmem:[%s6565_s2 + $0x10] sm:$0xff]  ;;  %vm95_vm1 = vcmask (!%p2565_p0), 130048  }
   0x3   :  { %6904 = vst [vmem:[#allocation11_spill] sm:$0xff] %v3653_v1  ;;  %6906 = vst [vmem:[#allocation13_spill] sm:$0xff] %v3663_v3  ;;  %v3668_v4 = vld [vmem:[%s6565_s2 + $0x18] sm:$0xff]  ;;  %v3673_v5 = vld [vmem:[%s6565_s2 + $0x20] sm:$0xff] }
   0x4   :  { %6907 = vst [vmem:[#allocation14_spill] sm:$0xff] %v3668_v4  ;;  %6908 = vst [vmem:[#allocation15_spill] sm:$0xff] %v3673_v5  ;;  %v3678_v6 = vld [vmem:[%s6565_s2 + $0x28] sm:$0xff]  ;;  %v3683_v7 = vld [vmem:[%s6565_s2 + $0x30] sm:$0xff] }
   0x5   :  { %6909 = vst [vmem:[#allocation16_spill] sm:$0xff] %v3678_v6  ;;  %6910 = vst [vmem:[#allocation17_spill] sm:$0xff] %v3683_v7  ;;  %v3688_v8 = vld [vmem:[%s6565_s2 + $0x38] sm:$0xff]  ;;  %v3693_v9 = vld [vmem:[%s6565_s2 + $0x40] sm:$0xff] }
   0x6   :  { %6911 = vst [vmem:[#allocation18_spill] sm:$0xff] %v3688_v8  ;;  %6912 = vst [vmem:[#allocation19_spill] sm:$0xff] %v3693_v9  ;;  %v3698_v10 = vld [vmem:[%s6565_s2 + $0x48] sm:$0xff]  ;;  %v3703_v11 = vld [vmem:[%s6565_s2 + $0x50] sm:$0xff] }
   0x7   :  { %6913 = vst [vmem:[#allocation20_spill] sm:$0xff] %v3698_v10  ;;  %6914 = vst [vmem:[#allocation21_spill] sm:$0xff] %v3703_v11  ;;  %v3708_v12 = vld [vmem:[%s6565_s2 + $0x58] sm:$0xff]  ;;  %v3713_v13 = vld [vmem:[%s6565_s2 + $0x60] sm:$0xff] }
   0x8   :  { %6915 = vst [vmem:[#allocation22_spill] sm:$0xff] %v3708_v12  ;;  %6916 = vst [vmem:[#allocation23_spill] sm:$0xff] %v3713_v13  ;;  %v3718_v14 = vld [vmem:[%s6565_s2 + $0x68] sm:$0xff]  ;;  %v3723_v15 = vld [vmem:[%s6565_s2 + $0x70] sm:$0xff] }
   0x9   :  { %6917 = vst [vmem:[#allocation24_spill] sm:$0xff] %v3718_v14  ;;  %6918 = vst [vmem:[#allocation25_spill] sm:$0xff] %v3723_v15  ;;  %v3728_v16 = vld [vmem:[%s6565_s2 + $0x78] sm:$0xff]  ;;  %v3733_v17 = vld [vmem:[%s6565_s2 + $0x80] sm:$0xff] }
   0xa   :  { %6919 = vst [vmem:[#allocation26_spill] sm:$0xff] %v3728_v16  ;;  %6920 = vst [vmem:[#allocation27_spill] sm:$0xff] %v3733_v17  ;;  %v3738_v18 = vld [vmem:[%s6565_s2 + $0x88] sm:$0xff]  ;;  %v3743_v19 = vld [vmem:[%s6565_s2 + $0x90] sm:$0xff] }
   0xb   :  { %6921 = vst [vmem:[#allocation28_spill] sm:$0xff] %v3738_v18  ;;  %6922 = vst [vmem:[#allocation29_spill] sm:$0xff] %v3743_v19  ;;  %v3748_v20 = vld [vmem:[%s6565_s2 + $0x98] sm:$0xff]  ;;  %v3753_v21 = vld [vmem:[%s6565_s2 + $0xa0] sm:$0xff] }
   0xc   :  { %6923 = vst [vmem:[#allocation30_spill] sm:$0xff] %v3748_v20  ;;  %6924 = vst [vmem:[#allocation31_spill] sm:$0xff] %v3753_v21  ;;  %v3758_v22 = vld [vmem:[%s6565_s2 + $0xa8] sm:$0xff]  ;;  %v3763_v23 = vld [vmem:[%s6565_s2 + $0xb0] sm:$0xff] }
   0xd   :  { %6925 = vst [vmem:[#allocation32_spill] sm:$0xff] %v3758_v22  ;;  %6926 = vst [vmem:[#allocation33_spill] sm:$0xff] %v3763_v23  ;;  %v3768_v24 = vld [vmem:[%s6565_s2 + $0xb8] sm:$0xff]  ;;  %v3773_v25 = vld [vmem:[%s6565_s2 + $0xc0] sm:$0xff] }
   0xe   :  { %6927 = vst [vmem:[#allocation34_spill] sm:$0xff] %v3768_v24  ;;  %6928 = vst [vmem:[#allocation35_spill] sm:$0xff] %v3773_v25  ;;  %v3778_v26 = vld [vmem:[%s6565_s2 + $0xc8] sm:$0xff]  ;;  %v3783_v27 = vld [vmem:[%s6565_s2 + $0xd0] sm:$0xff] }
   0xf   :  { %6929 = vst [vmem:[#allocation36_spill] sm:$0xff] %v3778_v26  ;;  %6930 = vst [vmem:[#allocation37_spill] sm:$0xff] %v3783_v27  ;;  %v3788_v28 = vld [vmem:[%s6565_s2 + $0xd8] sm:$0xff]  ;;  %v3793_v29 = vld [vmem:[%s6565_s2 + $0xe0] sm:$0xff] }
  0x10   :  { %6931 = vst [vmem:[#allocation38_spill] sm:$0xff] %v3788_v28  ;;  %6932 = vst [vmem:[#allocation39_spill] sm:$0xff] %v3793_v29  ;;  %v3798_v30 = vld [vmem:[%s6565_s2 + $0xe8] sm:$0xff]  ;;  %v3803_v31 = vld [vmem:[%s6565_s2 + $0xf0] sm:$0xff] }
  0x11   :  { %6933 = vst [vmem:[#allocation40_spill] sm:$0xff] %v3798_v30  ;;  %6934 = vst [vmem:[#allocation41_spill] sm:$0xff] %v3803_v31  ;;  %v3808_v32 = vld [vmem:[%s6565_s2 + $0xf8] sm:$0xff]  ;;  %v3813_v33 = vld [vmem:[%s6565_s2 + $0x100] sm:$0xff] }
  0x12   :  { %6935 = vst [vmem:[#allocation42_spill] sm:$0xff] %v3808_v32  ;;  %6936 = vst [vmem:[#allocation43_spill] sm:$0xff] %v3813_v33  ;;  %v3818_v34 = vld [vmem:[%s6565_s2 + $0x108] sm:$0xff]  ;;  %v3823_v35 = vld [vmem:[%s6565_s2 + $0x110] sm:$0xff] }
  0x13   :  { %6937 = vst [vmem:[#allocation44_spill] sm:$0xff] %v3818_v34  ;;  %6938 = vst [vmem:[#allocation45_spill] sm:$0xff] %v3823_v35  ;;  %v3828_v36 = vld [vmem:[%s6565_s2 + $0x118] sm:$0xff]  ;;  %v3833_v37 = vld [vmem:[%s6565_s2 + $0x120] sm:$0xff] }
  0x14   :  { %6939 = vst [vmem:[#allocation46_spill] sm:$0xff] %v3828_v36  ;;  %6940 = vst [vmem:[#allocation47_spill] sm:$0xff] %v3833_v37  ;;  %v3838_v38 = vld [vmem:[%s6565_s2 + $0x128] sm:$0xff]  ;;  %v3843_v39 = vld [vmem:[%s6565_s2 + $0x130] sm:$0xff] }
  0x15   :  { %6941 = vst [vmem:[#allocation48_spill] sm:$0xff] %v3838_v38  ;;  %6942 = vst [vmem:[#allocation49_spill] sm:$0xff] %v3843_v39  ;;  %v3848_v40 = vld [vmem:[%s6565_s2 + $0x138] sm:$0xff]  ;;  %v3853_v41 = vld [vmem:[%s6565_s2 + $0x140] sm:$0xff] }
  0x16   :  { %6943 = vst [vmem:[#allocation50_spill] sm:$0xff] %v3848_v40  ;;  %6944 = vst [vmem:[#allocation51_spill] sm:$0xff] %v3853_v41  ;;  %v3858_v42 = vld [vmem:[%s6565_s2 + $0x148] sm:$0xff]  ;;  %v3863_v43 = vld [vmem:[%s6565_s2 + $0x150] sm:$0xff] }
  0x17   :  { %6945 = vst [vmem:[#allocation52_spill] sm:$0xff] %v3858_v42  ;;  %6946 = vst [vmem:[#allocation53_spill] sm:$0xff] %v3863_v43  ;;  %v3868_v44 = vld [vmem:[%s6565_s2 + $0x158] sm:$0xff]  ;;  %v3873_v45 = vld [vmem:[%s6565_s2 + $0x160] sm:$0xff] }
  0x18   :  { %6947 = vst [vmem:[#allocation54_spill] sm:$0xff] %v3868_v44  ;;  %6948 = vst [vmem:[#allocation55_spill] sm:$0xff] %v3873_v45  ;;  %v3878_v46 = vld [vmem:[%s6565_s2 + $0x168] sm:$0xff]  ;;  %v3883_v47 = vld [vmem:[%s6565_s2 + $0x170] sm:$0xff] }
  0x19   :  { %6949 = vst [vmem:[#allocation56_spill] sm:$0xff] %v3878_v46  ;;  %6950 = vst [vmem:[#allocation57_spill] sm:$0xff] %v3883_v47  ;;  %v3888_v48 = vld [vmem:[%s6565_s2 + $0x178] sm:$0xff]  ;;  %v3893_v49 = vld [vmem:[%s6565_s2 + $0x180] sm:$0xff] }
  0x1a   :  { %6951 = vst [vmem:[#allocation58_spill] sm:$0xff] %v3888_v48  ;;  %6952 = vst [vmem:[#allocation59_spill] sm:$0xff] %v3893_v49  ;;  %v3898_v50 = vld [vmem:[%s6565_s2 + $0x188] sm:$0xff]  ;;  %v3903_v51 = vld [vmem:[%s6565_s2 + $0x190] sm:$0xff] }
  0x1b   :  { %6953 = vst [vmem:[#allocation60_spill] sm:$0xff] %v3898_v50  ;;  %6954 = vst [vmem:[#allocation61_spill] sm:$0xff] %v3903_v51  ;;  %v3908_v52 = vld [vmem:[%s6565_s2 + $0x198] sm:$0xff]  ;;  %v3913_v53 = vld [vmem:[%s6565_s2 + $0x1a0] sm:$0xff] }
  0x1c   :  { %6955 = vst [vmem:[#allocation62_spill] sm:$0xff] %v3908_v52  ;;  %6956 = vst [vmem:[#allocation63_spill] sm:$0xff] %v3913_v53  ;;  %v3918_v54 = vld [vmem:[%s6565_s2 + $0x1a8] sm:$0xff]  ;;  %v3923_v55 = vld [vmem:[%s6565_s2 + $0x1b0] sm:$0xff]  ;;  %94 = sbr.rel (%p2565_p0) target bundleno = 68 (0x44), region = 17 }
  0x1d   :  { %6957 = vst [vmem:[#allocation64_spill] sm:$0xff] %v3918_v54  ;;  %6958 = vst [vmem:[#allocation65_spill] sm:$0xff] %v3923_v55  ;;  %v3928_v56 = vld [vmem:[%s6565_s2 + $0x1b8] sm:$0xff]  ;;  %v3933_v57 = vld [vmem:[%s6565_s2 + $0x1c0] sm:$0xff] }
  0x1e   :  { %6959 = vst [vmem:[#allocation66_spill] sm:$0xff] %v3928_v56  ;;  %6960 = vst [vmem:[#allocation67_spill] sm:$0xff] %v3933_v57  ;;  %v3938_v58 = vld [vmem:[%s6565_s2 + $0x1c8] sm:$0xff]  ;;  %v3943_v59 = vld [vmem:[%s6565_s2 + $0x1d0] sm:$0xff] }
  0x1f   :  { %6961 = vst [vmem:[#allocation68_spill] sm:$0xff] %v3938_v58  ;;  %6962 = vst [vmem:[#allocation69_spill] sm:$0xff] %v3943_v59  ;;  %v3948_v60 = vld [vmem:[%s6565_s2 + $0x1d8] sm:$0xff]  ;;  %v3953_v61 = vld [vmem:[%s6565_s2 + $0x1e0] sm:$0xff] }
  0x20   :  { %6963 = vst [vmem:[#allocation70_spill] sm:$0xff] %v3948_v60  ;;  %6964 = vst [vmem:[#allocation71_spill] sm:$0xff] %v3953_v61  ;;  %v3958_v62 = vld [vmem:[%s6565_s2 + $0x1e8] sm:$0xff]  ;;  %v3963_v63 = vld [vmem:[%s6565_s2 + $0x1f0] sm:$0xff] }
  0x21   :  { %6965 = vst [vmem:[#allocation72_spill] sm:$0xff] %v3958_v62  ;;  %6966 = vst [vmem:[#allocation73_spill] sm:$0xff] %v3963_v63  ;;  %v3968_v59 = vld [vmem:[%s6565_s2 + $0x1f8] sm:$0xff]  ;;  %v3973_v60 = vld [vmem:[%s6566_s3] sm:$0xf] }
  0x22   :  { %6967 = vst [vmem:[#allocation74_spill] sm:$0xff] %v3968_v59  ;;  %vm88_vm0 = vcmp.ne.f32.partialorder %v3973_v60, 0.0  ;;  %160 = vst [vmem:[#allocation4] sm:$0xf] (!%p2565_p0), %v3648_v0 }
  0x23   :  { %161 = vst [vmem:[#allocation6] sm:$0xf] %v3648_v0  ;;  %96 = vst.msk [vmem:[%s6567_s4] sm:$0xff] %vm95_vm1, %v3653_v1 }
  0x24   :  { %97 = vst.msk [vmem:[%s6567_s4 + $0x8] sm:$0xff] %vm95_vm1, %v3658_v2  ;;  %98 = vst.msk [vmem:[%s6567_s4 + $0x10] sm:$0xff] %vm95_vm1, %v3663_v3 }
  0x25   :  { %99 = vst.msk [vmem:[%s6567_s4 + $0x18] sm:$0xff] %vm95_vm1, %v3668_v4  ;;  %100 = vst.msk [vmem:[%s6567_s4 + $0x20] sm:$0xff] %vm95_vm1, %v3673_v5 }
  0x26   :  { %101 = vst.msk [vmem:[%s6567_s4 + $0x28] sm:$0xff] %vm95_vm1, %v3678_v6  ;;  %102 = vst.msk [vmem:[%s6567_s4 + $0x30] sm:$0xff] %vm95_vm1, %v3683_v7 }
  0x27   :  { %103 = vst.msk [vmem:[%s6567_s4 + $0x38] sm:$0xff] %vm95_vm1, %v3688_v8  ;;  %104 = vst.msk [vmem:[%s6567_s4 + $0x40] sm:$0xff] %vm95_vm1, %v3693_v9 }
  0x28   :  { %105 = vst.msk [vmem:[%s6567_s4 + $0x48] sm:$0xff] %vm95_vm1, %v3698_v10  ;;  %106 = vst.msk [vmem:[%s6567_s4 + $0x50] sm:$0xff] %vm95_vm1, %v3703_v11 }
  0x29   :  { %107 = vst.msk [vmem:[%s6567_s4 + $0x58] sm:$0xff] %vm95_vm1, %v3708_v12  ;;  %108 = vst.msk [vmem:[%s6567_s4 + $0x60] sm:$0xff] %vm95_vm1, %v3713_v13 }
  0x2a   :  { %109 = vst.msk [vmem:[%s6567_s4 + $0x68] sm:$0xff] %vm95_vm1, %v3718_v14  ;;  %110 = vst.msk [vmem:[%s6567_s4 + $0x70] sm:$0xff] %vm95_vm1, %v3723_v15 }
  0x2b   :  { %111 = vst.msk [vmem:[%s6567_s4 + $0x78] sm:$0xff] %vm95_vm1, %v3728_v16  ;;  %112 = vst.msk [vmem:[%s6567_s4 + $0x80] sm:$0xff] %vm95_vm1, %v3733_v17 }
  0x2c   :  { %113 = vst.msk [vmem:[%s6567_s4 + $0x88] sm:$0xff] %vm95_vm1, %v3738_v18  ;;  %114 = vst.msk [vmem:[%s6567_s4 + $0x90] sm:$0xff] %vm95_vm1, %v3743_v19 }
  0x2d   :  { %115 = vst.msk [vmem:[%s6567_s4 + $0x98] sm:$0xff] %vm95_vm1, %v3748_v20  ;;  %116 = vst.msk [vmem:[%s6567_s4 + $0xa0] sm:$0xff] %vm95_vm1, %v3753_v21 }
  0x2e   :  { %117 = vst.msk [vmem:[%s6567_s4 + $0xa8] sm:$0xff] %vm95_vm1, %v3758_v22  ;;  %118 = vst.msk [vmem:[%s6567_s4 + $0xb0] sm:$0xff] %vm95_vm1, %v3763_v23 }
  0x2f   :  { %119 = vst.msk [vmem:[%s6567_s4 + $0xb8] sm:$0xff] %vm95_vm1, %v3768_v24  ;;  %120 = vst.msk [vmem:[%s6567_s4 + $0xc0] sm:$0xff] %vm95_vm1, %v3773_v25 }
  0x30   :  { %121 = vst.msk [vmem:[%s6567_s4 + $0xc8] sm:$0xff] %vm95_vm1, %v3778_v26  ;;  %122 = vst.msk [vmem:[%s6567_s4 + $0xd0] sm:$0xff] %vm95_vm1, %v3783_v27 }
  0x31   :  { %123 = vst.msk [vmem:[%s6567_s4 + $0xd8] sm:$0xff] %vm95_vm1, %v3788_v28  ;;  %124 = vst.msk [vmem:[%s6567_s4 + $0xe0] sm:$0xff] %vm95_vm1, %v3793_v29 }
  0x32   :  { %125 = vst.msk [vmem:[%s6567_s4 + $0xe8] sm:$0xff] %vm95_vm1, %v3798_v30  ;;  %126 = vst.msk [vmem:[%s6567_s4 + $0xf0] sm:$0xff] %vm95_vm1, %v3803_v31 }
  0x33   :  { %127 = vst.msk [vmem:[%s6567_s4 + $0xf8] sm:$0xff] %vm95_vm1, %v3808_v32  ;;  %128 = vst.msk [vmem:[%s6567_s4 + $0x100] sm:$0xff] %vm95_vm1, %v3813_v33 }
  0x34   :  { %129 = vst.msk [vmem:[%s6567_s4 + $0x108] sm:$0xff] %vm95_vm1, %v3818_v34  ;;  %130 = vst.msk [vmem:[%s6567_s4 + $0x110] sm:$0xff] %vm95_vm1, %v3823_v35 }
  0x35   :  { %131 = vst.msk [vmem:[%s6567_s4 + $0x118] sm:$0xff] %vm95_vm1, %v3828_v36  ;;  %132 = vst.msk [vmem:[%s6567_s4 + $0x120] sm:$0xff] %vm95_vm1, %v3833_v37 }
  0x36   :  { %133 = vst.msk [vmem:[%s6567_s4 + $0x128] sm:$0xff] %vm95_vm1, %v3838_v38  ;;  %134 = vst.msk [vmem:[%s6567_s4 + $0x130] sm:$0xff] %vm95_vm1, %v3843_v39 }
  0x37   :  { %135 = vst.msk [vmem:[%s6567_s4 + $0x138] sm:$0xff] %vm95_vm1, %v3848_v40  ;;  %136 = vst.msk [vmem:[%s6567_s4 + $0x140] sm:$0xff] %vm95_vm1, %v3853_v41 }
  0x38   :  { %137 = vst.msk [vmem:[%s6567_s4 + $0x148] sm:$0xff] %vm95_vm1, %v3858_v42  ;;  %138 = vst.msk [vmem:[%s6567_s4 + $0x150] sm:$0xff] %vm95_vm1, %v3863_v43 }
  0x39   :  { %139 = vst.msk [vmem:[%s6567_s4 + $0x158] sm:$0xff] %vm95_vm1, %v3868_v44  ;;  %140 = vst.msk [vmem:[%s6567_s4 + $0x160] sm:$0xff] %vm95_vm1, %v3873_v45 }
  0x3a   :  { %141 = vst.msk [vmem:[%s6567_s4 + $0x168] sm:$0xff] %vm95_vm1, %v3878_v46  ;;  %142 = vst.msk [vmem:[%s6567_s4 + $0x170] sm:$0xff] %vm95_vm1, %v3883_v47  ;;  %v6969_v47 = vld [vmem:[#allocation70_spill] sm:$0xff] }
  0x3b   :  { %143 = vst.msk [vmem:[%s6567_s4 + $0x178] sm:$0xff] %vm95_vm1, %v3888_v48  ;;  %144 = vst.msk [vmem:[%s6567_s4 + $0x180] sm:$0xff] %vm95_vm1, %v3893_v49  ;;  %v6968_v48 = vld [vmem:[#allocation69_spill] sm:$0xff] }
  0x3c   :  { %145 = vst.msk [vmem:[%s6567_s4 + $0x188] sm:$0xff] %vm95_vm1, %v3898_v50  ;;  %146 = vst.msk [vmem:[%s6567_s4 + $0x190] sm:$0xff] %vm95_vm1, %v3903_v51 }
  0x3d   :  { %147 = vst.msk [vmem:[%s6567_s4 + $0x198] sm:$0xff] %vm95_vm1, %v3908_v52  ;;  %148 = vst.msk [vmem:[%s6567_s4 + $0x1a0] sm:$0xff] %vm95_vm1, %v3913_v53 }
  0x3e   :  { %149 = vst.msk [vmem:[%s6567_s4 + $0x1a8] sm:$0xff] %vm95_vm1, %v3918_v54  ;;  %150 = vst.msk [vmem:[%s6567_s4 + $0x1b0] sm:$0xff] %vm95_vm1, %v3923_v55 }
  0x3f   :  { %151 = vst.msk [vmem:[%s6567_s4 + $0x1b8] sm:$0xff] %vm95_vm1, %v3928_v56  ;;  %152 = vst.msk [vmem:[%s6567_s4 + $0x1c0] sm:$0xff] %vm95_vm1, %v3933_v57 }
  0x40   :  { %153 = vst.msk [vmem:[%s6567_s4 + $0x1c8] sm:$0xff] %vm95_vm1, %v3938_v58  ;;  %154 = vst.msk [vmem:[%s6567_s4 + $0x1d0] sm:$0xff] %vm95_vm1, %v6968_v48 }
  0x41   :  { %155 = vst.msk [vmem:[%s6567_s4 + $0x1d8] sm:$0xff] %vm95_vm1, %v6969_v47  ;;  %156 = vst.msk [vmem:[%s6567_s4 + $0x1e0] sm:$0xff] %vm95_vm1, %v3953_v61 }
  0x42   :  { %157 = vst.msk [vmem:[%s6567_s4 + $0x1e8] sm:$0xff] %vm95_vm1, %v3958_v62  ;;  %158 = vst.msk [vmem:[%s6567_s4 + $0x1f0] sm:$0xff] %vm95_vm1, %v3963_v63 }
  0x43   :  { %159 = vst.msk [vmem:[%s6567_s4 + $0x1f8] sm:$0xff] %vm95_vm1, %v3968_v59 }
  0x44 PF:  { %p2566_p1 = scmp.eq.s32.totalorder %s6563_s0, 0 }
  0x46   :  { %164 = sbr.rel (%p2566_p1) target bundleno = 2463 (0x99f), region = 21 }
  0x4d   :  { %vm165_vm2 = vcmask 1043456   ;;  %s3597_s25 = smov 1   ;;  %v6592_v59 = vlaneseq  ;;  %s3598_s0 = smov 2  }
  0x4e   :  { %v166_v47 = vsel %vm165_vm2, %v3648_v0, -inf  ;;  %s3599_s26 = smov 4   ;;  %s3600_s27 = smov 8  }
  0x4f   :  { %167 = vmax.xlane.f32.xlu0 %v166_v47  ;;  %v4312_v46 = vand.u32 127, %v6592_v59  ;;  %s3601_s28 = smov 16   ;;  %s3603_s29 = smov 32  }
  0x50   :  { %s3604_s2 = smov 64  }
  0x51   :  { %vm182_vm3 = vcmp.ge.s32.totalorder %v4312_v46, 1  ;;  %vm189_vm4 = vcmp.ge.s32.totalorder %v4312_v46, 2  ;;  %vm196_vm5 = vcmp.ge.s32.totalorder %v4312_v46, 4  ;;  %vm203_vm6 = vcmp.ge.s32.totalorder %v4312_v46, 8 }
  0x52   :  { %vm210_vm7 = vcmp.ge.s32.totalorder %v4312_v46, 16  ;;  %vm217_vm8 = vcmp.ge.s32.totalorder %v4312_v46, 32  ;;  %vm224_vm9 = vcmp.ge.s32.totalorder %v4312_v46, 64  ;;  %vm272_vm12 = vcmp.eq.s32.totalorder %v4312_v46, 127 }
  0x53   :  { %vm266_vm13 = vcmp.eq.s32.totalorder %v4312_v46, 0 }
  0xdc   :  { %v168_v48 = vpop.xlane.xlu0 %167 }
  0xdd   :  { %v4307_v63 = vsub.f32 %v3648_v0, %v168_v48 }
  0xdf   :  { %6970 = vst [vmem:[#allocation75_spill] sm:$0xff] %v4307_v63  ;;  %v170_v62 = vmul.f32 1.442695, %v4307_v63 }
  0xe1   :  { %3543 = vpow2.f32 %v170_v62 }
  0xeb   :  { %v3544_v61 = vpop.eup %3543 }
  0xec   :  { %180 = vrot.lane.b32.xlu0 %v3544_v61, %s3597_s25 }
 0x15e   :  { %v181_v45 = vpop.permute.xlu0 %180 }
 0x15f   :  { %v185_v47 = vsel %vm182_vm3, %v181_v45, 0.0 }
 0x160   :  { %v186_v44 = vadd.f32 %v3544_v61, %v185_v47 }
 0x162   :  { %187 = vrot.lane.b32.xlu1 %v186_v44, %s3598_s0 }
 0x1d4   :  { %v188_v62 = vpop.permute.xlu1 %187 }
 0x1d5   :  { %v192_v48 = vsel %vm189_vm4, %v188_v62, 0.0 }
 0x1d6   :  { %v193_v0 = vadd.f32 %v192_v48, %v186_v44  ;;  %v6595_v48 = vmov 0  }
 0x1d7   :  { %3540 = vset.pattern.permute.xlu0 %v6595_v48 }
 0x1d8   :  { %194 = vrot.lane.b32.xlu1 %v193_v0, %s3599_s26  ;;  %234 = vperm.xlu0 %3540, %v3973_v60  }
 0x24a   :  { %v195_v59 = vpop.permute.xlu1 %194 }
 0x24b   :  { %v199_v45 = vsel %vm196_vm5, %v195_v59, 0.0 }
 0x24c   :  { %v200_v47 = vadd.f32 %v199_v45, %v193_v0 }
 0x24e   :  { %201 = vrot.lane.b32.xlu1 %v200_v47, %s3600_s27 }
 0x2c0   :  { %v202_v43 = vpop.permute.xlu1 %201 }
 0x2c1   :  { %v206_v62 = vsel %vm203_vm6, %v202_v43, 0.0  ;;  %v172_v43 = vsel %vm165_vm2, %v3544_v61, 0.0 }
 0x2c2   :  { %v207_v44 = vadd.f32 %v206_v62, %v200_v47 }
 0x2c4   :  { %208 = vrot.lane.b32.xlu1 %v207_v44, %s3601_s28 }
 0x336   :  { %v209_v0 = vpop.permute.xlu1 %208 }
 0x337   :  { %v213_v59 = vsel %vm210_vm7, %v209_v0, 0.0 }
 0x338   :  { %v214_v45 = vadd.f32 %v213_v59, %v207_v44  ;;  %v235_v44 = vpop.permute.xlu0 %234 }
 0x33a   :  { %215 = vrot.lane.b32.xlu1 %v214_v45, %s3603_s29 }
 0x35e   :  { %173 = vadd.xlane.f32.xlu1 %v172_v43 }
 0x3ac   :  { %v216_v47 = vpop.permute.xlu1 %215 }
 0x3ad   :  { %v220_v62 = vsel %vm217_vm8, %v216_v47, 0.0 }
 0x3ae   :  { %v221_v48 = vadd.f32 %v220_v62, %v214_v45 }
 0x3b0   :  { %222 = vrot.lane.b32.xlu0 %v221_v48, %s3604_s2 }
 0x3eb   :  { %v4341_v58 = vpop.xlane.xlu1 %173 }
 0x3ec   :  { %3545 = vrcp.f32 %v4341_v58 }
 0x3ed   :  { %3547 = vlog2.f32 %v4341_v58 }
 0x3f6   :  { %v3546_v0 = vpop.eup %3545 }
 0x3f7   :  { %v230_v43 = vmul.f32 128.0, %v3546_v0 }
 0x422   :  { %v223_v61 = vpop.permute.xlu0 %222 }
 0x423   :  { %v227_v59 = vsel %vm224_vm9, %v223_v61, 0.0 }
 0x424   :  { %v228_v57 = vadd.f32 %v227_v59, %v221_v48 }
 0x426   :  { %v231_v56 = vmul.f32 %v230_v43, %v228_v57 }
 0x428   :  { %v4347_v47 = vsub.f32 %v231_v56, %v235_v44 }
 0x42a   :  { %238 = vrot.lane.b32.xlu0 %v4347_v47, %s3597_s25 }
 0x49c   :  { %v239_v45 = vpop.permute.xlu0 %238 }
 0x49d   :  { %v240_v62 = vmax.f32 %v4347_v47, %v239_v45 }
 0x49f   :  { %v241_v55 = vsel %vm182_vm3, %v240_v62, %v4347_v47 }
 0x4a0   :  { %242 = vrot.lane.b32.xlu0 %v241_v55, %s3598_s0 }
 0x512   :  { %v243_v42 = vpop.permute.xlu0 %242 }
 0x513   :  { %v244_v41 = vmax.f32 %v241_v55, %v243_v42 }
 0x515   :  { %v245_v48 = vsel %vm189_vm4, %v244_v41, %v241_v55  ;;  %v3605_v55 = vmov 1  }
 0x516   :  { %246 = vrot.lane.b32.xlu0 %v245_v48, %s3599_s26  ;;  %3542 = vset.pattern.permute.xlu1 %v3605_v55 }
 0x517   :  { %3541 = vset.pattern.permute.xlu0 %v3605_v55 }
 0x588   :  { %v247_v56 = vpop.permute.xlu0 %246 }
 0x589   :  { %v248_v57 = vmax.f32 %v245_v48, %v247_v56  ;;  %v4376_v56 = vpack.c.bf16 %v3658_v2, %v3653_v1 }
 0x58b   :  { %v249_v44 = vsel %vm196_vm5, %v248_v57, %v245_v48  ;;  %6971 = vst [vmem:[#allocation76_spill] sm:$0xff] %v4376_v56  ;;  %v4380_v57 = vpack.c.bf16 %v3738_v18, %v3733_v17  ;;  %v784_v55 = vunpack.c.h.bf16 %v4376_v56 }
 0x58c   :  { %250 = vrot.lane.b32.xlu0 %v249_v44, %s3600_s27 }
 0x58d   :  { %6972 = vst [vmem:[#allocation77_spill] sm:$0xff] %v4380_v57  ;;  %v4418_v51 = vsub.f32 %v3658_v2, %v784_v55 }
 0x58f   :  { %6976 = vst [vmem:[#allocation81_spill] sm:$0xff] %v4418_v51 }
 0x5fe   :  { %v251_v0 = vpop.permute.xlu0 %250 }
 0x5ff   :  { %v252_v61 = vmax.f32 %v249_v44, %v251_v0  ;;  %v4388_v0 = vpack.c.bf16 %v3748_v20, %v3743_v19 }
 0x601   :  { %v253_v59 = vsel %vm203_vm6, %v252_v61, %v249_v44  ;;  %v4384_v44 = vpack.c.bf16 %v3668_v4, %v3663_v3  ;;  %6974 = vst [vmem:[#allocation79_spill] sm:$0xff] %v4388_v0  ;;  %v4392_v61 = vpack.c.bf16 %v3678_v6, %v3673_v5  ;;  %v801_v40 = vunpack.c.l.bf16 %v4388_v0 }
 0x602   :  { %254 = vrot.lane.b32.xlu0 %v253_v59, %s3601_s28  ;;  %v802_v39 = vunpack.c.h.bf16 %v4388_v0 }
 0x603   :  { %6973 = vst [vmem:[#allocation78_spill] sm:$0xff] %v4384_v44  ;;  %v785_v54 = vunpack.c.l.bf16 %v4384_v44  ;;  %v786_v53 = vunpack.c.h.bf16 %v4384_v44  ;;  %v4433_v0 = vsub.f32 %v3743_v19, %v801_v40 }
 0x605   :  { %v4430_v44 = vsub.f32 %v3668_v4, %v786_v53  ;;  %6981 = vst [vmem:[#allocation86_spill] sm:$0xff] %v4433_v0 }
 0x607   :  { %6980 = vst [vmem:[#allocation85_spill] sm:$0xff] %v4430_v44 }
 0x674   :  { %v255_v42 = vpop.permute.xlu0 %254 }
 0x675   :  { %v256_v43 = vmax.f32 %v253_v59, %v255_v42  ;;  %v4400_v42 = vpack.c.bf16 %v3688_v8, %v3683_v7 }
 0x677   :  { %v257_v41 = vsel %vm210_vm7, %v256_v43, %v253_v59  ;;  %v4396_v59 = vpack.c.bf16 %v3758_v22, %v3753_v21  ;;  %v4404_v43 = vpack.c.bf16 %v3768_v24, %v3763_v23  ;;  %v789_v2 = vunpack.c.l.bf16 %v4400_v42 }
 0x678   :  { %258 = vrot.lane.b32.xlu1 %v257_v41, %s3603_s29  ;;  %v790_v19 = vunpack.c.h.bf16 %v4400_v42 }
 0x679   :  { %v803_v40 = vunpack.c.l.bf16 %v4396_v59 }
 0x67b   :  { %v4471_v4 = vsub.f32 %v3753_v21, %v803_v40  ;;  %v4488_v40 = vsub.f32 %v3688_v8, %v790_v19  ;;  %v4510_v19 = vpack.c.bf16 %v3708_v12, %v3703_v11 }
 0x67d   :  { %6989 = vst [vmem:[#allocation94_spill] sm:$0xff] %v4471_v4  ;;  %6993 = vst [vmem:[#allocation98_spill] sm:$0xff] %v4488_v40 }
 0x6ea   :  { %v259_v45 = vpop.permute.xlu1 %258 }
 0x6eb   :  { %v260_v62 = vmax.f32 %v257_v41, %v259_v45  ;;  %v799_v45 = vunpack.c.l.bf16 %v4380_v57 }
 0x6ed   :  { %v4370_v48 = vsel %vm217_vm8, %v260_v62, %v257_v41  ;;  %v783_v41 = vunpack.c.l.bf16 %v4376_v56  ;;  %v800_v62 = vunpack.c.h.bf16 %v4380_v57  ;;  %v4421_v56 = vsub.f32 %v3733_v17, %v799_v45 }
 0x6ee   :  { %262 = vrot.lane.b32.xlu0 %v4370_v48, %s3604_s2  ;;  %v4427_v57 = vsub.f32 %v3663_v3, %v785_v54  ;;  %v787_v54 = vunpack.c.l.bf16 %v4392_v61  ;;  %v4502_v3 = vpack.c.bf16 %v3698_v10, %v3693_v9 }
 0x6ef   :  { %v4415_v52 = vsub.f32 %v3653_v1, %v783_v41  ;;  %6977 = vst [vmem:[#allocation82_spill] sm:$0xff] %v4421_v56  ;;  %v4424_v63 = vsub.f32 %v3738_v18, %v800_v62  ;;  %v4436_v41 = vsub.f32 %v3748_v20, %v802_v39  ;;  %v788_v62 = vunpack.c.h.bf16 %v4392_v61 }
 0x6f0   :  { %6979 = vst [vmem:[#allocation84_spill] sm:$0xff] %v4427_v57  ;;  %v4450_v53 = vpack.c.bf16 %v4430_v44, %v4427_v57  ;;  %v804_v18 = vunpack.c.h.bf16 %v4396_v59  ;;  %v4461_v20 = vsub.f32 %v3673_v5, %v787_v54  ;;  %v805_v54 = vunpack.c.l.bf16 %v4404_v43 }
 0x6f1   :  { %6975 = vst [vmem:[#allocation80_spill] sm:$0xff] %v4415_v52  ;;  %6978 = vst [vmem:[#allocation83_spill] sm:$0xff] %v4424_v63  ;;  %v4440_v55 = vpack.c.bf16 %v4418_v51, %v4415_v52  ;;  %v4444_v45 = vpack.c.bf16 %v4424_v63, %v4421_v56  ;;  %v4454_v39 = vpack.c.bf16 %v4436_v41, %v4433_v0  ;;  %v806_v5 = vunpack.c.h.bf16 %v4404_v43  ;;  %v7043_v0 = vld [vmem:[#allocation62_spill] sm:$0xff]  ;;  %v7047_v56 = vld [vmem:[#allocation49_spill] sm:$0xff] }
 0x6f2   :  { %6982 = vst [vmem:[#allocation87_spill] sm:$0xff] %v4436_v41  ;;  %6985 = vst [vmem:[#allocation90_spill] sm:$0xff] %v4450_v53  ;;  %v4464_v17 = vsub.f32 %v3678_v6, %v788_v62  ;;  %v4474_v1 = vsub.f32 %v3758_v22, %v804_v18  ;;  %v4485_v6 = vsub.f32 %v3683_v7, %v789_v2  ;;  %v7042_v41 = vld [vmem:[#allocation61_spill] sm:$0xff]  ;;  %v7053_v51 = vmov 0 }
 0x6f3   :  { %6983 = vst [vmem:[#allocation88_spill] sm:$0xff] %v4440_v55  ;;  %6984 = vst [vmem:[#allocation89_spill] sm:$0xff] %v4444_v45  ;;  %3015 = vmatprep.subr.bf16.mxu0 %v4440_v55  ;;  %3047 = vmatprep.subr.bf16.mxu1 %v4444_v45  ;;  %v4495_v22 = vsub.f32 %v3763_v23, %v805_v54  ;;  %v4498_v21 = vsub.f32 %v3768_v24, %v806_v5  ;;  %v791_v24 = vunpack.c.l.bf16 %v4502_v3 }
 0x6f4   :  { %6986 = vst [vmem:[#allocation91_spill] sm:$0xff] %v4454_v39  ;;  %6987 = vst [vmem:[#allocation92_spill] sm:$0xff] %v4461_v20  ;;  %3016 = vmatpush3.bf16.msra.mxu0 %v4440_v55  ;;  %3048 = vmatpush3.bf16.msra.mxu1 %v4444_v45  ;;  %v4482_v62 = vpack.c.bf16 %v4464_v17, %v4461_v20  ;;  %v4492_v18 = vpack.c.bf16 %v4474_v1, %v4471_v4  ;;  %v792_v23 = vunpack.c.h.bf16 %v4502_v3  ;;  %v6744_v55 = vmov 1.0|1.0  }
 0x6f5   :  { %6988 = vst [vmem:[#allocation93_spill] sm:$0xff] %v4464_v17  ;;  %6990 = vst [vmem:[#allocation95_spill] sm:$0xff] %v4474_v1  ;;  %3017 = vmatprep.subr.bf16.mxu0 %v4450_v53  ;;  %3049 = vmatprep.subr.bf16.mxu1 %v4454_v39  ;;  %v4506_v2 = vpack.c.bf16 %v3778_v26, %v3773_v25  ;;  %v4516_v5 = vpack.c.bf16 %v4488_v40, %v4485_v6  ;;  %v793_v1 = vunpack.c.l.bf16 %v4510_v19 }
 0x6f6   :  { %6991 = vst [vmem:[#allocation96_spill] sm:$0xff] %v4482_v62  ;;  %6992 = vst [vmem:[#allocation97_spill] sm:$0xff] %v4485_v6  ;;  %v4520_v54 = vpack.c.bf16 %v4498_v21, %v4495_v22  ;;  %v794_v40 = vunpack.c.h.bf16 %v4510_v19  ;;  %v4531_v6 = vsub.f32 %v3693_v9, %v791_v24  ;;  %v3606_v24 = vmov 1966171168  }
 0x6f7   :  { %6994 = vst [vmem:[#allocation99_spill] sm:$0xff] %v4492_v18  ;;  %6995 = vst [vmem:[#allocation100_spill] sm:$0xff] %v4495_v22  ;;  %v807_v8 = vunpack.c.l.bf16 %v4506_v2  ;;  %v808_v7 = vunpack.c.h.bf16 %v4506_v2  ;;  %v4545_v17 = vsub.f32 %v3703_v11, %v793_v1  ;;  %v7010_v9 = vmov 0  }
 0x6f8   :  { %6996 = vst [vmem:[#allocation101_spill] sm:$0xff] %v4498_v21  ;;  %3018 = vmatpush3.bf16.msra.mxu0 %v4450_v53  ;;  %3050 = vmatpush3.bf16.msra.mxu1 %v4454_v39  ;;  %6997 = vst [vmem:[#allocation102_spill] sm:$0xff] %v4516_v5  ;;  %v4534_v21 = vsub.f32 %v3698_v10, %v792_v23  ;;  %v4582_v11 = vsel %vm88_vm0, 1, %v7010_v9  ;;  %v4816_v44 = vpack.c.bf16 %v7043_v0, %v7042_v41  ;;  %v7048_v39 = vld [vmem:[#allocation50_spill] sm:$0xff] }
 0x6f9   :  { %6998 = vst [vmem:[#allocation103_spill] sm:$0xff] %v4520_v54  ;;  %3019 = vmatprep.subr.bf16.mxu0 %v4482_v62  ;;  %3051 = vmatprep.subr.bf16.mxu1 %v4492_v18  ;;  %6999 = vst [vmem:[#allocation104_spill] sm:$0xff] %v4531_v6  ;;  %v4537_v22 = vsub.f32 %v3773_v25, %v807_v8  ;;  %v4540_v4 = vsub.f32 %v3778_v26, %v808_v7  ;;  %v7008_v26 = vlaneseq }
 0x6fa   :  { %7000 = vst [vmem:[#allocation105_spill] sm:$0xff] %v4534_v21  ;;  %7003 = vst [vmem:[#allocation108_spill] sm:$0xff] %v4545_v17  ;;  %v4551_v23 = vpack.c.bf16 %v4534_v21, %v4531_v6  ;;  %v4558_v7 = vsub.f32 %v3708_v12, %v794_v40  ;;  %v311_v40 = vunpack.c.l.s4 %v3606_v24  ;;  %v4577_v12 = vpack.c.bf16 %v3788_v28, %v3783_v27 }
 0x6fb   :  { %7001 = vst [vmem:[#allocation106_spill] sm:$0xff] %v4537_v22  ;;  %7002 = vst [vmem:[#allocation107_spill] sm:$0xff] %v4540_v4  ;;  %v4555_v8 = vpack.c.bf16 %v4540_v4, %v4537_v22  ;;  %v4573_v25 = vshrl.u32 %v7008_v26, 7  ;;  %v4588_v24 = vpack.c.bf16 %v3718_v14, %v3713_v13  ;;  %v4607_v21 = vpack.c.bf16 %v3798_v30, %v3793_v29 }
 0x6fc   :  { %3020 = vmatpush3.bf16.msra.mxu0 %v4482_v62  ;;  %3052 = vmatpush3.bf16.msra.mxu1 %v4492_v18  ;;  %7004 = vst [vmem:[#allocation109_spill] sm:$0xff] %v4551_v23  ;;  %7006 = vst [vmem:[#allocation111_spill] sm:$0xff] %v4558_v7  ;;  %v4566_v1 = vpack.c.bf16 %v4558_v7, %v4545_v17  ;;  %v312_v10 = vunpack.c.0.s8 %v311_v40  ;;  %v809_v7 = vunpack.c.l.bf16 %v4577_v12  ;;  %v810_v17 = vunpack.c.h.bf16 %v4577_v12 }
 0x6fd   :  { %3021 = vmatprep.subr.bf16.mxu0 %v4516_v5  ;;  %3053 = vmatprep.subr.bf16.mxu1 %v4520_v54  ;;  %7005 = vst [vmem:[#allocation110_spill] sm:$0xff] %v4555_v8  ;;  %7009 = vst [vmem:[#allocation113_spill] sm:$0xff] %v4577_v12  ;;  %v795_v60 = vunpack.c.l.bf16 %v4588_v24  ;;  %v796_v22 = vunpack.c.h.bf16 %v4588_v24  ;;  %v812_v6 = vunpack.c.h.bf16 %v4607_v21  ;;  %v282_v58 = vadd.s32 40, %v4573_v25 }
 0x6fe   :  { %7007 = vst [vmem:[#allocation112_spill] sm:$0xff] %v4566_v1  ;;  %v4591_v26 = vsub.s32 %v312_v10, %v4573_v25  ;;  %v4594_v40 = vsub.f32 %v3783_v27, %v809_v7  ;;  %v4597_v4 = vsub.f32 %v3788_v28, %v810_v17  ;;  %7015 = vst [vmem:[#allocation118_spill] sm:$0xff] %v4607_v21  ;;  %v811_v27 = vunpack.c.l.bf16 %v4607_v21 }
 0x6ff   :  { %v4614_v7 = vsub.f32 %v3713_v13, %v795_v60  ;;  %v4617_v17 = vsub.f32 %v3718_v14, %v796_v22  ;;  %v4621_v28 = vpack.c.bf16 %v3728_v16, %v3723_v15  ;;  %v4634_v22 = vpack.c.bf16 %v3808_v32, %v3803_v31 }
 0x700   :  { %3022 = vmatpush3.bf16.msra.mxu0 %v4516_v5  ;;  %3054 = vmatpush3.bf16.msra.mxu1 %v4520_v54  ;;  %7011 = vst [vmem:[#allocation114_spill] sm:$0xff] %v4591_v26  ;;  %7012 = vst [vmem:[#allocation115_spill] sm:$0xff] %v4594_v40  ;;  %v4611_v10 = vpack.c.bf16 %v4597_v4, %v4594_v40  ;;  %v4640_v40 = vsub.f32 %v3793_v29, %v811_v27  ;;  %v833_v52 = vunpack.c.l.bf16 %v4816_v44 }
 0x701   :  { %3023 = vmatprep.subr.bf16.mxu0 %v4551_v23  ;;  %3055 = vmatprep.subr.bf16.mxu1 %v4555_v8  ;;  %7013 = vst [vmem:[#allocation116_spill] sm:$0xff] %v4597_v4  ;;  %7017 = vst [vmem:[#allocation120_spill] sm:$0xff] %v4614_v7  ;;  %v4628_v4 = vpack.c.bf16 %v4617_v17, %v4614_v7  ;;  %v797_v60 = vunpack.c.l.bf16 %v4621_v28  ;;  %v798_v13 = vunpack.c.h.bf16 %v4621_v28  ;;  %v814_v54 = vunpack.c.h.bf16 %v4634_v22 }
 0x702   :  { %7016 = vst [vmem:[#allocation119_spill] sm:$0xff] %v4611_v10  ;;  %7018 = vst [vmem:[#allocation121_spill] sm:$0xff] %v4617_v17  ;;  %v4672_v29 = vpack.c.bf16 %v3818_v34, %v3813_v33  ;;  %v4834_v53 = vpack.c.bf16 %v7048_v39, %v7047_v56  ;;  %v834_v45 = vunpack.c.h.bf16 %v4816_v44 }
 0x703   :  { %7019 = vst [vmem:[#allocation122_spill] sm:$0xff] %v4621_v28  ;;  %7020 = vst [vmem:[#allocation123_spill] sm:$0xff] %v4628_v4  ;;  %v4647_v17 = vsub.f32 %v3723_v15, %v797_v60  ;;  %v4650_v7 = vsub.f32 %v3728_v16, %v798_v13  ;;  %v4667_v13 = vsub.f32 %v3808_v32, %v814_v54  ;;  %v4687_v15 = vsub.s32 0, %v4573_v25 }
 0x704   :  { %3024 = vmatpush3.bf16.msra.mxu0 %v4551_v23  ;;  %3056 = vmatpush3.bf16.msra.mxu1 %v4555_v8  ;;  %7021 = vst [vmem:[#allocation124_spill] sm:$0xff] %v4634_v22  ;;  %7022 = vst [vmem:[#allocation125_spill] sm:$0xff] %v4640_v40  ;;  %v4643_v8 = vsub.f32 %v3798_v30, %v812_v6  ;;  %v813_v23 = vunpack.c.l.bf16 %v4634_v22  ;;  %v815_v54 = vunpack.c.l.bf16 %v4672_v29 }
 0x705   :  { %3025 = vmatprep.subr.bf16.mxu0 %v4566_v1  ;;  %3057 = vmatprep.subr.bf16.mxu1 %v4611_v10  ;;  %7024 = vst [vmem:[#allocation127_spill] sm:$0xff] %v4647_v17  ;;  %7025 = vst [vmem:[#allocation128_spill] sm:$0xff] %v4650_v7  ;;  %v4661_v6 = vpack.c.bf16 %v4650_v7, %v4647_v17 }
 0x706   :  { %7023 = vst [vmem:[#allocation126_spill] sm:$0xff] %v4643_v8  ;;  %v4657_v27 = vpack.c.bf16 %v4643_v8, %v4640_v40  ;;  %v4664_v60 = vsub.f32 %v3803_v31, %v813_v23  ;;  %7029 = vst [vmem:[#allocation132_spill] sm:$0xff] %v4667_v13 }
 0x707   :  { %7027 = vst [vmem:[#allocation130_spill] sm:$0xff] %v4661_v6  ;;  %7030 = vst [vmem:[#allocation133_spill] sm:$0xff] %v4672_v29 }
 0x708   :  { %3026 = vmatpush3.bf16.msra.mxu0 %v4566_v1  ;;  %v4603_v1 = vrot.slane %v4582_v11, %v4591_v26  ;;  %3058 = vmatpush3.bf16.msra.mxu1 %v4611_v10  ;;  %7026 = vst [vmem:[#allocation129_spill] sm:$0xff] %v4657_v27  ;;  %7028 = vst [vmem:[#allocation131_spill] sm:$0xff] %v4664_v60  ;;  %v4678_v16 = vpack.c.bf16 %v4667_v13, %v4664_v60 }
 0x709   :  { %3027 = vmatprep.subr.bf16.mxu0 %v4628_v4  ;;  %3059 = vmatprep.subr.bf16.mxu1 %v4657_v27  ;;  %v4690_v13 = vsub.f32 %v3813_v33, %v815_v54  ;;  %v3548_v33 = vpop.eup %3547  ;;  %7049 = vst [vmem:[#allocation146_spill] sm:$0xff] %v4834_v53 }
 0x70a   :  { %7014 = vst [vmem:[#allocation117_spill] sm:$0xff] %v4603_v1  ;;  %v2346_v14 = vrot.slane %v4603_v1, %v4591_v26  ;;  %7031 = vst [vmem:[#allocation134_spill] sm:$0xff] %v4678_v16  ;;  %v4756_v40 = vmul.f32 0.6931472, %v3548_v33  ;;  %v7068_v1 = vld [vmem:[#allocation66_spill] sm:$0xff] }
 0x70b   :  { %7032 = vst [vmem:[#allocation135_spill] sm:$0xff] %v4690_v13 }
 0x70c   :  { %3028 = vmatpush3.bf16.msra.mxu0 %v4628_v4  ;;  %vm2356_vm10 = vcmp.ne.s32.totalorder %v2346_v14, 0  ;;  %v2354_v30 = vcombine.high %v2346_v14, %v2346_v14  ;;  %3060 = vmatpush3.bf16.msra.mxu1 %v4657_v27  ;;  %v816_v14 = vunpack.c.h.bf16 %v4672_v29 }
 0x70d   :  { %3029 = vmatprep.subr.bf16.mxu0 %v4661_v6  ;;  %v2360_v31 = vsel %vm2356_vm10, 1, %v7010_v9  ;;  %3061 = vmatprep.subr.bf16.mxu1 %v4678_v16 }
 0x70e   :  { %vm2358_vm11 = vcmp.ne.s32.totalorder %v2354_v30, 0  ;;  %v4693_v60 = vsub.f32 %v3818_v34, %v816_v14  ;;  %v4707_v30 = vpack.c.bf16 %v3898_v50, %v3893_v49 }
 0x70f   :  { %v2362_v54 = vsel %vm2358_vm11, 1, %v7010_v9  ;;  %v7059_v9 = vld [vmem:[#allocation52_spill] sm:$0xff] }
 0x710   :  { %3030 = vmatpush3.bf16.msra.mxu0 %v4661_v6  ;;  %7033 = vst [vmem:[#allocation136_spill] sm:$0xff] %v4693_v60  ;;  %3062 = vmatpush3.bf16.msra.mxu1 %v4678_v16  ;;  %v4703_v17 = vpack.c.bf16 %v4693_v60, %v4690_v13  ;;  %7035 = vst [vmem:[#allocation138_spill] sm:$0xff] %v4707_v30  ;;  %v286_v60 = vadd.s32 72, %v4573_v25 }
 0x712   :  { %7034 = vst [vmem:[#allocation137_spill] sm:$0xff] %v4703_v17  ;;  %3079 = vmatprep.subr.bf16.mxu0 %v4703_v17 }
 0x760   :  { %v263_v23 = vpop.permute.xlu0 %262 }
 0x761   :  { %v264_v32 = vmax.f32 %v4370_v48, %v263_v23  ;;  %v2367_v23 = vrot.slane %v2360_v31, %v4687_v15 }
 0x763   :  { %v265_v7 = vsel %vm224_vm9, %v264_v32, %v4370_v48  ;;  %v831_v32 = vunpack.c.l.bf16 %v4707_v30  ;;  %v832_v48 = vunpack.c.h.bf16 %v4707_v30  ;;  %v7071_v30 = vmov 0 }
 0x764   :  { %267 = vrot.lane.b32.xlu0 %v265_v7, %s3597_s25  ;;  %v2375_v7 = vrot.slane %v2362_v54, %v4687_v15 }
 0x765   :  { %v4715_v31 = vsub.f32 %v3893_v49, %v831_v32  ;;  %v4718_v14 = vsub.f32 %v3898_v50, %v832_v48  ;;  %v278_v32 = vadd.s32 8, %v4573_v25  ;;  %v279_v48 = vadd.s32 16, %v4573_v25 }
 0x766   :  { %v280_v50 = vadd.s32 24, %v4573_v25 }
 0x767   :  { %7036 = vst [vmem:[#allocation139_spill] sm:$0xff] %v4715_v31  ;;  %7037 = vst [vmem:[#allocation140_spill] sm:$0xff] %v4718_v14  ;;  %v4722_v34 = vpack.c.bf16 %v4718_v14, %v4715_v31  ;;  %v284_v14 = vadd.s32 56, %v4573_v25  ;;  %v285_v31 = vadd.s32 64, %v4573_v25  ;;  %v4750_v8 = vcvt.s32.f32 %v278_v32 }
 0x768   :  { %2381 = vperm.xlu0 %3541, %v2367_v23   ;;  %v275_v23 = vsel %vm272_vm12, 128.0, %v4347_v47  ;;  %v283_v47 = vadd.s32 48, %v4573_v25  ;;  %v4752_v46 = vcvt.s32.f32 %v279_v48  ;;  %v4754_v16 = vcvt.s32.f32 %v280_v50 }
 0x769   :  { %7038 = vst [vmem:[#allocation141_spill] sm:$0xff] %v4722_v34  ;;  %3111 = vmatprep.subr.bf16.mxu1 %v4722_v34  ;;  %v425_v54 = vrot.slane %v275_v23, %v4591_v26  ;;  %v4742_v23 = vpack.c.bf16 %v3828_v36, %v3823_v35  ;;  %v4768_v32 = vcvt.s32.f32 %v282_v58  ;;  %v4773_v33 = vcvt.s32.f32 %v284_v14  ;;  %v7041_v14 = vld [vmem:[#allocation75_spill] sm:$0xff] }
 0x76a   :  { %v4770_v48 = vcvt.s32.f32 %v283_v47  ;;  %v4775_v20 = vcvt.s32.f32 %v285_v31  ;;  %v4797_v47 = vadd.s32 88, %v4573_v25  ;;  %7044 = vst [vmem:[#allocation75_spill] sm:$0xff] %v4816_v44 }
 0x76b   :  { %v426_v49 = vcombine.high %v425_v54, %v425_v54  ;;  %7039 = vst [vmem:[#allocation142_spill] sm:$0xff] %v4742_v23  ;;  %v817_v50 = vunpack.c.l.bf16 %v4742_v23  ;;  %v818_v18 = vunpack.c.h.bf16 %v4742_v23  ;;  %v7058_v23 = vld [vmem:[#allocation51_spill] sm:$0xff] }
 0x76c   :  { %2387 = vperm.xlu0 %3541, %v2375_v7   ;;  %v281_v7 = vadd.s32 32, %v4573_v25 }
 0x76d   :  { %v4759_v6 = vrot.slane %v426_v49, %v4591_v26  ;;  %v4777_v49 = vcvt.s32.f32 %v286_v60  ;;  %v4794_v60 = vadd.s32 80, %v4573_v25  ;;  %v4821_v57 = vsub.f32 %v3823_v35, %v817_v50  ;;  %v7051_v50 = vld [vmem:[#allocation64_spill] sm:$0xff] }
 0x76e   :  { %v4761_v4 = vcvt.s32.f32 %v281_v7  ;;  %v4824_v62 = vsub.f32 %v3828_v36, %v818_v18  ;;  %v7050_v18 = vld [vmem:[#allocation63_spill] sm:$0xff] }
 0x76f   :  { %v4789_v58 = vrot.slane %v4759_v6, %v4687_v15  ;;  %7045 = vst [vmem:[#allocation144_spill] sm:$0xff] %v4821_v57  ;;  %v4844_v36 = vpack.c.bf16 %v7051_v50, %v7050_v18 }
 0x770   :  { %2526 = vperm.xlu0 %3541, %v4582_v11   ;;  %v4735_v11 = vrot.slane %v425_v54, %v4591_v26  ;;  %v4748_v54 = vcvt.s32.f32 %v4573_v25  ;;  %7046 = vst [vmem:[#allocation145_spill] sm:$0xff] %v4824_v62 }
 0x771   :  { %7052 = vst [vmem:[#allocation147_spill] sm:$0xff] %v4844_v36 }
 0x772   :  { %v4765_v10 = vrot.slane %v4735_v11, %v4687_v15  ;;  %vm479_vm11 = vcmp.ge.f32.partialorder %v4789_v58, %v4748_v54 }
 0x774   :  { %vm463_vm14 = vcmp.ge.f32.partialorder %v4765_v10, %v4748_v54  ;;  %vm464_vm15 = vcmp.ge.f32.partialorder %v4765_v10, %v4750_v8  ;;  %vm465_vm0 = vcmp.ge.f32.partialorder %v4765_v10, %v4752_v46  ;;  %vm466_vm1 = vcmp.ge.f32.partialorder %v4765_v10, %v4754_v16 }
 0x775   :  { %vm467_vm8 = vcmp.ge.f32.partialorder %v4765_v10, %v4761_v4  ;;  %vm468_vm9 = vcmp.ge.f32.partialorder %v4765_v10, %v4768_v32 }
 0x7d6   :  { %v268_v13 = vpop.permute.xlu0 %267 }
 0x7d7   :  { %v271_v27 = vsel %vm266_vm13, -1.0, %v268_v13 }
 0x7d8   :  { %v316_v5 = vrot.slane %v271_v27, %v4591_v26  ;;  %v4785_v27 = vpack.c.bf16 %v3838_v38, %v3833_v37 }
 0x7da   :  { %v317_v13 = vcombine.high %v316_v5, %v316_v5  ;;  %v4780_v7 = vrot.slane %v316_v5, %v4591_v26  ;;  %7040 = vst [vmem:[#allocation143_spill] sm:$0xff] %v4785_v27  ;;  %v819_v63 = vunpack.c.l.bf16 %v4785_v27 }
 0x7dc   :  { %v4801_v5 = vrot.slane %v4780_v7, %v4687_v15  ;;  %v4810_v31 = vrot.slane %v317_v13, %v4591_v26  ;;  %v820_v13 = vunpack.c.h.bf16 %v4785_v27  ;;  %v4871_v27 = vpack.c.bf16 %v4824_v62, %v4821_v57 }
 0x7dd   :  { %v4874_v44 = vsub.f32 %v3833_v37, %v819_v63  ;;  %v821_v63 = vunpack.c.l.bf16 %v4834_v53  ;;  %v822_v37 = vunpack.c.h.bf16 %v4834_v53  ;;  %v7062_v57 = vmov 0 }
 0x7de   :  { %vm354_vm2 = vcmp.lt.f32.partialorder %v4801_v5, %v4748_v54  ;;  %vm355_vm3 = vcmp.lt.f32.partialorder %v4801_v5, %v4750_v8  ;;  %vm356_vm5 = vcmp.lt.f32.partialorder %v4801_v5, %v4752_v46  ;;  %vm357_vm7 = vcmp.lt.f32.partialorder %v4801_v5, %v4754_v16  ;;  %7056 = vst [vmem:[#allocation149_spill] sm:$0xff] %v4871_v27 }
 0x7df   :  { %vm527_vm4 = vmand %vm354_vm2, %vm463_vm14  ;;  %v4848_v35 = vrot.slane %v4810_v31, %v4687_v15  ;;  %vm358_vm13 = vcmp.lt.f32.partialorder %v4801_v5, %v4761_v4  ;;  %7057 = vst [vmem:[#allocation150_spill] sm:$0xff] %v4874_v44  ;;  %v4889_v62 = vsub.f32 %v3838_v38, %v820_v13  ;;  %vm480_vm2 = vcmp.ge.f32.partialorder %v4789_v58, %v4750_v8 }
 0x7e0   :  { %vm528_vm6 = vmand %vm355_vm3, %vm464_vm15  ;;  %vm359_vm15 = vcmp.lt.f32.partialorder %v4801_v5, %v4768_v32  ;;  %vm482_vm3 = vcmp.ge.f32.partialorder %v4789_v58, %v4754_v16  ;;  %v835_v13 = vunpack.c.l.bf16 %v4844_v36  ;;  %v7065_v38 = vmov 1.0|1.0  }
 0x7e1   :  { %vm4850_vm10 = vmpackc.low %vm528_vm6, %vm527_vm4  ;;  %7061 = vst [vmem:[#allocation152_spill] sm:$0xff] %v4889_v62  ;;  %vm483_vm6 = vcmp.ge.f32.partialorder %v4789_v58, %v4761_v4  ;;  %v4918_v53 = vsub.f32 %v7042_v41, %v833_v52  ;;  %v836_v26 = vunpack.c.h.bf16 %v4844_v36  ;;  %v4937_v52 = vsub.f32 %v7043_v0, %v834_v45  ;;  %v7078_v0 = vld [vmem:[#allocation67_spill] sm:$0xff] }
 0x7e2   :  { %v7054_v51 = vsel %vm4850_vm10, 4294967295, %v7053_v51  ;;  %3031 = vmatprep.mubr.msk.bf16.mxu0 %vm4850_vm10, %v6744_v55  ;;  %vm529_vm12 = vmand %vm356_vm5, %vm465_vm0  ;;  %v4878_v55 = vpack.c.bf16 %v7059_v9, %v7058_v23  ;;  %vm370_vm5 = vcmp.lt.f32.partialorder %v4848_v35, %v4748_v54  ;;  %v4953_v29 = vsub.f32 %v7047_v56, %v821_v63  ;;  %v7082_v63 = vld [vmem:[#allocation53_spill] sm:$0xff] }
 0x7e3   :  { %7055 = vst [vmem:[#allocation148_spill] sm:$0xff] %v7054_v51  ;;  %vm530_vm14 = vmand %vm357_vm7, %vm466_vm1  ;;  %vm481_vm1 = vcmp.ge.f32.partialorder %v4789_v58, %v4752_v46  ;;  %v4956_v45 = vsub.f32 %v7048_v39, %v822_v37  ;;  %v4976_v37 = vsub.f32 %v7050_v18, %v835_v13  ;;  %v7083_v39 = vld [vmem:[#allocation54_spill] sm:$0xff] }
 0x7e4   :  { %7060 = vst [vmem:[#allocation151_spill] sm:$0xff] %v4878_v55  ;;  %vm4893_vm0 = vmpackc.low %vm530_vm14, %vm529_vm12  ;;  %vm484_vm12 = vcmp.ge.f32.partialorder %v4789_v58, %v4768_v32  ;;  %v823_v41 = vunpack.c.l.bf16 %v4878_v55  ;;  %v824_v36 = vunpack.c.h.bf16 %v4878_v55  ;;  %v7079_v55 = vld [vmem:[#allocation68_spill] sm:$0xff]  ;;  %vm372_vm14 = vcmp.lt.f32.partialorder %v4848_v35, %v4752_v46 }
 0x7e5   :  { %v7063_v57 = vsel %vm4893_vm0, 4294967295, %v7062_v57  ;;  %3032 = vmatmul.mubr.msk.bf16.vlgmr.msra.gmra.mrb[0].mxu0 %vm4893_vm0, %v7065_v38  ;;  %vm531_vm4 = vmand %vm358_vm13, %vm467_vm8  ;;  %7066 = vst [vmem:[#allocation154_spill] sm:$0xff] %v4918_v53  ;;  %vm371_vm8 = vcmp.lt.f32.partialorder %v4848_v35, %v4750_v8  ;;  %v4960_v21 = vpack.c.bf16 %v7079_v55, %v7078_v0  ;;  %v4980_v56 = vpack.c.bf16 %v7083_v39, %v7082_v63 }
 0x7e6   :  { %7064 = vst [vmem:[#allocation153_spill] sm:$0xff] %v7063_v57  ;;  %v7067_v57 = vld [vmem:[#allocation65_spill] sm:$0xff]  ;;  %vm532_vm7 = vmand %vm359_vm15, %vm468_vm9  ;;  %3080 = vmatpush3.bf16.msra.mxu0 %v4703_v17  ;;  %v4950_v17 = vpack.c.bf16 %v4889_v62, %v4874_v44  ;;  %vm469_vm15 = vcmp.ge.f32.partialorder %v4765_v10, %v4770_v48  ;;  %v7086_v62 = vmov 0  ;;  %v5003_v44 = vsub.f32 %v7058_v23, %v823_v41 }
 0x7e7   :  { %v4923_v51 = vpack.c.bf16 %v7068_v1, %v7067_v57  ;;  %7070 = vst [vmem:[#allocation156_spill] sm:$0xff] %v4937_v52  ;;  %vm4941_vm13 = vmpackc.low %vm532_vm7, %vm531_vm4  ;;  %3081 = vmatprep.subr.bf16.mxu0 %v4871_v27  ;;  %v4946_v22 = vpop.permute.xlu0 %2381  ;;  %vm373_vm4 = vcmp.lt.f32.partialorder %v4848_v35, %v4754_v16  ;;  %vm470_vm7 = vcmp.ge.f32.partialorder %v4765_v10, %v4773_v33  ;;  %v839_v23 = vunpack.c.l.bf16 %v4960_v21 }
 0x7e8   :  { %v7072_v30 = vsel %vm4941_vm13, 4294967295, %v7071_v30  ;;  %7074 = vst [vmem:[#allocation158_spill] sm:$0xff] %v4946_v22  ;;  %7075 = vst [vmem:[#allocation159_spill] sm:$0xff] %v4950_v17  ;;  %3035 = vmatprep.mubr.msk.bf16.mxu0 %vm4941_vm13, %v7065_v38  ;;  %v4991_v22 = vsub.f32 %v7051_v50, %v836_v26  ;;  %v7091_v26 = vld [vmem:[#allocation55_spill] sm:$0xff]  ;;  %v7092_v50 = vld [vmem:[#allocation56_spill] sm:$0xff] }
 0x7e9   :  { %7069 = vst [vmem:[#allocation155_spill] sm:$0xff] %v4923_v51  ;;  %7073 = vst [vmem:[#allocation157_spill] sm:$0xff] %v7072_v30  ;;  %v837_v13 = vunpack.c.l.bf16 %v4923_v51  ;;  %v838_v18 = vunpack.c.h.bf16 %v4923_v51  ;;  %v5006_v30 = vsub.f32 %v7059_v9, %v824_v36  ;;  %v5010_v28 = vpack.c.bf16 %v7092_v50, %v7091_v26 }
 0x7ea   :  { %7076 = vst [vmem:[#allocation160_spill] sm:$0xff] %v4953_v29  ;;  %7077 = vst [vmem:[#allocation161_spill] sm:$0xff] %v4956_v45  ;;  %3082 = vmatpush3.bf16.msra.mxu0 %v4871_v27  ;;  %v5025_v36 = vpack.c.bf16 %v4937_v52, %v4918_v53  ;;  %v5032_v9 = vpack.c.bf16 %v4956_v45, %v4953_v29  ;;  %v840_v52 = vunpack.c.h.bf16 %v4960_v21  ;;  %v826_v53 = vunpack.c.h.bf16 %v4980_v56 }
 0x7eb   :  { %7080 = vst [vmem:[#allocation162_spill] sm:$0xff] %v4960_v21  ;;  %vm543_vm9 = vmand %vm370_vm5, %vm479_vm11  ;;  %3083 = vmatprep.subr.bf16.mxu0 %v4950_v17  ;;  %v5028_v41 = vpop.permute.xlu0 %2387  ;;  %v5052_v29 = vpack.c.bf16 %v4991_v22, %v4976_v37  ;;  %v5055_v27 = vsub.f32 %v7067_v57, %v837_v13  ;;  %v5058_v51 = vsub.f32 %v7068_v1, %v838_v18  ;;  %v7100_v21 = vld [vmem:[#allocation70_spill] sm:$0xff]  ;;  %v827_v13 = vunpack.c.l.bf16 %v5010_v28 }
 0x7ec   :  { %7081 = vst [vmem:[#allocation163_spill] sm:$0xff] %v4976_v37  ;;  %7084 = vst [vmem:[#allocation164_spill] sm:$0xff] %v4980_v56  ;;  %v5078_v18 = vpack.c.bf16 %v5006_v30, %v5003_v44  ;;  %v828_v1 = vunpack.c.h.bf16 %v5010_v28  ;;  %v7103_v37 = vld [vmem:[#allocation58_spill] sm:$0xff] }
 0x7ed   :  { %vm544_vm11 = vmand %vm371_vm8, %vm480_vm2  ;;  %7085 = vst [vmem:[#allocation165_spill] sm:$0xff] %v4991_v22  ;;  %vm374_vm8 = vcmp.lt.f32.partialorder %v4848_v35, %v4761_v4  ;;  %v7102_v22 = vld [vmem:[#allocation57_spill] sm:$0xff] }
 0x7ee   :  { %vm4995_vm5 = vmpackc.low %vm544_vm11, %vm543_vm9  ;;  %7089 = vst [vmem:[#allocation167_spill] sm:$0xff] %v5003_v44  ;;  %vm375_vm9 = vcmp.lt.f32.partialorder %v4848_v35, %v4768_v32  ;;  %vm360_vm11 = vcmp.lt.f32.partialorder %v4801_v5, %v4770_v48  ;;  %3084 = vmatpush3.bf16.msra.mxu0 %v4950_v17  ;;  %v5096_v44 = vsub.f32 %v7078_v0, %v839_v23 }
 0x7ef   :  { %v7087_v62 = vsel %vm4995_vm5, 4294967295, %v7086_v62  ;;  %7090 = vst [vmem:[#allocation168_spill] sm:$0xff] %v5006_v30  ;;  %7093 = vst [vmem:[#allocation169_spill] sm:$0xff] %v5010_v28  ;;  %3063 = vmatprep.mubr.msk.bf16.mxu1 %vm4995_vm5, %v7065_v38  ;;  %3085 = vmatprep.subr.bf16.mxu0 %v5032_v9  ;;  %v2527_v57 = vpop.permute.xlu0 %2526  ;;  %v5093_v30 = vadd.s32 96, %v4573_v25  ;;  %v5100_v17 = vpack.c.bf16 %v7103_v37, %v7102_v22 }
 0x7f0   :  { %7088 = vst [vmem:[#allocation166_spill] sm:$0xff] %v7087_v62  ;;  %vm545_vm2 = vmand %vm372_vm14, %vm481_vm1  ;;  %v7099_v62 = vld [vmem:[#allocation69_spill] sm:$0xff]  ;;  %v5108_v28 = vsub.f32 %v7079_v55, %v840_v52  ;;  %v5114_v23 = vsub.f32 %v7083_v39, %v826_v53  ;;  %v7110_v53 = vsub.f32 %v7041_v14, %v4756_v40  ;;  %v5143_v0 = vsub.f32 %v7091_v26, %v827_v13  ;;  %v7113_v14 = vld [vmem:[#allocation71_spill] sm:$0xff] }
 0x7f1   :  { %7094 = vst [vmem:[#allocation170_spill] sm:$0xff] %v5028_v41  ;;  %vm546_vm1 = vmand %vm373_vm4, %vm482_vm3  ;;  %v825_v41 = vunpack.c.l.bf16 %v4980_v56  ;;  %v5062_v12 = vpack.c.bf16 %v7100_v21, %v7099_v62  ;;  %vm361_vm4 = vcmp.lt.f32.partialorder %v4801_v5, %v4773_v33  ;;  %v5146_v40 = vsub.f32 %v7092_v50, %v828_v1 }
 0x7f2   :  { %vm5046_vm14 = vmpackc.low %vm546_vm1, %vm545_vm2  ;;  %7097 = vst [vmem:[#allocation171_spill] sm:$0xff] %v5055_v27  ;;  %vm362_vm1 = vcmp.lt.f32.partialorder %v4801_v5, %v4775_v20  ;;  %3086 = vmatpush3.bf16.msra.mxu0 %v5032_v9  ;;  %v7115_v39 = vmov 0  ;;  %v829_v1 = vunpack.c.l.bf16 %v5100_v17  ;;  %v830_v13 = vunpack.c.h.bf16 %v5100_v17 }
 0x7f3   :  { %7098 = vst [vmem:[#allocation172_spill] sm:$0xff] %v5058_v51  ;;  %3064 = vmatmul.mubr.msk.bf16.vlgmr.msra.gmra.mrb[0].mxu1 %vm5046_vm14, %v7065_v38  ;;  %vm547_vm3 = vmand %vm374_vm8, %vm483_vm6  ;;  %v5111_v56 = vsub.f32 %v7082_v63, %v825_v41  ;;  %v841_v55 = vunpack.c.l.bf16 %v5062_v12  ;;  %3087 = vmatprep.subr.bf16.mxu0 %v5078_v18  ;;  %v842_v50 = vunpack.c.h.bf16 %v5062_v12  ;;  %v290_v26 = vadd.s32 104, %v4573_v25 }
 0x7f4   :  { %3112 = vmatpush3.bf16.msra.mxu1 %v4722_v34  ;;  %vm548_vm6 = vmand %vm375_vm9, %vm484_vm12  ;;  %7101 = vst [vmem:[#allocation173_spill] sm:$0xff] %v5096_v44  ;;  %v7104_v34 = vmov 0  ;;  %vm2528_vm12 = vcmp.eq.s32.totalorder %v2527_v57, 1  ;;  %v7109_v57 = vld [vmem:[#allocation10_spill] sm:$0xff]  ;;  %v7117_v63 = vmov 0 }
 0x7f5   :  { %vm5102_vm2 = vmpackc.low %vm548_vm6, %vm547_vm3  ;;  %3113 = vmatprep.subr.bf16.mxu1 %v5025_v36  ;;  %7106 = vst [vmem:[#allocation174_spill] sm:$0xff] %v5108_v28  ;;  %v2529_v52 = vsel %vm2528_vm12, -4.8520303, %v7109_v57  ;;  %v2531_v41 = vsel %vm2528_vm12, %v7110_v53, %v7109_v57  ;;  %v7114_v57 = vld [vmem:[#allocation72_spill] sm:$0xff]  ;;  %vm471_vm3 = vcmp.ge.f32.partialorder %v4765_v10, %v4775_v20 }
 0x7f6   :  { %v7105_v34 = vsel %vm5102_vm2, 4294967295, %v7104_v34  ;;  %7107 = vst [vmem:[#allocation175_spill] sm:$0xff] %v5111_v56  ;;  %7108 = vst [vmem:[#allocation176_spill] sm:$0xff] %v5114_v23  ;;  %3067 = vmatprep.mubr.msk.bf16.mxu1 %vm5102_vm2, %v7065_v38  ;;  %v5150_v53 = vpack.c.bf16 %v7114_v57, %v7113_v14  ;;  %3088 = vmatpush3.bf16.msra.mxu0 %v5078_v18 }
 0x7f7   :  { %vm533_vm8 = vmand %vm360_vm11, %vm469_vm15  ;;  %vm363_vm15 = vcmp.lt.f32.partialorder %v4801_v5, %v4777_v49  ;;  %2530 = vst [vmem:[#allocation4] sm:$0xf] %v2529_v52  ;;  %vm472_vm11 = vcmp.ge.f32.partialorder %v4765_v10, %v4777_v49  ;;  %v5175_v52 = vpack.c.bf16 %v5058_v51, %v5055_v27  ;;  %v5206_v51 = vpack.c.bf16 %v5146_v40, %v5143_v0 }
 0x7f8   :  { %vm534_vm9 = vmand %vm361_vm4, %vm470_vm7  ;;  %2532 = vst [vmem:[#allocation6] sm:$0xf] %v2531_v41  ;;  %3114 = vmatpush3.bf16.msra.mxu1 %v5025_v36  ;;  %vm376_vm4 = vcmp.lt.f32.partialorder %v4848_v35, %v4770_v48  ;;  %v5179_v41 = vpack.c.bf16 %v5114_v23, %v5111_v56  ;;  %v5199_v23 = vpack.c.bf16 %v5108_v28, %v5096_v44  ;;  %v843_v27 = vunpack.c.l.bf16 %v5150_v53 }
 0x7f9   :  { %7111 = vst [vmem:[#allocation177_spill] sm:$0xff] %v5143_v0  ;;  %7112 = vst [vmem:[#allocation178_spill] sm:$0xff] %v5146_v40  ;;  %3115 = vmatprep.subr.bf16.mxu1 %v5052_v29  ;;  %v5202_v56 = vsub.f32 %v7099_v62, %v841_v55  ;;  %v844_v55 = vunpack.c.h.bf16 %v5150_v53  ;;  %v5220_v62 = vsub.f32 %v7102_v22, %v829_v1  ;;  %v5235_v0 = vcvt.s32.f32 %v4794_v60 }
 0x7fa   :  { %vm5153_vm7 = vmpackc.low %vm534_vm9, %vm533_vm8  ;;  %vm377_vm8 = vcmp.lt.f32.partialorder %v4848_v35, %v4773_v33  ;;  %vm486_vm9 = vcmp.ge.f32.partialorder %v4789_v58, %v4773_v33  ;;  %7120 = vst [vmem:[#allocation180_spill] sm:$0xff] %v5206_v51  ;;  %v5223_v40 = vsub.f32 %v7103_v37, %v830_v13  ;;  %3089 = vmatprep.subr.bf16.mxu0 %v5179_v41  ;;  %v7124_v13 = vld [vmem:[#allocation73_spill] sm:$0xff]  ;;  %v7125_v37 = vld [vmem:[#allocation74_spill] sm:$0xff]  ;;  %v7126_v28 = vmov 0 }
 0x7fb   :  { %v7116_v39 = vsel %vm5153_vm7, 4294967295, %v7115_v39  ;;  %3036 = vmatmul.mubr.msk.bf16.gmra.mrb[4].mxu0 %vm5153_vm7, %v7065_v38  ;;  %vm535_vm6 = vmand %vm362_vm1, %vm471_vm3  ;;  %vm485_vm1 = vcmp.ge.f32.partialorder %v4789_v58, %v4770_v48  ;;  %7119 = vst [vmem:[#allocation179_spill] sm:$0xff] %v5202_v56  ;;  %v5239_v1 = vsub.f32 %v7100_v21, %v842_v50  ;;  %v5243_v22 = vpack.c.bf16 %v7125_v37, %v7124_v13 }
 0x7fc   :  { %vm536_vm12 = vmand %vm363_vm15, %vm472_vm11  ;;  %3116 = vmatpush3.bf16.msra.mxu1 %v5052_v29  ;;  %vm378_vm11 = vcmp.lt.f32.partialorder %v4848_v35, %v4775_v20  ;;  %7121 = vst [vmem:[#allocation181_spill] sm:$0xff] %v5220_v62  ;;  %v5252_v44 = vcvt.s32.f32 %v4797_v47  ;;  %v5265_v60 = vcvt.s32.f32 %v5093_v30  ;;  %3090 = vmatpush3.bf16.msra.mxu0 %v5179_v41  ;;  %v5269_v47 = vsub.f32 %v7113_v14, %v843_v27 }
 0x7fd   :  { %vm5192_vm3 = vmpackc.low %vm536_vm12, %vm535_vm6  ;;  %7122 = vst [vmem:[#allocation182_spill] sm:$0xff] %v5223_v40  ;;  %3117 = vmatprep.subr.bf16.mxu1 %v5175_v52  ;;  %v5277_v50 = vcvt.s32.f32 %v290_v26  ;;  %3091 = vmatprep.subr.bf16.mxu0 %v5206_v51  ;;  %v5281_v30 = vsub.f32 %v7114_v57, %v844_v55  ;;  %v5285_v27 = vpack.c.bf16 %v5223_v40, %v5220_v62  ;;  %v7130_v14 = vmov 0 }
 0x7fe   :  { %v7118_v63 = vsel %vm5192_vm3, 4294967295, %v7117_v63  ;;  %3039 = vmatprep.mubr.msk.bf16.mxu0 %vm5192_vm3, %v7065_v38  ;;  %vm549_vm15 = vmand %vm376_vm4, %vm485_vm1  ;;  %vm379_vm4 = vcmp.lt.f32.partialorder %v4848_v35, %v4777_v49  ;;  %7123 = vst [vmem:[#allocation183_spill] sm:$0xff] %v5239_v1  ;;  %vm488_vm1 = vcmp.ge.f32.partialorder %v4789_v58, %v4777_v49  ;;  %v5296_v26 = vpack.c.bf16 %v5239_v1, %v5202_v56 }
 0x7ff   :  { %vm550_vm6 = vmand %vm377_vm8, %vm486_vm9  ;;  %vm487_vm8 = vcmp.ge.f32.partialorder %v4789_v58, %v4775_v20  ;;  %7128 = vst [vmem:[#allocation184_spill] sm:$0xff] %v5269_v47  ;;  %v845_v55 = vunpack.c.l.bf16 %v5243_v22  ;;  %v846_v57 = vunpack.c.h.bf16 %v5243_v22  ;;  %vm367_vm3 = vcmp.lt.f32.partialorder %v4801_v5, %v5277_v50 }
 0x800   :  { %vm5245_vm12 = vmpackc.low %vm550_vm6, %vm549_vm15  ;;  %vm364_vm15 = vcmp.lt.f32.partialorder %v4801_v5, %v5235_v0  ;;  %3118 = vmatpush3.bf16.msra.mxu1 %v5175_v52  ;;  %7129 = vst [vmem:[#allocation185_spill] sm:$0xff] %v5281_v30  ;;  %3092 = vmatpush3.bf16.msra.mxu0 %v5206_v51  ;;  %v7132_v21 = vmov 0  ;;  %vm475_vm7 = vcmp.ge.f32.partialorder %v4765_v10, %v5265_v60  ;;  %v291_v62 = vadd.s32 112, %v4573_v25 }
 0x801   :  { %v7127_v28 = vsel %vm5245_vm12, 4294967295, %v7126_v28  ;;  %3068 = vmatmul.mubr.msk.bf16.gmra.mrb[4].mxu1 %vm5245_vm12, %v7065_v38  ;;  %vm551_vm9 = vmand %vm378_vm11, %vm487_vm8  ;;  %vm365_vm11 = vcmp.lt.f32.partialorder %v4801_v5, %v5252_v44  ;;  %3119 = vmatprep.subr.bf16.mxu1 %v5199_v23  ;;  %v5327_v40 = vpack.c.bf16 %v5281_v30, %v5269_v47  ;;  %v5338_v1 = vsub.f32 %v7124_v13, %v845_v55 }
 0x802   :  { %vm552_vm6 = vmand %vm379_vm4, %vm488_vm1  ;;  %vm473_vm4 = vcmp.ge.f32.partialorder %v4765_v10, %v5235_v0  ;;  %vm474_vm1 = vcmp.ge.f32.partialorder %v4765_v10, %v5252_v44  ;;  %3093 = vmatprep.subr.bf16.mxu0 %v5285_v27  ;;  %v5341_v30 = vsub.f32 %v7125_v37, %v846_v57  ;;  %v332_v47 = vcombine.high %v4780_v7, %v4780_v7  ;;  %v7138_v57 = vld [vmem:[#allocation76_spill] sm:$0xff] }
 0x803   :  { %vm5287_vm8 = vmpackc.low %vm552_vm6, %vm551_vm9  ;;  %vm366_vm6 = vcmp.lt.f32.partialorder %v4801_v5, %v5265_v60  ;;  %7134 = vst [vmem:[#allocation186_spill] sm:$0xff] %v5338_v1  ;;  %v292_v56 = vadd.s32 120, %v4573_v25  ;;  %v7136_v51 = vmov 0  ;;  %v441_v7 = vcombine.high %v4735_v11, %v4735_v11 }
 0x804   :  { %v7131_v14 = vsel %vm5287_vm8, 4294967295, %v7130_v14  ;;  %3071 = vmatprep.mubr.msk.bf16.mxu1 %vm5287_vm8, %v7065_v38  ;;  %vm537_vm9 = vmand %vm364_vm15, %vm473_vm4  ;;  %vm476_vm15 = vcmp.ge.f32.partialorder %v4765_v10, %v5277_v50  ;;  %3120 = vmatpush3.bf16.msra.mxu1 %v5199_v23  ;;  %7135 = vst [vmem:[#allocation187_spill] sm:$0xff] %v5341_v30  ;;  %vm381_vm4 = vcmp.lt.f32.partialorder %v4848_v35, %v5252_v44  ;;  %v5373_v25 = vcvt.s32.f32 %v291_v62 }
 0x805   :  { %vm538_vm12 = vmand %vm365_vm11, %vm474_vm1  ;;  %vm380_vm11 = vcmp.lt.f32.partialorder %v4848_v35, %v5235_v0  ;;  %3121 = vmatprep.subr.bf16.mxu1 %v5296_v26  ;;  %3094 = vmatpush3.bf16.msra.mxu0 %v5285_v27  ;;  %v5378_v11 = vpack.c.bf16 %v5341_v30, %v5338_v1  ;;  %v5382_v55 = vrot.slane %v332_v47, %v4687_v15  ;;  %v7139_v37 = vmov 0 }
 0x806   :  { %vm5316_vm8 = vmpackc.low %vm538_vm12, %vm537_vm9  ;;  %vm489_vm9 = vcmp.ge.f32.partialorder %v4789_v58, %v5235_v0  ;;  %3143 = vmatprep.subr.bf16.mxu0 %v7138_v57  ;;  %v5390_v62 = vcvt.s32.f32 %v292_v56  ;;  %v5400_v47 = vrot.slane %v441_v7, %v4687_v15  ;;  %v333_v13 = vcombine.high %v4810_v31, %v4810_v31 }
 0x807   :  { %v7133_v21 = vsel %vm5316_vm8, 4294967295, %v7132_v21  ;;  %3040 = vmatmul.mubr.msk.bf16.gmra.mrb[8].mxu0 %vm5316_vm8, %v7065_v38  ;;  %vm539_vm12 = vmand %vm366_vm6, %vm475_vm7  ;;  %v7143_v56 = vmov 0  ;;  %v442_v31 = vcombine.high %v4759_v6, %v4759_v6  ;;  %v7146_v6 = vmov 0 }
 0x808   :  { %vm540_vm7 = vmand %vm367_vm3, %vm476_vm15  ;;  %vm490_vm3 = vcmp.ge.f32.partialorder %v4789_v58, %v5252_v44  ;;  %vm382_vm15 = vcmp.lt.f32.partialorder %v4848_v35, %v5265_v60  ;;  %3122 = vmatpush3.bf16.msra.mxu1 %v5296_v26  ;;  %v7150_v7 = vmov 0  ;;  %v986_v45 = vunpack.c.h.bf16 %v5179_v41 }
 0x809   :  { %vm5351_vm1 = vmpackc.low %vm540_vm7, %vm539_vm12  ;;  %3123 = vmatprep.subr.bf16.mxu1 %v5327_v40  ;;  %vm368_vm7 = vcmp.lt.f32.partialorder %v4801_v5, %v5373_v25 }
 0x80a   :  { %v7137_v51 = vsel %vm5351_vm1, 4294967295, %v7136_v51  ;;  %3043 = vmatprep.mubr.msk.bf16.mxu0 %vm5351_vm1, %v7065_v38  ;;  %vm553_vm6 = vmand %vm380_vm11, %vm489_vm9  ;;  %vm492_vm9 = vcmp.ge.f32.partialorder %v4789_v58, %v5277_v50 }
 0x80b   :  { %vm554_vm12 = vmand %vm381_vm4, %vm490_vm3  ;;  %vm491_vm4 = vcmp.ge.f32.partialorder %v4789_v58, %v5265_v60 }
 0x80c   :  { %vm5384_vm11 = vmpackc.low %vm554_vm12, %vm553_vm6  ;;  %vm7142_vm6 = vcmp.lt.f32.partialorder %v4848_v35, %v5277_v50  ;;  %3124 = vmatpush3.bf16.msra.mxu1 %v5327_v40 }
 0x80d   :  { %v7140_v37 = vsel %vm5384_vm11, 4294967295, %v7139_v37  ;;  %3072 = vmatmul.mubr.msk.bf16.gmra.mrb[8].mxu1 %vm5384_vm11, %v7065_v38  ;;  %vm555_vm3 = vmand %vm382_vm15, %vm491_vm4  ;;  %vm369_vm11 = vcmp.lt.f32.partialorder %v4801_v5, %v5390_v62  ;;  %vm477_vm15 = vcmp.ge.f32.partialorder %v4765_v10, %v5373_v25  ;;  %3125 = vmatprep.subr.bf16.mxu1 %v5378_v11  ;;  %vm478_vm4 = vcmp.ge.f32.partialorder %v4765_v10, %v5390_v62  ;;  %v7149_v10 = vld [vmem:[#allocation77_spill] sm:$0xff] }
 0x80e   :  { %7141 = vst [vmem:[#allocation76_spill] sm:$0xff] %v7140_v37  ;;  %vm556_vm12 = vmand %vm7142_vm6, %vm492_vm9  ;;  %v5429_v5 = vrot.slane %v333_v13, %v4687_v15  ;;  %v5447_v13 = vrot.slane %v442_v31, %v4687_v15  ;;  %v7163_v31 = vld [vmem:[#allocation78_spill] sm:$0xff] }
 0x80f   :  { %vm5410_vm1 = vmpackc.low %vm556_vm12, %vm555_vm3  ;;  %vm386_vm3 = vcmp.lt.f32.partialorder %v5382_v55, %v4748_v54  ;;  %vm387_vm12 = vcmp.lt.f32.partialorder %v5382_v55, %v4750_v8 }
 0x810   :  { %v7144_v56 = vsel %vm5410_vm1, 4294967295, %v7143_v56  ;;  %3075 = vmatprep.mubr.msk.bf16.mxu1 %vm5410_vm1, %v7065_v38  ;;  %vm541_vm9 = vmand %vm368_vm7, %vm477_vm15  ;;  %vm495_vm1 = vcmp.ge.f32.partialorder %v5400_v47, %v4748_v54  ;;  %3126 = vmatpush3.bf16.msra.mxu1 %v5378_v11  ;;  %vm496_vm7 = vcmp.ge.f32.partialorder %v5400_v47, %v4750_v8  ;;  %vm384_vm15 = vcmp.lt.f32.partialorder %v4848_v35, %v5373_v25 }
 0x811   :  { %7145 = vst [vmem:[#allocation188_spill] sm:$0xff] %v7144_v56  ;;  %vm542_vm6 = vmand %vm369_vm11, %vm478_vm4  ;;  %3175 = vmatprep.subr.bf16.mxu1 %v7149_v10  ;;  %vm511_vm2 = vcmp.ge.f32.partialorder %v5447_v13, %v4748_v54 }
 0x812   :  { %vm5431_vm8 = vmpackc.low %vm542_vm6, %vm541_vm9  ;;  %vm385_vm9 = vcmp.lt.f32.partialorder %v4848_v35, %v5390_v62  ;;  %v7153_v35 = vmov 0 }
 0x813   :  { %v7147_v6 = vsel %vm5431_vm8, 4294967295, %v7146_v6  ;;  %3044 = vmatmul.mubr.msk.bf16.gmra.mrb[12].mxu0 %vm5431_vm8, %v7065_v38  ;;  %vm559_vm11 = vmand %vm386_vm3, %vm495_vm1  ;;  %vm493_vm8 = vcmp.ge.f32.partialorder %v4789_v58, %v5373_v25  ;;  %vm494_vm1 = vcmp.ge.f32.partialorder %v4789_v58, %v5390_v62  ;;  %v7156_v58 = vmov 0 }
 0x814   :  { %7148 = vst [vmem:[#allocation189_spill] sm:$0xff] %v7147_v6  ;;  %vm560_vm4 = vmand %vm387_vm12, %vm496_vm7  ;;  %vm402_vm12 = vcmp.lt.f32.partialorder %v5429_v5, %v4748_v54  ;;  %v7161_v54 = vmov 0 }
 0x815   :  { %vm5451_vm6 = vmpackc.low %vm560_vm4, %vm559_vm11  ;;  %vm403_vm11 = vcmp.lt.f32.partialorder %v5429_v5, %v4750_v8 }
 0x816   :  { %v7151_v7 = vsel %vm5451_vm6, 4294967295, %v7150_v7  ;;  %3095 = vmatprep.mubr.msk.bf16.mxu0 %vm5451_vm6, %v7065_v38  ;;  %vm557_vm3 = vmand %vm384_vm15, %vm493_vm8  ;;  %vm512_vm8 = vcmp.ge.f32.partialorder %v5447_v13, %v4750_v8  ;;  %vm497_vm6 = vcmp.ge.f32.partialorder %v5400_v47, %v4752_v46  ;;  %v7159_v8 = vmov 0 }
 0x817   :  { %7152 = vst [vmem:[#allocation77_spill] sm:$0xff] %v7151_v7  ;;  %vm558_vm7 = vmand %vm385_vm9, %vm494_vm1  ;;  %vm388_vm9 = vcmp.lt.f32.partialorder %v5382_v55, %v4752_v46 }
 0x818   :  { %vm5466_vm4 = vmpackc.low %vm558_vm7, %vm557_vm3  ;;  %vm389_vm3 = vcmp.lt.f32.partialorder %v5382_v55, %v4754_v16 }
 0x819   :  { %v7154_v35 = vsel %vm5466_vm4, 4294967295, %v7153_v35  ;;  %3076 = vmatmul.mubr.msk.bf16.gmra.mrb[12].mxu1 %vm5466_vm4, %v7065_v38  ;;  %vm575_vm15 = vmand %vm402_vm12, %vm511_vm2  ;;  %vm498_vm2 = vcmp.ge.f32.partialorder %v5400_v47, %v4754_v16  ;;  %vm499_vm4 = vcmp.ge.f32.partialorder %v5400_v47, %v4761_v4 }
 0x81a   :  { %7155 = vst [vmem:[#allocation190_spill] sm:$0xff] %v7154_v35  ;;  %vm576_vm1 = vmand %vm403_vm11, %vm512_vm8  ;;  %vm390_vm11 = vcmp.lt.f32.partialorder %v5382_v55, %v4761_v4 }
 0x81b   :  { %vm5481_vm7 = vmpackc.low %vm576_vm1, %vm575_vm15  ;;  %vm391_vm15 = vcmp.lt.f32.partialorder %v5382_v55, %v4768_v32 }
 0x81c   :  { %v7157_v58 = vsel %vm5481_vm7, 4294967295, %v7156_v58  ;;  %3127 = vmatprep.mubr.msk.bf16.mxu1 %vm5481_vm7, %v7065_v38  ;;  %vm561_vm12 = vmand %vm388_vm9, %vm497_vm6  ;;  %vm500_vm6 = vcmp.ge.f32.partialorder %v5400_v47, %v4768_v32  ;;  %vm515_vm7 = vcmp.ge.f32.partialorder %v5447_v13, %v4761_v4 }
 0x81d   :  { %7158 = vst [vmem:[#allocation191_spill] sm:$0xff] %v7157_v58  ;;  %vm562_vm8 = vmand %vm389_vm3, %vm498_vm2  ;;  %vm404_vm3 = vcmp.lt.f32.partialorder %v5429_v5, %v4752_v46 }
 0x81e   :  { %vm5496_vm1 = vmpackc.low %vm562_vm8, %vm561_vm12  ;;  %vm405_vm12 = vcmp.lt.f32.partialorder %v5429_v5, %v4754_v16 }
 0x81f   :  { %v7160_v8 = vsel %vm5496_vm1, 4294967295, %v7159_v8  ;;  %3096 = vmatmul.mubr.msk.bf16.vlgmr.msra.gmra.mrb[16].mxu0 %vm5496_vm1, %v7065_v38  ;;  %vm563_vm9 = vmand %vm390_vm11, %vm499_vm4  ;;  %vm513_vm1 = vcmp.ge.f32.partialorder %v5447_v13, %v4752_v46  ;;  %vm514_vm4 = vcmp.ge.f32.partialorder %v5447_v13, %v4754_v16  ;;  %v7169_v16 = vld [vmem:[#allocation79_spill] sm:$0xff]  ;;  %v7170_v46 = vmov 0 }
 0x820   :  { %vm564_vm2 = vmand %vm391_vm15, %vm500_vm6  ;;  %3144 = vmatpush3.bf16.msra.mxu0 %v7138_v57  ;;  %vm406_vm15 = vcmp.lt.f32.partialorder %v5429_v5, %v4761_v4  ;;  %v7164_v57 = vmov 0  ;;  %v7166_v4 = vmov 0 }
 0x821   :  { %vm5512_vm8 = vmpackc.low %vm564_vm2, %vm563_vm9  ;;  %3145 = vmatprep.subr.bf16.mxu0 %v7163_v31  ;;  %vm407_vm9 = vcmp.lt.f32.partialorder %v5429_v5, %v4768_v32 }
 0x822   :  { %v7162_v54 = vsel %vm5512_vm8, 4294967295, %v7161_v54  ;;  %3099 = vmatprep.mubr.msk.bf16.mxu0 %vm5512_vm8, %v7065_v38  ;;  %vm577_vm11 = vmand %vm404_vm3, %vm513_vm1  ;;  %vm516_vm1 = vcmp.ge.f32.partialorder %v5447_v13, %v4768_v32  ;;  %v7190_v32 = vld [vmem:[#allocation124_spill] sm:$0xff]  ;;  %vm525_vm8 = vcmp.ge.f32.partialorder %v5447_v13, %v5373_v25 }
 0x823   :  { %vm578_vm6 = vmand %vm405_vm12, %vm514_vm4  ;;  %vm392_vm12 = vcmp.lt.f32.partialorder %v5382_v55, %v4770_v48 }
 0x824   :  { %vm5528_vm2 = vmpackc.low %vm578_vm6, %vm577_vm11  ;;  %3146 = vmatpush3.bf16.msra.mxu0 %v7163_v31  ;;  %vm393_vm11 = vcmp.lt.f32.partialorder %v5382_v55, %v4773_v33 }
 0x825   :  { %v7165_v57 = vsel %vm5528_vm2, 4294967295, %v7164_v57  ;;  %3128 = vmatmul.mubr.msk.bf16.vlgmr.msra.gmra.mrb[16].mxu1 %vm5528_vm2, %v7065_v38  ;;  %vm579_vm3 = vmand %vm406_vm15, %vm515_vm7  ;;  %3147 = vmatprep.subr.bf16.mxu0 %v4392_v61  ;;  %vm501_vm7 = vcmp.ge.f32.partialorder %v5400_v47, %v4770_v48  ;;  %vm502_vm15 = vcmp.ge.f32.partialorder %v5400_v47, %v4773_v33 }
 0x826   :  { %3176 = vmatpush3.bf16.msra.mxu1 %v7149_v10  ;;  %vm580_vm4 = vmand %vm407_vm9, %vm516_vm1  ;;  %vm394_vm1 = vcmp.lt.f32.partialorder %v5382_v55, %v4775_v20 }
 0x827   :  { %vm5546_vm6 = vmpackc.low %vm580_vm4, %vm579_vm3  ;;  %3177 = vmatprep.subr.bf16.mxu1 %v7169_v16  ;;  %vm395_vm4 = vcmp.lt.f32.partialorder %v5382_v55, %v4777_v49 }
 0x828   :  { %v7167_v4 = vsel %vm5546_vm6, 4294967295, %v7166_v4  ;;  %3131 = vmatprep.mubr.msk.bf16.mxu1 %vm5546_vm6, %v7065_v38  ;;  %vm565_vm9 = vmand %vm392_vm12, %vm501_vm7  ;;  %3148 = vmatpush3.bf16.msra.mxu0 %v4392_v61  ;;  %vm503_vm12 = vcmp.ge.f32.partialorder %v5400_v47, %v4775_v20  ;;  %v7172_v61 = vmov 0 }
 0x829   :  { %7168 = vst [vmem:[#allocation78_spill] sm:$0xff] %v7167_v4  ;;  %vm566_vm3 = vmand %vm393_vm11, %vm502_vm15  ;;  %3149 = vmatprep.subr.bf16.mxu0 %v4400_v42  ;;  %vm504_vm11 = vcmp.ge.f32.partialorder %v5400_v47, %v4777_v49  ;;  %vm408_vm15 = vcmp.lt.f32.partialorder %v5429_v5, %v4770_v48 }
 0x82a   :  { %3178 = vmatpush3.bf16.msra.mxu1 %v7169_v16  ;;  %vm5565_vm2 = vmpackc.low %vm566_vm3, %vm565_vm9  ;;  %vm409_vm3 = vcmp.lt.f32.partialorder %v5429_v5, %v4773_v33  ;;  %v7303_v16 = vld [vmem:[#allocation171_spill] sm:$0xff] }
 0x82b   :  { %v7171_v46 = vsel %vm5565_vm2, 4294967295, %v7170_v46  ;;  %3100 = vmatmul.mubr.msk.bf16.gmra.mrb[20].mxu0 %vm5565_vm2, %v7065_v38  ;;  %vm567_vm7 = vmand %vm394_vm1, %vm503_vm12  ;;  %3179 = vmatprep.subr.bf16.mxu1 %v4396_v59  ;;  %vm517_vm2 = vcmp.ge.f32.partialorder %v5447_v13, %v4770_v48  ;;  %vm518_vm1 = vcmp.ge.f32.partialorder %v5447_v13, %v4773_v33  ;;  %vm410_vm12 = vcmp.lt.f32.partialorder %v5429_v5, %v4775_v20  ;;  %v7193_v33 = vld [vmem:[#allocation138_spill] sm:$0xff] }
 0x82c   :  { %vm568_vm9 = vmand %vm395_vm4, %vm504_vm11  ;;  %3150 = vmatpush3.bf16.msra.mxu0 %v4400_v42  ;;  %v7174_v42 = vmov 0 }
 0x82d   :  { %vm5582_vm6 = vmpackc.low %vm568_vm9, %vm567_vm7  ;;  %3151 = vmatprep.subr.bf16.mxu0 %v4502_v3  ;;  %vm411_vm7 = vcmp.lt.f32.partialorder %v5429_v5, %v4777_v49 }
 0x82e   :  { %v7173_v61 = vsel %vm5582_vm6, 4294967295, %v7172_v61  ;;  %3103 = vmatprep.mubr.msk.bf16.mxu0 %vm5582_vm6, %v7065_v38  ;;  %vm581_vm4 = vmand %vm408_vm15, %vm517_vm2  ;;  %3180 = vmatpush3.bf16.msra.mxu1 %v4396_v59  ;;  %vm519_vm6 = vcmp.ge.f32.partialorder %v5447_v13, %v4775_v20  ;;  %vm520_vm2 = vcmp.ge.f32.partialorder %v5447_v13, %v4777_v49  ;;  %v7178_v20 = vmov 0  ;;  %v7180_v59 = vld [vmem:[#allocation113_spill] sm:$0xff]  ;;  %v7295_v49 = vld [vmem:[#allocation154_spill] sm:$0xff] }
 0x82f   :  { %vm582_vm11 = vmand %vm409_vm3, %vm518_vm1  ;;  %3181 = vmatprep.subr.bf16.mxu1 %v4404_v43  ;;  %vm396_vm3 = vcmp.lt.f32.partialorder %v5382_v55, %v5235_v0 }
 0x830   :  { %vm5600_vm9 = vmpackc.low %vm582_vm11, %vm581_vm4  ;;  %3152 = vmatpush3.bf16.msra.mxu0 %v4502_v3  ;;  %vm397_vm4 = vcmp.lt.f32.partialorder %v5382_v55, %v5252_v44  ;;  %v7176_v3 = vmov 0 }
 0x831   :  { %v7175_v42 = vsel %vm5600_vm9, 4294967295, %v7174_v42  ;;  %3132 = vmatmul.mubr.msk.bf16.gmra.mrb[20].mxu1 %vm5600_vm9, %v7065_v38  ;;  %vm583_vm15 = vmand %vm410_vm12, %vm519_vm6  ;;  %3153 = vmatprep.subr.bf16.mxu0 %v4510_v19  ;;  %vm505_vm9 = vcmp.ge.f32.partialorder %v5400_v47, %v5235_v0  ;;  %vm506_vm6 = vcmp.ge.f32.partialorder %v5400_v47, %v5252_v44 }
 0x832   :  { %vm584_vm1 = vmand %vm411_vm7, %vm520_vm2  ;;  %3182 = vmatpush3.bf16.msra.mxu1 %v4404_v43  ;;  %vm398_vm7 = vcmp.lt.f32.partialorder %v5382_v55, %v5265_v60  ;;  %v7181_v43 = vmov 0 }
 0x833   :  { %vm5618_vm11 = vmpackc.low %vm584_vm1, %vm583_vm15  ;;  %3183 = vmatprep.subr.bf16.mxu1 %v4506_v2  ;;  %vm399_vm15 = vcmp.lt.f32.partialorder %v5382_v55, %v5277_v50 }
 0x834   :  { %v7177_v3 = vsel %vm5618_vm11, 4294967295, %v7176_v3  ;;  %3135 = vmatprep.mubr.msk.bf16.mxu1 %vm5618_vm11, %v7065_v38  ;;  %vm569_vm12 = vmand %vm396_vm3, %vm505_vm9  ;;  %3154 = vmatpush3.bf16.msra.mxu0 %v4510_v19  ;;  %vm507_vm11 = vcmp.ge.f32.partialorder %v5400_v47, %v5265_v60  ;;  %vm508_vm9 = vcmp.ge.f32.partialorder %v5400_v47, %v5277_v50  ;;  %v7185_v19 = vmov 0 }
 0x835   :  { %vm570_vm2 = vmand %vm397_vm4, %vm506_vm6  ;;  %3155 = vmatprep.subr.bf16.mxu0 %v4588_v24  ;;  %vm412_vm4 = vcmp.lt.f32.partialorder %v5429_v5, %v5235_v0 }
 0x836   :  { %vm5636_vm1 = vmpackc.low %vm570_vm2, %vm569_vm12  ;;  %3184 = vmatpush3.bf16.msra.mxu1 %v4506_v2  ;;  %vm413_vm12 = vcmp.lt.f32.partialorder %v5429_v5, %v5252_v44  ;;  %v7183_v2 = vld [vmem:[#allocation122_spill] sm:$0xff] }
 0x837   :  { %v7179_v20 = vsel %vm5636_vm1, 4294967295, %v7178_v20  ;;  %3104 = vmatmul.mubr.msk.bf16.gmra.mrb[24].mxu0 %vm5636_vm1, %v7065_v38  ;;  %vm571_vm3 = vmand %vm398_vm7, %vm507_vm11  ;;  %3185 = vmatprep.subr.bf16.mxu1 %v7180_v59  ;;  %vm521_vm1 = vcmp.ge.f32.partialorder %v5447_v13, %v5235_v0  ;;  %vm522_vm11 = vcmp.ge.f32.partialorder %v5447_v13, %v5252_v44  ;;  %v7184_v0 = vld [vmem:[#allocation118_spill] sm:$0xff]  ;;  %v7187_v44 = vld [vmem:[#allocation133_spill] sm:$0xff] }
 0x838   :  { %vm572_vm6 = vmand %vm399_vm15, %vm508_vm9  ;;  %3156 = vmatpush3.bf16.msra.mxu0 %v4588_v24  ;;  %vm414_vm15 = vcmp.lt.f32.partialorder %v5429_v5, %v5265_v60 }
 0x839   :  { %vm5654_vm2 = vmpackc.low %vm572_vm6, %vm571_vm3  ;;  %3157 = vmatprep.subr.bf16.mxu0 %v7183_v2  ;;  %vm415_vm3 = vcmp.lt.f32.partialorder %v5429_v5, %v5277_v50 }
 0x83a   :  { %v7182_v43 = vsel %vm5654_vm2, 4294967295, %v7181_v43  ;;  %3107 = vmatprep.mubr.msk.bf16.mxu0 %vm5654_vm2, %v7065_v38  ;;  %vm585_vm7 = vmand %vm412_vm4, %vm521_vm1  ;;  %3186 = vmatpush3.bf16.msra.mxu1 %v7180_v59  ;;  %vm523_vm2 = vcmp.ge.f32.partialorder %v5447_v13, %v5265_v60  ;;  %vm524_vm1 = vcmp.ge.f32.partialorder %v5447_v13, %v5277_v50  ;;  %v7197_v50 = vld [vmem:[#allocation117_spill] sm:$0xff] }
 0x83b   :  { %vm586_vm9 = vmand %vm413_vm12, %vm522_vm11  ;;  %3187 = vmatprep.subr.bf16.mxu1 %v7184_v0  ;;  %vm400_vm12 = vcmp.lt.f32.partialorder %v5382_v55, %v5373_v25  ;;  %v7349_v60 = vld [vmem:[#allocation29_spill] sm:$0xff] }
 0x83c   :  { %vm5672_vm6 = vmpackc.low %vm586_vm9, %vm585_vm7  ;;  %3158 = vmatpush3.bf16.msra.mxu0 %v7183_v2  ;;  %vm401_vm7 = vcmp.lt.f32.partialorder %v5382_v55, %v5390_v62  ;;  %v7203_v2 = vld [vmem:[#allocation142_spill] sm:$0xff]  ;;  %v981_v55 = vunpack.c.l.bf16 %v5032_v9 }
 0x83d   :  { %v7186_v19 = vsel %vm5672_vm6, 4294967295, %v7185_v19  ;;  %3136 = vmatmul.mubr.msk.bf16.gmra.mrb[24].mxu1 %vm5672_vm6, %v7065_v38  ;;  %vm587_vm4 = vmand %vm414_vm15, %vm523_vm2  ;;  %3207 = vmatprep.subr.bf16.mxu0 %v7187_v44  ;;  %vm509_vm6 = vcmp.ge.f32.partialorder %v5400_v47, %v5373_v25  ;;  %vm510_vm2 = vcmp.ge.f32.partialorder %v5400_v47, %v5390_v62 }
 0x83e   :  { %vm588_vm11 = vmand %vm415_vm3, %vm524_vm1  ;;  %3188 = vmatpush3.bf16.msra.mxu1 %v7184_v0  ;;  %vm416_vm3 = vcmp.lt.f32.partialorder %v5429_v5, %v5373_v25  ;;  %v2339_v25 = vcombine.high %v7197_v50, %v7197_v50  ;;  %v7206_v50 = vld [vmem:[#allocation143_spill] sm:$0xff] }
 0x83f   :  { %vm5690_vm9 = vmpackc.low %vm588_vm11, %vm587_vm4  ;;  %3189 = vmatprep.subr.bf16.mxu1 %v7190_v32  ;;  %vm417_vm4 = vcmp.lt.f32.partialorder %v5429_v5, %v5390_v62 }
 0x840   :  { %3139 = vmatprep.mubr.msk.bf16.mxu1 %vm5690_vm9, %v7065_v38  ;;  %vm573_vm15 = vmand %vm400_vm12, %vm509_vm6  ;;  %vm526_vm6 = vcmp.ge.f32.partialorder %v5447_v13, %v5390_v62  ;;  %v7199_v62 = vld [vmem:[#allocation114_spill] sm:$0xff]  ;;  %v7201_v13 = vmov 0  }
 0x841   :  { %vm574_vm1 = vmand %vm401_vm7, %vm510_vm2  ;;  %v2353_v47 = vrot.slane %v2339_v25, %v7199_v62  ;;  %v7213_v25 = vld [vmem:[#allocation155_spill] sm:$0xff] }
 0x842   :  { %vm5706_vm11 = vmpackc.low %vm574_vm1, %vm573_vm15  ;;  %3190 = vmatpush3.bf16.msra.mxu1 %v7190_v32  ;;  %vm7207_vm1 = vnez %v7116_v39  ;;  %v7214_v62 = vld [vmem:[#allocation151_spill] sm:$0xff] }
 0x843   :  { %3108 = vmatmul.mubr.msk.bf16.gmra.mrb[28].mxu0 %vm5706_vm11, %v7065_v38  ;;  %vm589_vm12 = vmand %vm416_vm3, %vm525_vm8  ;;  %3239 = vmatprep.subr.bf16.mxu1 %v7193_v33  ;;  %vm2357_vm8 = vcmp.ne.s32.totalorder %v2353_v47, 0  ;;  %v2355_v5 = vcombine.high %v2353_v47, %v2353_v47  ;;  %vm7204_vm3 = vnez %v7105_v34  ;;  %v7217_v47 = vld [vmem:[#allocation162_spill] sm:$0xff] }
 0x844   :  { %3159 = vmatprep.mubr.msk.bf16.mxu0 %vm4850_vm10, %v7065_v38  ;;  %vm590_vm7 = vmand %vm417_vm4, %vm526_vm6  ;;  %v2361_v31 = vsel %vm2357_vm8, 1, %v7201_v13  ;;  %vm7208_vm4 = vnez %v7118_v63  ;;  %vm7211_vm6 = vnez %v7127_v28  ;;  %vm7216_vm8 = vnez %v7137_v51  ;;  %v7312_v63 = vld [vmem:[#allocation179_spill] sm:$0xff]  ;;  %v7314_v28 = vld [vmem:[#allocation177_spill] sm:$0xff] }
 0x845   :  { %vm5722_vm2 = vmpackc.low %vm590_vm7, %vm589_vm12  ;;  %v2371_v59 = vrot.slane %v2361_v31, %v4687_v15  ;;  %vm2359_vm15 = vcmp.ne.s32.totalorder %v2355_v5, 0  ;;  %vm7212_vm12 = vnez %v7131_v14  ;;  %vm7215_vm7 = vnez %v7133_v21  ;;  %v7218_v5 = vld [vmem:[#allocation164_spill] sm:$0xff] }
 0x846   :  { %3140 = vmatmul.mubr.msk.bf16.gmra.mrb[28].mxu1 %vm5722_vm2, %v7065_v38  ;;  %v2363_v0 = vsel %vm2359_vm15, 1, %v7201_v13  ;;  %v7219_v13 = vld [vmem:[#allocation88_spill] sm:$0xff]  ;;  %vm7220_vm15 = vnez %v7140_v37  ;;  %v989_v14 = vunpack.c.l.bf16 %v5285_v27 }
 0x847   :  { %3191 = vmatprep.mubr.msk.bf16.mxu1 %vm4995_vm5, %v7065_v38  ;;  %2384 = vperm.xlu1 %3542, %v2371_v59   ;;  %v2379_v32 = vrot.slane %v2363_v0, %v4687_v15  ;;  %v7209_v15 = vld [vmem:[#allocation147_spill] sm:$0xff]  ;;  %v943_v31 = vunpack.c.l.bf16 %v7219_v13  ;;  %v944_v59 = vunpack.c.h.bf16 %v7219_v13  ;;  %v7323_v51 = vld [vmem:[#allocation188_spill] sm:$0xff] }
 0x84b   :  { %3160 = vmatmul.mubr.msk.bf16.vlgmr.msra.gmra.mrb[0].mxu0 %vm4893_vm0, %v7065_v38  ;;  %2390 = vperm.xlu1 %3542, %v2379_v32  }
 0x84c   :  { %3163 = vmatprep.mubr.msk.bf16.mxu0 %vm4941_vm13, %v7065_v38  ;;  %3208 = vmatpush3.bf16.msra.mxu0 %v7187_v44  ;;  %v7205_v44 = vld [vmem:[#allocation75_spill] sm:$0xff] }
 0x84d   :  { %3209 = vmatprep.subr.bf16.mxu0 %v7203_v2 }
 0x84e   :  { %3192 = vmatmul.mubr.msk.bf16.vlgmr.msra.gmra.mrb[0].mxu1 %vm5046_vm14, %v7065_v38 }
 0x84f   :  { %3240 = vmatpush3.bf16.msra.mxu1 %v7193_v33  ;;  %3195 = vmatprep.mubr.msk.bf16.mxu1 %vm7204_vm3, %v7065_v38  ;;  %v7210_v33 = vld [vmem:[#allocation146_spill] sm:$0xff] }
 0x850   :  { %3210 = vmatpush3.bf16.msra.mxu0 %v7203_v2  ;;  %3241 = vmatprep.subr.bf16.mxu1 %v7205_v44  ;;  %v7222_v2 = vld [vmem:[#allocation89_spill] sm:$0xff] }
 0x851   :  { %3211 = vmatprep.subr.bf16.mxu0 %v7206_v50  ;;  %v959_v0 = vunpack.c.l.bf16 %v7222_v2  ;;  %v960_v32 = vunpack.c.h.bf16 %v7222_v2 }
 0x853   :  { %3242 = vmatpush3.bf16.msra.mxu1 %v7205_v44  ;;  %3164 = vmatmul.mubr.msk.bf16.gmra.mrb[4].mxu0 %vm7207_vm1, %v7065_v38  ;;  %v7223_v44 = vld [vmem:[#allocation169_spill] sm:$0xff] }
 0x854   :  { %3167 = vmatprep.mubr.msk.bf16.mxu0 %vm7208_vm4, %v7065_v38  ;;  %3212 = vmatpush3.bf16.msra.mxu0 %v7206_v50  ;;  %v7224_v50 = vld [vmem:[#allocation80_spill] sm:$0xff] }
 0x855   :  { %3243 = vmatprep.subr.bf16.mxu1 %v7209_v15  ;;  %3213 = vmatprep.subr.bf16.mxu0 %v7210_v33 }
 0x856   :  { %3196 = vmatmul.mubr.msk.bf16.gmra.mrb[4].mxu1 %vm7211_vm6, %v7065_v38 }
 0x857   :  { %3244 = vmatpush3.bf16.msra.mxu1 %v7209_v15  ;;  %3199 = vmatprep.mubr.msk.bf16.mxu1 %vm7212_vm12, %v7065_v38  ;;  %v1007_v15 = vsub.f32 %v7224_v50, %v943_v31  ;;  %v7230_v31 = vld [vmem:[#allocation82_spill] sm:$0xff]  ;;  %v7231_v50 = vld [vmem:[#allocation83_spill] sm:$0xff] }
 0x858   :  { %3214 = vmatpush3.bf16.msra.mxu0 %v7210_v33  ;;  %3245 = vmatprep.subr.bf16.mxu1 %v7213_v25  ;;  %v7225_v33 = vld [vmem:[#allocation81_spill] sm:$0xff] }
 0x859   :  { %3215 = vmatprep.subr.bf16.mxu0 %v7214_v62 }
 0x85b   :  { %3246 = vmatpush3.bf16.msra.mxu1 %v7213_v25  ;;  %3168 = vmatmul.mubr.msk.bf16.gmra.mrb[8].mxu0 %vm7215_vm7, %v7065_v38  ;;  %vm7221_vm7 = vnez %v7144_v56  ;;  %v1008_v25 = vsub.f32 %v7225_v33, %v944_v59  ;;  %v1023_v59 = vsub.f32 %v7230_v31, %v959_v0  ;;  %v1024_v33 = vsub.f32 %v7231_v50, %v960_v32  ;;  %v7237_v0 = vld [vmem:[#allocation86_spill] sm:$0xff]  ;;  %v7238_v31 = vld [vmem:[#allocation87_spill] sm:$0xff] }
 0x85c   :  { %3171 = vmatprep.mubr.msk.bf16.mxu0 %vm7216_vm8, %v7065_v38  ;;  %3216 = vmatpush3.bf16.msra.mxu0 %v7214_v62  ;;  %v7226_v62 = vld [vmem:[#allocation90_spill] sm:$0xff] }
 0x85d   :  { %3247 = vmatprep.subr.bf16.mxu1 %v7217_v47  ;;  %3217 = vmatprep.subr.bf16.mxu0 %v7218_v5  ;;  %v946_v13 = vunpack.c.h.bf16 %v7226_v62 }
 0x85e   :  { %3200 = vmatmul.mubr.msk.bf16.gmra.mrb[8].mxu1 %vm7220_vm15, %v7065_v38  ;;  %vm7229_vm15 = vnez %v7151_v7 }
 0x85f   :  { %3248 = vmatpush3.bf16.msra.mxu1 %v7217_v47  ;;  %3203 = vmatprep.mubr.msk.bf16.mxu1 %vm7221_vm7, %v7065_v38  ;;  %v945_v47 = vunpack.c.l.bf16 %v7226_v62  ;;  %vm7227_vm7 = vnez %v7147_v6  ;;  %v7232_v62 = vld [vmem:[#allocation96_spill] sm:$0xff]  ;;  %v1071_v6 = vpack.c.bf16 %v1008_v25, %v1007_v15  ;;  %v1079_v25 = vpack.c.bf16 %v1024_v33, %v1023_v59  ;;  %v7245_v33 = vld [vmem:[#allocation103_spill] sm:$0xff] }
 0x860   :  { %3218 = vmatpush3.bf16.msra.mxu0 %v7218_v5  ;;  %3249 = vmatprep.subr.bf16.mxu1 %v5062_v12  ;;  %v7228_v5 = vld [vmem:[#allocation91_spill] sm:$0xff]  ;;  %v948_v1 = vunpack.c.h.bf16 %v7232_v62 }
 0x861   :  { %3219 = vmatprep.subr.bf16.mxu0 %v7223_v44  ;;  %v961_v30 = vunpack.c.l.bf16 %v7228_v5  ;;  %v962_v2 = vunpack.c.h.bf16 %v7228_v5  ;;  %v7233_v5 = vld [vmem:[#allocation84_spill] sm:$0xff] }
 0x862   :  { %v1009_v56 = vsub.f32 %v7233_v5, %v945_v47  ;;  %v7240_v47 = vld [vmem:[#allocation92_spill] sm:$0xff]  ;;  %v7241_v5 = vld [vmem:[#allocation93_spill] sm:$0xff] }
 0x863   :  { %3250 = vmatpush3.bf16.msra.mxu1 %v5062_v12  ;;  %3172 = vmatmul.mubr.msk.bf16.gmra.mrb[12].mxu0 %vm7227_vm7, %v7065_v38  ;;  %v947_v12 = vunpack.c.l.bf16 %v7232_v62  ;;  %vm7236_vm7 = vnez %v7157_v58  ;;  %v1025_v32 = vsub.f32 %v7237_v0, %v961_v30  ;;  %v1026_v50 = vsub.f32 %v7238_v31, %v962_v2  ;;  %v7239_v62 = vld [vmem:[#allocation99_spill] sm:$0xff]  ;;  %v7244_v2 = vld [vmem:[#allocation94_spill] sm:$0xff]  ;;  %v7249_v31 = vld [vmem:[#allocation97_spill] sm:$0xff] }
 0x864   :  { %3220 = vmatpush3.bf16.msra.mxu0 %v7223_v44  ;;  %3223 = vmatprep.mubr.msk.bf16.mxu0 %vm7229_vm15, %v7065_v38  ;;  %v7234_v44 = vld [vmem:[#allocation85_spill] sm:$0xff]  ;;  %vm7235_vm15 = vnez %v7154_v35  ;;  %v963_v15 = vunpack.c.l.bf16 %v7239_v62  ;;  %v964_v58 = vunpack.c.h.bf16 %v7239_v62  ;;  %v7242_v35 = vld [vmem:[#allocation102_spill] sm:$0xff]  ;;  %v7248_v0 = vld [vmem:[#allocation95_spill] sm:$0xff] }
 0x865   :  { %3251 = vmatprep.subr.bf16.mxu1 %v5150_v53  ;;  %3221 = vmatprep.subr.bf16.mxu0 %v5100_v17  ;;  %v1010_v37 = vsub.f32 %v7234_v44, %v946_v13  ;;  %v1011_v13 = vsub.f32 %v7240_v47, %v947_v12  ;;  %v1012_v44 = vsub.f32 %v7241_v5, %v948_v1  ;;  %v949_v7 = vunpack.c.l.bf16 %v7242_v35  ;;  %v7250_v62 = vld [vmem:[#allocation98_spill] sm:$0xff] }
 0x866   :  { %3204 = vmatmul.mubr.msk.bf16.gmra.mrb[12].mxu1 %vm7235_vm15, %v7065_v38  ;;  %v950_v30 = vunpack.c.h.bf16 %v7242_v35  ;;  %v1027_v59 = vsub.f32 %v7244_v2, %v963_v15  ;;  %v965_v12 = vunpack.c.l.bf16 %v7245_v33  ;;  %vm7246_vm15 = vnez %v7162_v54 }
 0x867   :  { %3252 = vmatpush3.bf16.msra.mxu1 %v5150_v53  ;;  %3255 = vmatprep.mubr.msk.bf16.mxu1 %vm7236_vm7, %v7065_v38  ;;  %v1072_v53 = vpack.c.bf16 %v1010_v37, %v1009_v56  ;;  %vm7243_vm7 = vnez %v7160_v8  ;;  %v1073_v37 = vpack.c.bf16 %v1012_v44, %v1011_v13  ;;  %v966_v1 = vunpack.c.h.bf16 %v7245_v33  ;;  %v7247_v56 = vld [vmem:[#allocation109_spill] sm:$0xff]  ;;  %v7254_v13 = vld [vmem:[#allocation110_spill] sm:$0xff] }
 0x868   :  { %3222 = vmatpush3.bf16.msra.mxu0 %v5100_v17  ;;  %3253 = vmatprep.subr.bf16.mxu1 %v5243_v22  ;;  %v1080_v17 = vpack.c.bf16 %v1026_v50, %v1025_v32  ;;  %v951_v35 = vunpack.c.l.bf16 %v7247_v56  ;;  %v1028_v32 = vsub.f32 %v7248_v0, %v964_v58  ;;  %v1013_v50 = vsub.f32 %v7249_v31, %v949_v7  ;;  %v7255_v58 = vld [vmem:[#allocation101_spill] sm:$0xff]  ;;  %v7256_v7 = vld [vmem:[#allocation104_spill] sm:$0xff] }
 0x869   :  { %3271 = vmatprep.subr.bf16.mxu0 %v1071_v6  ;;  %v1014_v15 = vsub.f32 %v7250_v62, %v950_v30  ;;  %v967_v5 = vunpack.c.l.bf16 %v7254_v13  ;;  %v1030_v44 = vsub.f32 %v7255_v58, %v966_v1  ;;  %v7257_v30 = vld [vmem:[#allocation105_spill] sm:$0xff]  ;;  %v7258_v31 = vld [vmem:[#allocation112_spill] sm:$0xff]  ;;  %v7261_v1 = vld [vmem:[#allocation119_spill] sm:$0xff] }
 0x86a   :  { %v1015_v2 = vsub.f32 %v7256_v7, %v951_v35  ;;  %v953_v62 = vunpack.c.l.bf16 %v7258_v31  ;;  %v969_v35 = vunpack.c.l.bf16 %v7261_v1 }
 0x86b   :  { %3254 = vmatpush3.bf16.msra.mxu1 %v5243_v22  ;;  %3224 = vmatmul.mubr.msk.bf16.vlgmr.msra.gmra.mrb[16].mxu0 %vm7243_vm7, %v7065_v38  ;;  %v952_v22 = vunpack.c.h.bf16 %v7247_v56  ;;  %vm7251_vm7 = vnez %v7165_v57  ;;  %v968_v56 = vunpack.c.h.bf16 %v7254_v13  ;;  %v1074_v0 = vpack.c.bf16 %v1014_v15, %v1013_v50  ;;  %v7263_v50 = vld [vmem:[#allocation107_spill] sm:$0xff] }
 0x86c   :  { %3227 = vmatprep.mubr.msk.bf16.mxu0 %vm7246_vm15, %v7065_v38  ;;  %3272 = vmatpush3.bf16.msra.mxu0 %v1071_v6  ;;  %vm7252_vm15 = vnez %v7167_v4  ;;  %v7253_v6 = vld [vmem:[#allocation100_spill] sm:$0xff]  ;;  %v954_v4 = vunpack.c.h.bf16 %v7258_v31  ;;  %v7265_v13 = vld [vmem:[#allocation111_spill] sm:$0xff]  ;;  %v7272_v31 = vld [vmem:[#allocation130_spill] sm:$0xff] }
 0x86d   :  { %3303 = vmatprep.subr.bf16.mxu1 %v1079_v25  ;;  %3273 = vmatprep.subr.bf16.mxu0 %v1072_v53  ;;  %v1029_v47 = vsub.f32 %v7253_v6, %v965_v12  ;;  %v1016_v33 = vsub.f32 %v7257_v30, %v952_v22  ;;  %v970_v22 = vunpack.c.h.bf16 %v7261_v1  ;;  %v1032_v15 = vsub.f32 %v7263_v50, %v968_v56  ;;  %v7273_v50 = vld [vmem:[#allocation120_spill] sm:$0xff] }
 0x86e   :  { %3256 = vmatmul.mubr.msk.bf16.vlgmr.msra.gmra.mrb[16].mxu1 %vm7251_vm7, %v7065_v38  ;;  %vm7262_vm7 = vnez %v7173_v61  ;;  %v1018_v58 = vsub.f32 %v7265_v13, %v954_v4  ;;  %v7274_v13 = vld [vmem:[#allocation121_spill] sm:$0xff] }
 0x86f   :  { %3304 = vmatpush3.bf16.msra.mxu1 %v1079_v25  ;;  %3259 = vmatprep.mubr.msk.bf16.mxu1 %vm7252_vm15, %v7065_v38  ;;  %v1081_v25 = vpack.c.bf16 %v1028_v32, %v1027_v59  ;;  %vm7259_vm15 = vnez %v7171_v46  ;;  %v1082_v59 = vpack.c.bf16 %v1030_v44, %v1029_v47  ;;  %v1075_v32 = vpack.c.bf16 %v1016_v33, %v1015_v2  ;;  %v7270_v44 = vld [vmem:[#allocation116_spill] sm:$0xff]  ;;  %v7271_v33 = vld [vmem:[#allocation129_spill] sm:$0xff] }
 0x870   :  { %3274 = vmatpush3.bf16.msra.mxu0 %v1072_v53  ;;  %3305 = vmatprep.subr.bf16.mxu1 %v1080_v17  ;;  %v7260_v53 = vld [vmem:[#allocation106_spill] sm:$0xff]  ;;  %v1034_v2 = vsub.f32 %v7270_v44, %v970_v22  ;;  %v971_v56 = vunpack.c.l.bf16 %v7271_v33  ;;  %v972_v4 = vunpack.c.h.bf16 %v7271_v33 }
 0x871   :  { %3275 = vmatprep.subr.bf16.mxu0 %v1073_v37  ;;  %v1031_v12 = vsub.f32 %v7260_v53, %v967_v5  ;;  %v7266_v5 = vld [vmem:[#allocation123_spill] sm:$0xff]  ;;  %v958_v53 = vunpack.c.h.bf16 %v7272_v31 }
 0x872   :  { %v955_v7 = vunpack.c.l.bf16 %v7266_v5  ;;  %v956_v30 = vunpack.c.h.bf16 %v7266_v5 }
 0x873   :  { %3306 = vmatpush3.bf16.msra.mxu1 %v1080_v17  ;;  %3228 = vmatmul.mubr.msk.bf16.gmra.mrb[20].mxu0 %vm7259_vm15, %v7065_v38  ;;  %v7264_v17 = vld [vmem:[#allocation108_spill] sm:$0xff]  ;;  %vm7267_vm15 = vnez %v7175_v42 }
 0x874   :  { %3231 = vmatprep.mubr.msk.bf16.mxu0 %vm7262_vm7, %v7065_v38  ;;  %3276 = vmatpush3.bf16.msra.mxu0 %v1073_v37  ;;  %v1017_v6 = vsub.f32 %v7264_v17, %v953_v62  ;;  %vm7268_vm7 = vnez %v7177_v3  ;;  %v7269_v37 = vld [vmem:[#allocation115_spill] sm:$0xff]  ;;  %v957_v62 = vunpack.c.l.bf16 %v7272_v31  ;;  %v1019_v17 = vsub.f32 %v7273_v50, %v955_v7  ;;  %v7285_v31 = vld [vmem:[#allocation132_spill] sm:$0xff] }
 0x875   :  { %3307 = vmatprep.subr.bf16.mxu1 %v1081_v25  ;;  %3277 = vmatprep.subr.bf16.mxu0 %v1074_v0  ;;  %v1033_v47 = vsub.f32 %v7269_v37, %v969_v35  ;;  %v1020_v5 = vsub.f32 %v7274_v13, %v956_v30  ;;  %v7276_v35 = vld [vmem:[#allocation125_spill] sm:$0xff]  ;;  %v7277_v37 = vld [vmem:[#allocation134_spill] sm:$0xff] }
 0x876   :  { %3260 = vmatmul.mubr.msk.bf16.gmra.mrb[20].mxu1 %vm7267_vm15, %v7065_v38  ;;  %v1076_v1 = vpack.c.bf16 %v1018_v58, %v1017_v6  ;;  %v1035_v22 = vsub.f32 %v7276_v35, %v971_v56  ;;  %v973_v44 = vunpack.c.l.bf16 %v7277_v37  ;;  %v974_v33 = vunpack.c.h.bf16 %v7277_v37  ;;  %v7280_v6 = vld [vmem:[#allocation127_spill] sm:$0xff]  ;;  %v7281_v58 = vld [vmem:[#allocation128_spill] sm:$0xff] }
 0x877   :  { %3308 = vmatpush3.bf16.msra.mxu1 %v1081_v25  ;;  %3263 = vmatprep.mubr.msk.bf16.mxu1 %vm7268_vm7, %v7065_v38  ;;  %v1083_v25 = vpack.c.bf16 %v1032_v15, %v1031_v12  ;;  %vm7275_vm7 = vnez %v7179_v20  ;;  %vm7278_vm15 = vnez %v7182_v43  ;;  %v7279_v12 = vld [vmem:[#allocation126_spill] sm:$0xff]  ;;  %v1022_v7 = vsub.f32 %v7281_v58, %v958_v53  ;;  %v7287_v35 = vld [vmem:[#allocation135_spill] sm:$0xff] }
 0x878   :  { %3278 = vmatpush3.bf16.msra.mxu0 %v1074_v0  ;;  %3309 = vmatprep.subr.bf16.mxu1 %v1082_v59  ;;  %v1084_v0 = vpack.c.bf16 %v1034_v2, %v1033_v47  ;;  %v1036_v15 = vsub.f32 %v7279_v12, %v972_v4  ;;  %v1077_v30 = vpack.c.bf16 %v1020_v5, %v1019_v17  ;;  %v7282_v47 = vld [vmem:[#allocation137_spill] sm:$0xff]  ;;  %v7348_v43 = vld [vmem:[#allocation14_spill] sm:$0xff] }
 0x879   :  { %3279 = vmatprep.subr.bf16.mxu0 %v1075_v32  ;;  %v975_v2 = vunpack.c.l.bf16 %v7282_v47  ;;  %v976_v56 = vunpack.c.h.bf16 %v7282_v47  ;;  %v7286_v17 = vld [vmem:[#allocation141_spill] sm:$0xff] }
 0x87a   :  { %v1085_v53 = vpack.c.bf16 %v1036_v15, %v1035_v22  ;;  %v991_v13 = vunpack.c.l.bf16 %v7286_v17  ;;  %v992_v5 = vunpack.c.h.bf16 %v7286_v17  ;;  %v993_v22 = vunpack.c.l.bf16 %v5025_v36  ;;  %v7296_v17 = vld [vmem:[#allocation156_spill] sm:$0xff] }
 0x87b   :  { %3310 = vmatpush3.bf16.msra.mxu1 %v1082_v59  ;;  %3232 = vmatmul.mubr.msk.bf16.gmra.mrb[24].mxu0 %vm7275_vm7, %v7065_v38  ;;  %v1021_v59 = vsub.f32 %v7280_v6, %v957_v62  ;;  %vm7283_vm7 = vnez %v7186_v19  ;;  %v1038_v62 = vsub.f32 %v7285_v31, %v974_v33  ;;  %v1039_v37 = vsub.f32 %v7287_v35, %v975_v2  ;;  %v7289_v6 = vld [vmem:[#allocation149_spill] sm:$0xff]  ;;  %v7290_v33 = vld [vmem:[#allocation139_spill] sm:$0xff] }
 0x87c   :  { %3235 = vmatprep.mubr.msk.bf16.mxu0 %vm7278_vm15, %v7065_v38  ;;  %3280 = vmatpush3.bf16.msra.mxu0 %v1075_v32  ;;  %v7284_v32 = vld [vmem:[#allocation131_spill] sm:$0xff]  ;;  %v977_v58 = vunpack.c.l.bf16 %v7289_v6  ;;  %v978_v47 = vunpack.c.h.bf16 %v7289_v6  ;;  %v1055_v15 = vsub.f32 %v7290_v33, %v991_v13  ;;  %v996_v6 = vunpack.c.h.bf16 %v5052_v29 }
 0x87d   :  { %3311 = vmatprep.subr.bf16.mxu1 %v1083_v25  ;;  %3281 = vmatprep.subr.bf16.mxu0 %v1076_v1  ;;  %v1037_v4 = vsub.f32 %v7284_v32, %v973_v44  ;;  %v1078_v50 = vpack.c.bf16 %v1022_v7, %v1021_v59  ;;  %v994_v44 = vunpack.c.h.bf16 %v5025_v36  ;;  %v7291_v59 = vld [vmem:[#allocation140_spill] sm:$0xff]  ;;  %v7292_v2 = vld [vmem:[#allocation159_spill] sm:$0xff] }
 0x87e   :  { %3264 = vmatmul.mubr.msk.bf16.gmra.mrb[24].mxu1 %vm7283_vm7, %v7065_v38  ;;  %v1056_v7 = vsub.f32 %v7291_v59, %v992_v5  ;;  %v7297_v5 = vld [vmem:[#allocation150_spill] sm:$0xff]  ;;  %v7299_v33 = vld [vmem:[#allocation163_spill] sm:$0xff]  ;;  %v7300_v59 = vld [vmem:[#allocation165_spill] sm:$0xff] }
 0x87f   :  { %3312 = vmatpush3.bf16.msra.mxu1 %v1083_v25  ;;  %3267 = vmatprep.mubr.msk.bf16.mxu1 %vm5690_vm9, %v7065_v38  ;;  %v7288_v25 = vld [vmem:[#allocation136_spill] sm:$0xff]  ;;  %v1058_v13 = vsub.f32 %v7296_v17, %v994_v44  ;;  %v998_v44 = vunpack.c.h.bf16 %v5175_v52 }
 0x880   :  { %3282 = vmatpush3.bf16.msra.mxu0 %v1076_v1  ;;  %3313 = vmatprep.subr.bf16.mxu1 %v1084_v0  ;;  %v1040_v12 = vsub.f32 %v7288_v25, %v976_v56  ;;  %v1086_v1 = vpack.c.bf16 %v1038_v62, %v1037_v4  ;;  %v980_v56 = vunpack.c.h.bf16 %v7292_v2  ;;  %v7293_v4 = vld [vmem:[#allocation144_spill] sm:$0xff]  ;;  %v7294_v62 = vld [vmem:[#allocation145_spill] sm:$0xff] }
 0x881   :  { %3283 = vmatprep.subr.bf16.mxu0 %v1077_v30  ;;  %v1041_v31 = vsub.f32 %v7293_v4, %v977_v58  ;;  %v1042_v36 = vsub.f32 %v7294_v62, %v978_v47  ;;  %v982_v47 = vunpack.c.h.bf16 %v5032_v9  ;;  %v1060_v9 = vsub.f32 %v7300_v59, %v996_v6  ;;  %v7306_v17 = vld [vmem:[#allocation168_spill] sm:$0xff]  ;;  %v7309_v6 = vld [vmem:[#allocation175_spill] sm:$0xff] }
 0x882   :  { %v1087_v32 = vpack.c.bf16 %v1040_v12, %v1039_v37  ;;  %v7298_v37 = vld [vmem:[#allocation152_spill] sm:$0xff]  ;;  %v995_v12 = vunpack.c.l.bf16 %v5052_v29  ;;  %v1000_v62 = vunpack.c.h.bf16 %v5199_v23  ;;  %v1003_v59 = vunpack.c.l.bf16 %v5327_v40 }
 0x883   :  { %3314 = vmatpush3.bf16.msra.mxu1 %v1084_v0  ;;  %3236 = vmatmul.mubr.msk.bf16.gmra.mrb[28].mxu0 %vm5706_vm11, %v7065_v38  ;;  %v979_v0 = vunpack.c.l.bf16 %v7292_v2  ;;  %v1044_v25 = vsub.f32 %v7298_v37, %v980_v56  ;;  %v1088_v58 = vpack.c.bf16 %v1042_v36, %v1041_v31  ;;  %v999_v31 = vunpack.c.l.bf16 %v5199_v23 }
 0x884   :  { %3284 = vmatpush3.bf16.msra.mxu0 %v1077_v30  ;;  %3287 = vmatprep.mubr.msk.bf16.mxu0 %vm4850_vm10, %v7065_v38  ;;  %v1057_v30 = vsub.f32 %v7295_v49, %v993_v22  ;;  %v997_v22 = vunpack.c.l.bf16 %v5175_v52  ;;  %v984_v52 = vunpack.c.h.bf16 %v5078_v18  ;;  %v1001_v23 = vunpack.c.l.bf16 %v5296_v26 }
 0x885   :  { %3315 = vmatprep.subr.bf16.mxu1 %v1085_v53  ;;  %3285 = vmatprep.subr.bf16.mxu0 %v1078_v50  ;;  %v1043_v35 = vsub.f32 %v7297_v5, %v979_v0  ;;  %v983_v0 = vunpack.c.l.bf16 %v5078_v18  ;;  %v985_v18 = vunpack.c.l.bf16 %v5179_v41  ;;  %v7308_v41 = vld [vmem:[#allocation174_spill] sm:$0xff]  ;;  %vm7316_vm10 = vnez %v7133_v21 }
 0x886   :  { %3268 = vmatmul.mubr.msk.bf16.gmra.mrb[28].mxu1 %vm5722_vm2, %v7065_v38  ;;  %v1061_v56 = vsub.f32 %v7303_v16, %v997_v22  ;;  %v7318_v16 = vld [vmem:[#allocation185_spill] sm:$0xff] }
 0x887   :  { %3316 = vmatpush3.bf16.msra.mxu1 %v1085_v53  ;;  %3319 = vmatprep.mubr.msk.bf16.mxu1 %vm4995_vm5, %v7065_v38  ;;  %v1095_v53 = vpack.c.bf16 %v1056_v7, %v1055_v15  ;;  %v1089_v29 = vpack.c.bf16 %v1044_v25, %v1043_v35  ;;  %v1059_v15 = vsub.f32 %v7299_v33, %v995_v12  ;;  %v7302_v7 = vld [vmem:[#allocation161_spill] sm:$0xff]  ;;  %v1002_v25 = vunpack.c.h.bf16 %v5296_v26 }
 0x888   :  { %3286 = vmatpush3.bf16.msra.mxu0 %v1078_v50  ;;  %3317 = vmatprep.subr.bf16.mxu1 %v1086_v1  ;;  %v1096_v50 = vpack.c.bf16 %v1058_v13, %v1057_v30  ;;  %v1046_v2 = vsub.f32 %v7302_v7, %v982_v47  ;;  %v7305_v30 = vld [vmem:[#allocation167_spill] sm:$0xff]  ;;  %v1048_v13 = vsub.f32 %v7306_v17, %v984_v52  ;;  %v7307_v35 = vld [vmem:[#allocation173_spill] sm:$0xff]  ;;  %v7311_v47 = vld [vmem:[#allocation180_spill] sm:$0xff] }
 0x889   :  { %3335 = vmatprep.subr.bf16.mxu0 %v1087_v32  ;;  %v1097_v36 = vpack.c.bf16 %v1060_v9, %v1059_v15  ;;  %v1047_v34 = vsub.f32 %v7305_v30, %v983_v0  ;;  %v1063_v37 = vsub.f32 %v7307_v35, %v999_v31  ;;  %v1064_v12 = vsub.f32 %v7308_v41, %v1000_v62  ;;  %v7319_v31 = vld [vmem:[#allocation181_spill] sm:$0xff]  ;;  %v7320_v62 = vld [vmem:[#allocation182_spill] sm:$0xff] }
 0x88a   :  { %v988_v22 = vunpack.c.h.bf16 %v7311_v47  ;;  %v1065_v26 = vsub.f32 %v7312_v63, %v1001_v23  ;;  %v1004_v9 = vunpack.c.h.bf16 %v5327_v40  ;;  %v7317_v40 = vld [vmem:[#allocation184_spill] sm:$0xff]  ;;  %v1053_v21 = vsub.f32 %v7319_v31, %v989_v14  ;;  %v7333_v23 = vld [vmem:[#allocation191_spill] sm:$0xff] }
 0x88b   :  { %3318 = vmatpush3.bf16.msra.mxu1 %v1086_v1  ;;  %3288 = vmatmul.mubr.msk.bf16.vlgmr.msra.gmra.mrb[0].mxu0 %vm4893_vm0, %v7065_v38  ;;  %v7301_v1 = vld [vmem:[#allocation160_spill] sm:$0xff]  ;;  %v1091_v39 = vpack.c.bf16 %v1048_v13, %v1047_v34  ;;  %v1099_v33 = vpack.c.bf16 %v1064_v12, %v1063_v37  ;;  %v1067_v52 = vsub.f32 %v7317_v40, %v1003_v59  ;;  %v7327_v13 = vld [vmem:[#allocation189_spill] sm:$0xff]  ;;  %v7331_v37 = vld [vmem:[#allocation190_spill] sm:$0xff] }
 0x88c   :  { %3291 = vmatprep.mubr.msk.bf16.mxu0 %vm4941_vm13, %v7065_v38  ;;  %3336 = vmatpush3.bf16.msra.mxu0 %v1087_v32  ;;  %v1045_v10 = vsub.f32 %v7301_v1, %v981_v55  ;;  %v7304_v32 = vld [vmem:[#allocation172_spill] sm:$0xff]  ;;  %vm7324_vm13 = vnez %v7323_v51  ;;  %vm7328_vm5 = vnez %v7327_v13  ;;  %v7355_v59 = vld [vmem:[#allocation15_spill] sm:$0xff]  ;;  %v7362_v51 = vld [vmem:[#allocation21_spill] sm:$0xff] }
 0x88d   :  { %3367 = vmatprep.subr.bf16.mxu1 %v1095_v53  ;;  %3337 = vmatprep.subr.bf16.mxu0 %v1088_v58  ;;  %v1062_v4 = vsub.f32 %v7304_v32, %v998_v44  ;;  %v7313_v44 = vld [vmem:[#allocation183_spill] sm:$0xff]  ;;  %v1005_v32 = vunpack.c.l.bf16 %v5378_v11  ;;  %v7350_v12 = vld [vmem:[#allocation12_spill] sm:$0xff] }
 0x88e   :  { %3320 = vmatmul.mubr.msk.bf16.vlgmr.msra.gmra.mrb[0].mxu1 %vm5046_vm14, %v7065_v38  ;;  %v1090_v49 = vpack.c.bf16 %v1046_v2, %v1045_v10  ;;  %v7315_v10 = vld [vmem:[#allocation178_spill] sm:$0xff]  ;;  %v990_v2 = vunpack.c.h.bf16 %v5285_v27  ;;  %v7353_v63 = vld [vmem:[#allocation28_spill] sm:$0xff] }
 0x88f   :  { %3368 = vmatpush3.bf16.msra.mxu1 %v1095_v53  ;;  %3323 = vmatprep.mubr.msk.bf16.mxu1 %vm7204_vm3, %v7065_v38  ;;  %v1098_v5 = vpack.c.bf16 %v1062_v4, %v1061_v56  ;;  %v1049_v53 = vsub.f32 %v7309_v6, %v985_v18  ;;  %v1052_v7 = vsub.f32 %v7315_v10, %v988_v22  ;;  %v1006_v4 = vunpack.c.h.bf16 %v5378_v11  ;;  %v7358_v40 = vld [vmem:[#allocation16_spill] sm:$0xff] }
 0x890   :  { %3338 = vmatpush3.bf16.msra.mxu0 %v1088_v58  ;;  %3369 = vmatprep.subr.bf16.mxu1 %v1096_v50  ;;  %v7310_v58 = vld [vmem:[#allocation176_spill] sm:$0xff]  ;;  %v1068_v56 = vsub.f32 %v7318_v16, %v1004_v9  ;;  %v1054_v18 = vsub.f32 %v7320_v62, %v990_v2  ;;  %vm7332_vm3 = vnez %v7331_v37  ;;  %v7357_v2 = vld [vmem:[#allocation33_spill] sm:$0xff] }
 0x891   :  { %3339 = vmatprep.subr.bf16.mxu0 %v1089_v29  ;;  %v1050_v55 = vsub.f32 %v7310_v58, %v986_v45  ;;  %v7321_v45 = vld [vmem:[#allocation76_spill] sm:$0xff]  ;;  %v7351_v58 = vld [vmem:[#allocation27_spill] sm:$0xff]  ;;  %v7365_v37 = vld [vmem:[#allocation37_spill] sm:$0xff] }
 0x892   :  { %vm7322_vm0 = vnez %v7321_v45  ;;  %v1101_v34 = vpack.c.bf16 %v1068_v56, %v1067_v52  ;;  %v1094_v17 = vpack.c.bf16 %v1054_v18, %v1053_v21  ;;  %v7359_v56 = vld [vmem:[#allocation31_spill] sm:$0xff]  ;;  %v7361_v62 = vld [vmem:[#allocation32_spill] sm:$0xff] }
 0x893   :  { %3370 = vmatpush3.bf16.msra.mxu1 %v1096_v50  ;;  %3292 = vmatmul.mubr.msk.bf16.gmra.mrb[4].mxu0 %vm7207_vm1, %v7065_v38  ;;  %v987_v50 = vunpack.c.l.bf16 %v7311_v47  ;;  %v1092_v15 = vpack.c.bf16 %v1050_v55, %v1049_v53  ;;  %vm7334_vm1 = vnez %v7333_v23  ;;  %v7352_v47 = vld [vmem:[#allocation30_spill] sm:$0xff] }
 0x894   :  { %3295 = vmatprep.mubr.msk.bf16.mxu0 %vm7208_vm4, %v7065_v38  ;;  %3340 = vmatpush3.bf16.msra.mxu0 %v1089_v29  ;;  %v1066_v29 = vsub.f32 %v7313_v44, %v1002_v25  ;;  %vm7335_vm4 = vnez %v7160_v8  ;;  %v7338_v25 = vld [vmem:[#allocation78_spill] sm:$0xff] }
 0x895   :  { %3371 = vmatprep.subr.bf16.mxu1 %v1097_v36  ;;  %3341 = vmatprep.subr.bf16.mxu0 %v1090_v49  ;;  %v1051_v1 = vsub.f32 %v7314_v28, %v987_v50  ;;  %v7345_v8 = vld [vmem:[#allocation158_spill] sm:$0xff] }
 0x896   :  { %3324 = vmatmul.mubr.msk.bf16.gmra.mrb[4].mxu1 %vm7211_vm6, %v7065_v38  ;;  %v1100_v0 = vpack.c.bf16 %v1066_v29, %v1065_v26  ;;  %vm7336_vm6 = vnez %v7162_v54  ;;  %v7354_v29 = vld [vmem:[#allocation17_spill] sm:$0xff] }
 0x897   :  { %3372 = vmatpush3.bf16.msra.mxu1 %v1097_v36  ;;  %3327 = vmatprep.mubr.msk.bf16.mxu1 %vm7212_vm12, %v7065_v38  ;;  %v1093_v27 = vpack.c.bf16 %v1052_v7, %v1051_v1  ;;  %v7325_v36 = vld [vmem:[#allocation186_spill] sm:$0xff]  ;;  %vm7337_vm12 = vnez %v7165_v57 }
 0x898   :  { %3342 = vmatpush3.bf16.msra.mxu0 %v1090_v49  ;;  %3373 = vmatprep.subr.bf16.mxu1 %v1098_v5  ;;  %v1069_v11 = vsub.f32 %v7325_v36, %v1005_v32  ;;  %v7326_v49 = vld [vmem:[#allocation187_spill] sm:$0xff]  ;;  %v7356_v1 = vld [vmem:[#allocation18_spill] sm:$0xff] }
 0x899   :  { %3343 = vmatprep.subr.bf16.mxu0 %v1091_v39  ;;  %v1070_v30 = vsub.f32 %v7326_v49, %v1006_v4  ;;  %v7363_v49 = vld [vmem:[#allocation19_spill] sm:$0xff] }
 0x89b   :  { %3374 = vmatpush3.bf16.msra.mxu1 %v1098_v5  ;;  %3296 = vmatmul.mubr.msk.bf16.gmra.mrb[8].mxu0 %vm7316_vm10, %v7065_v38  ;;  %v7329_v5 = vld [vmem:[#allocation77_spill] sm:$0xff]  ;;  %v1102_v35 = vpack.c.bf16 %v1070_v30, %v1069_v11  ;;  %vm7340_vm10 = vnez %v7171_v46 }
 0x89c   :  { %3299 = vmatprep.mubr.msk.bf16.mxu0 %vm7216_vm8, %v7065_v38  ;;  %3344 = vmatpush3.bf16.msra.mxu0 %v1091_v39  ;;  %vm7330_vm14 = vnez %v7329_v5  ;;  %vm7339_vm8 = vnez %v7338_v25  ;;  %v7346_v46 = vld [vmem:[#allocation13_spill] sm:$0xff]  ;;  %v7366_v25 = vld [vmem:[#allocation20_spill] sm:$0xff] }
 0x89d   :  { %3375 = vmatprep.subr.bf16.mxu1 %v1099_v33  ;;  %3345 = vmatprep.subr.bf16.mxu0 %v1092_v15 }
 0x89e   :  { %3328 = vmatmul.mubr.msk.bf16.gmra.mrb[8].mxu1 %vm7322_vm0, %v7065_v38  ;;  %vm7341_vm0 = vnez %v7173_v61 }
 0x89f   :  { %3376 = vmatpush3.bf16.msra.mxu1 %v1099_v33  ;;  %3331 = vmatprep.mubr.msk.bf16.mxu1 %vm7324_vm13, %v7065_v38  ;;  %vm7342_vm13 = vnez %v7175_v42 }
 0x8a0   :  { %3346 = vmatpush3.bf16.msra.mxu0 %v1092_v15  ;;  %3377 = vmatprep.subr.bf16.mxu1 %v1100_v0 }
 0x8a1   :  { %3347 = vmatprep.subr.bf16.mxu0 %v1093_v27 }
 0x8a3   :  { %3378 = vmatpush3.bf16.msra.mxu1 %v1100_v0  ;;  %3300 = vmatmul.mubr.msk.bf16.gmra.mrb[12].mxu0 %vm7328_vm5, %v7065_v38  ;;  %vm7343_vm5 = vnez %v7177_v3  ;;  %v7347_v3 = vld [vmem:[#allocation11_spill] sm:$0xff] }
 0x8a4   :  { %3348 = vmatpush3.bf16.msra.mxu0 %v1093_v27  ;;  %3351 = vmatprep.mubr.msk.bf16.mxu0 %vm7330_vm14, %v7065_v38  ;;  %vm7344_vm14 = vnez %v7179_v20  ;;  %v7360_v27 = vld [vmem:[#allocation34_spill] sm:$0xff] }
 0x8a5   :  { %3379 = vmatprep.subr.bf16.mxu1 %v1101_v34  ;;  %3349 = vmatprep.subr.bf16.mxu0 %v1094_v17 }
 0x8a6   :  { %3332 = vmatmul.mubr.msk.bf16.gmra.mrb[12].mxu1 %vm7332_vm3, %v7065_v38  ;;  %vm2392_vm3 = vcmp.eq.s32.totalorder %v7345_v8, 1  ;;  %v7377_v8 = vld [vmem:[#allocation42_spill] sm:$0xff] }
 0x8a7   :  { %3380 = vmatpush3.bf16.msra.mxu1 %v1101_v34  ;;  %3383 = vmatprep.mubr.msk.bf16.mxu1 %vm7334_vm1, %v7065_v38 }
 0x8a8   :  { %3350 = vmatpush3.bf16.msra.mxu0 %v1094_v17  ;;  %3381 = vmatprep.subr.bf16.mxu1 %v1102_v35  ;;  %v7364_v17 = vld [vmem:[#allocation22_spill] sm:$0xff] }
 0x8ab   :  { %3382 = vmatpush3.bf16.msra.mxu1 %v1102_v35  ;;  %3352 = vmatmul.mubr.msk.bf16.vlgmr.msra.gmra.mrb[16].mxu0 %vm7335_vm4, %v7065_v38 }
 0x8ac   :  { %3355 = vmatprep.mubr.msk.bf16.mxu0 %vm7336_vm6, %v7065_v38 }
 0x8ae   :  { %3384 = vmatmul.mubr.msk.bf16.vlgmr.msra.gmra.mrb[16].mxu1 %vm7337_vm12, %v7065_v38 }
 0x8af   :  { %3387 = vmatprep.mubr.msk.bf16.mxu1 %vm7339_vm8, %v7065_v38 }
 0x8b3   :  { %3356 = vmatmul.mubr.msk.bf16.gmra.mrb[20].mxu0 %vm7340_vm10, %v7065_v38 }
 0x8b4   :  { %3359 = vmatprep.mubr.msk.bf16.mxu0 %vm7341_vm0, %v7065_v38 }
 0x8b6   :  { %3388 = vmatmul.mubr.msk.bf16.gmra.mrb[20].mxu1 %vm7342_vm13, %v7065_v38 }
 0x8b7   :  { %3391 = vmatprep.mubr.msk.bf16.mxu1 %vm7343_vm5, %v7065_v38 }
 0x8bb   :  { %3360 = vmatmul.mubr.msk.bf16.gmra.mrb[24].mxu0 %vm7344_vm14, %v7065_v38 }
 0x8bc   :  { %3363 = vmatprep.mubr.msk.bf16.mxu0 %vm7278_vm15, %v7065_v38  ;;  %vm2460_vm15 = vcmask 130048  }
 0x8be   :  { %3392 = vmatmul.mubr.msk.bf16.gmra.mrb[24].mxu1 %vm7283_vm7, %v7065_v38 }
 0x8bf   :  { %3395 = vmatprep.mubr.msk.bf16.mxu1 %vm5690_vm9, %v7065_v38 }
 0x8c3   :  { %3364 = vmatmul.mubr.msk.bf16.gmra.mrb[28].mxu0 %vm5706_vm11, %v7065_v38 }
 0x8c6   :  { %3396 = vmatmul.mubr.msk.bf16.gmra.mrb[28].mxu1 %vm5722_vm2, %v7065_v38  ;;  %v6084_v54 = vpop.permute.xlu1 %2384 }
 0x8c7   :  { %vm2393_vm9 = vcmp.eq.s32.totalorder %v6084_v54, 1  ;;  %v7380_v54 = vld [vmem:[#allocation43_spill] sm:$0xff] }
 0x95e   :  { %v3289_v57 = vpop.f32.mrb[0].mxu0 }
 0x95f   :  { %v2398_v61 = vsel %vm2392_vm3, %v3289_v57, %v7346_v46  ;;  %v1913_v42 = vpop.f32.mrb[1].mxu0 }
 0x960   :  { %2463 = vst.msk [vmem:[%s6567_s4 + $0x10] sm:$0xff] %vm2460_vm15, %v2398_v61  ;;  %v2396_v38 = vsel %vm2392_vm3, %v1913_v42, %v7347_v3  ;;  %v3290_v20 = vpop.f32.mrb[2].mxu0  ;;  %v7367_v61 = vld [vmem:[#allocation35_spill] sm:$0xff] }
 0x961   :  { %2461 = vst.msk [vmem:[%s6567_s4] sm:$0xff] %vm2460_vm15, %v2396_v38  ;;  %v2399_v19 = vsel %vm2392_vm3, %v3290_v20, %v7348_v43  ;;  %v3321_v24 = vpop.f32.mrb[0].mxu1  ;;  %v1916_v48 = vpop.f32.mrb[3].mxu0  ;;  %v7368_v38 = vld [vmem:[#allocation38_spill] sm:$0xff] }
 0x962   :  { %2464 = vst.msk [vmem:[%s6567_s4 + $0x18] sm:$0xff] %vm2460_vm15, %v2399_v19  ;;  %v2414_v41 = vsel %vm2393_vm9, %v3321_v24, %v7349_v60  ;;  %v2397_v6 = vsel %vm2392_vm3, %v1916_v48, %v7350_v12  ;;  %v2010_v53 = vpop.f32.mrb[1].mxu1  ;;  %v7369_v19 = vld [vmem:[#allocation36_spill] sm:$0xff]  ;;  %v7370_v60 = vld [vmem:[#allocation25_spill] sm:$0xff] }
 0x963   :  { %2479 = vst.msk [vmem:[%s6567_s4 + $0x90] sm:$0xff] %vm2460_vm15, %v2414_v41  ;;  %2462 = vst.msk [vmem:[%s6567_s4 + $0x8] sm:$0xff] %vm2460_vm15, %v2397_v6  ;;  %v2412_v55 = vsel %vm2393_vm9, %v2010_v53, %v7351_v58  ;;  %v3322_v39 = vpop.f32.mrb[2].mxu1  ;;  %v7371_v6 = vld [vmem:[#allocation23_spill] sm:$0xff] }
 0x964   :  { %2477 = vst.msk [vmem:[%s6567_s4 + $0x80] sm:$0xff] %vm2460_vm15, %v2412_v55  ;;  %v2415_v50 = vsel %vm2393_vm9, %v3322_v39, %v7352_v47  ;;  %v2013_v22 = vpop.f32.mrb[3].mxu1  ;;  %v7372_v55 = vld [vmem:[#allocation26_spill] sm:$0xff] }
 0x965   :  { %2480 = vst.msk [vmem:[%s6567_s4 + $0x98] sm:$0xff] %vm2460_vm15, %v2415_v50  ;;  %v2413_v26 = vsel %vm2393_vm9, %v2013_v22, %v7353_v63  ;;  %v7373_v22 = vld [vmem:[#allocation41_spill] sm:$0xff] }
 0x966   :  { %2478 = vst.msk [vmem:[%s6567_s4 + $0x88] sm:$0xff] %vm2460_vm15, %v2413_v26  ;;  %v3293_v44 = vpop.f32.mrb[4].mxu0  ;;  %v7374_v26 = vld [vmem:[#allocation24_spill] sm:$0xff] }
 0x967   :  { %v2402_v33 = vsel %vm2392_vm3, %v3293_v44, %v7354_v29  ;;  %v1929_v15 = vpop.f32.mrb[5].mxu0 }
 0x968   :  { %2467 = vst.msk [vmem:[%s6567_s4 + $0x30] sm:$0xff] %vm2460_vm15, %v2402_v33  ;;  %v2400_v9 = vsel %vm2392_vm3, %v1929_v15, %v7355_v59  ;;  %v3294_v28 = vpop.f32.mrb[6].mxu0  ;;  %v7375_v33 = vld [vmem:[#allocation39_spill] sm:$0xff] }
 0x969   :  { %2465 = vst.msk [vmem:[%s6567_s4 + $0x20] sm:$0xff] %vm2460_vm15, %v2400_v9  ;;  %v2403_v10 = vsel %vm2392_vm3, %v3294_v28, %v7356_v1  ;;  %v3325_v7 = vpop.f32.mrb[4].mxu1  ;;  %v1932_v14 = vpop.f32.mrb[7].mxu0  ;;  %v7376_v9 = vld [vmem:[#allocation170_spill] sm:$0xff] }
 0x96a   :  { %2468 = vst.msk [vmem:[%s6567_s4 + $0x38] sm:$0xff] %vm2460_vm15, %v2403_v10  ;;  %v2418_v0 = vsel %vm2393_vm9, %v3325_v7, %v7357_v2  ;;  %v2401_v52 = vsel %vm2392_vm3, %v1932_v14, %v7358_v40  ;;  %v2026_v16 = vpop.f32.mrb[5].mxu1  ;;  %vm2394_vm11 = vcmp.eq.s32.totalorder %v7376_v9, 1  ;;  %v6301_v10 = vpop.permute.xlu1 %2390  ;;  %v7378_v7 = vld [vmem:[#allocation40_spill] sm:$0xff]  ;;  %v7409_v9 = vld [vmem:[#allocation74_spill] sm:$0xff] }
 0x96b   :  { %2483 = vst.msk [vmem:[%s6567_s4 + $0xb0] sm:$0xff] %vm2460_vm15, %v2418_v0  ;;  %2466 = vst.msk [vmem:[%s6567_s4 + $0x28] sm:$0xff] %vm2460_vm15, %v2401_v52  ;;  %v2416_v32 = vsel %vm2393_vm9, %v2026_v16, %v7359_v56  ;;  %v3326_v4 = vpop.f32.mrb[6].mxu1  ;;  %v7379_v0 = vld [vmem:[#allocation45_spill] sm:$0xff]  ;;  %vm2395_vm2 = vcmp.eq.s32.totalorder %v6301_v10, 1 }
 0x96c   :  { %2481 = vst.msk [vmem:[%s6567_s4 + $0xa0] sm:$0xff] %vm2460_vm15, %v2416_v32  ;;  %v2419_v31 = vsel %vm2393_vm9, %v3326_v4, %v7360_v27  ;;  %v2029_v21 = vpop.f32.mrb[7].mxu1  ;;  %v7381_v32 = vld [vmem:[#allocation46_spill] sm:$0xff] }
 0x96d   :  { %2484 = vst.msk [vmem:[%s6567_s4 + $0xb8] sm:$0xff] %vm2460_vm15, %v2419_v31  ;;  %v2417_v18 = vsel %vm2393_vm9, %v2029_v21, %v7361_v62  ;;  %v7382_v21 = vld [vmem:[#allocation61_spill] sm:$0xff] }
 0x96e   :  { %2482 = vst.msk [vmem:[%s6567_s4 + $0xa8] sm:$0xff] %vm2460_vm15, %v2417_v18  ;;  %v3297_v45 = vpop.f32.mrb[8].mxu0  ;;  %v7383_v18 = vld [vmem:[#allocation44_spill] sm:$0xff] }
 0x96f   :  { %v2406_v36 = vsel %vm2392_vm3, %v3297_v45, %v7362_v51  ;;  %v1945_v11 = vpop.f32.mrb[9].mxu0 }
 0x970   :  { %2471 = vst.msk [vmem:[%s6567_s4 + $0x50] sm:$0xff] %vm2460_vm15, %v2406_v36  ;;  %v2404_v30 = vsel %vm2392_vm3, %v1945_v11, %v7363_v49  ;;  %v3298_v34 = vpop.f32.mrb[10].mxu0  ;;  %v7384_v36 = vld [vmem:[#allocation59_spill] sm:$0xff] }
 0x971   :  { %2469 = vst.msk [vmem:[%s6567_s4 + $0x40] sm:$0xff] %vm2460_vm15, %v2404_v30  ;;  %v2407_v13 = vsel %vm2392_vm3, %v3298_v34, %v7364_v17  ;;  %v3329_v5 = vpop.f32.mrb[8].mxu1  ;;  %v1948_v35 = vpop.f32.mrb[11].mxu0  ;;  %v7385_v30 = vld [vmem:[#allocation62_spill] sm:$0xff] }
 0x972   :  { %2472 = vst.msk [vmem:[%s6567_s4 + $0x58] sm:$0xff] %vm2460_vm15, %v2407_v13  ;;  %v2422_v23 = vsel %vm2393_vm9, %v3329_v5, %v7365_v37  ;;  %v2405_v57 = vsel %vm2392_vm3, %v1948_v35, %v7366_v25  ;;  %v2042_v46 = vpop.f32.mrb[9].mxu1  ;;  %v7386_v13 = vld [vmem:[#allocation60_spill] sm:$0xff]  ;;  %v7387_v37 = vld [vmem:[#allocation49_spill] sm:$0xff] }
 0x973   :  { %2487 = vst.msk [vmem:[%s6567_s4 + $0xd0] sm:$0xff] %vm2460_vm15, %v2422_v23  ;;  %2470 = vst.msk [vmem:[%s6567_s4 + $0x48] sm:$0xff] %vm2460_vm15, %v2405_v57  ;;  %v2420_v42 = vsel %vm2393_vm9, %v2042_v46, %v7367_v61  ;;  %v3330_v3 = vpop.f32.mrb[10].mxu1  ;;  %v7388_v57 = vld [vmem:[#allocation47_spill] sm:$0xff] }
 0x974   :  { %2485 = vst.msk [vmem:[%s6567_s4 + $0xc0] sm:$0xff] %vm2460_vm15, %v2420_v42  ;;  %v2423_v20 = vsel %vm2393_vm9, %v3330_v3, %v7368_v38  ;;  %v2045_v43 = vpop.f32.mrb[11].mxu1  ;;  %v7389_v42 = vld [vmem:[#allocation50_spill] sm:$0xff] }
 0x975   :  { %2488 = vst.msk [vmem:[%s6567_s4 + $0xd8] sm:$0xff] %vm2460_vm15, %v2423_v20  ;;  %v2421_v24 = vsel %vm2393_vm9, %v2045_v43, %v7369_v19  ;;  %v7390_v43 = vld [vmem:[#allocation65_spill] sm:$0xff] }
 0x976   :  { %2486 = vst.msk [vmem:[%s6567_s4 + $0xc8] sm:$0xff] %vm2460_vm15, %v2421_v24  ;;  %v3301_v48 = vpop.f32.mrb[12].mxu0  ;;  %v7391_v24 = vld [vmem:[#allocation48_spill] sm:$0xff] }
 0x977   :  { %v2410_v41 = vsel %vm2392_vm3, %v3301_v48, %v7370_v60  ;;  %v1961_v12 = vpop.f32.mrb[13].mxu0 }
 0x978   :  { %2475 = vst.msk [vmem:[%s6567_s4 + $0x70] sm:$0xff] %vm2460_vm15, %v2410_v41  ;;  %v2408_v53 = vsel %vm2392_vm3, %v1961_v12, %v7371_v6  ;;  %v3302_v58 = vpop.f32.mrb[14].mxu0  ;;  %v7392_v41 = vld [vmem:[#allocation63_spill] sm:$0xff] }
 0x979   :  { %2473 = vst.msk [vmem:[%s6567_s4 + $0x60] sm:$0xff] %vm2460_vm15, %v2408_v53  ;;  %v2411_v39 = vsel %vm2392_vm3, %v3302_v58, %v7372_v55  ;;  %v3333_v47 = vpop.f32.mrb[12].mxu1  ;;  %v1964_v50 = vpop.f32.mrb[15].mxu0  ;;  %v7393_v53 = vld [vmem:[#allocation66_spill] sm:$0xff] }
 0x97a   :  { %2476 = vst.msk [vmem:[%s6567_s4 + $0x78] sm:$0xff] %vm2460_vm15, %v2411_v39  ;;  %v2426_v63 = vsel %vm2393_vm9, %v3333_v47, %v7373_v22  ;;  %v2409_v44 = vsel %vm2392_vm3, %v1964_v50, %v7374_v26  ;;  %v2058_v29 = vpop.f32.mrb[13].mxu1  ;;  %v7394_v39 = vld [vmem:[#allocation64_spill] sm:$0xff]  ;;  %v7395_v22 = vld [vmem:[#allocation53_spill] sm:$0xff] }
 0x97b   :  { %2491 = vst.msk [vmem:[%s6567_s4 + $0xf0] sm:$0xff] %vm2460_vm15, %v2426_v63  ;;  %2474 = vst.msk [vmem:[%s6567_s4 + $0x68] sm:$0xff] %vm2460_vm15, %v2409_v44  ;;  %v2424_v15 = vsel %vm2393_vm9, %v2058_v29, %v7375_v33  ;;  %v3334_v59 = vpop.f32.mrb[14].mxu1  ;;  %v7396_v44 = vld [vmem:[#allocation51_spill] sm:$0xff] }
 0x97c   :  { %2489 = vst.msk [vmem:[%s6567_s4 + $0xe0] sm:$0xff] %vm2460_vm15, %v2424_v15  ;;  %v2427_v28 = vsel %vm2393_vm9, %v3334_v59, %v7377_v8  ;;  %v2061_v1 = vpop.f32.mrb[15].mxu1  ;;  %v7397_v15 = vld [vmem:[#allocation54_spill] sm:$0xff] }
 0x97d   :  { %2492 = vst.msk [vmem:[%s6567_s4 + $0xf8] sm:$0xff] %vm2460_vm15, %v2427_v28  ;;  %v2425_v14 = vsel %vm2393_vm9, %v2061_v1, %v7378_v7  ;;  %v7398_v1 = vld [vmem:[#allocation69_spill] sm:$0xff] }
 0x97e   :  { %2490 = vst.msk [vmem:[%s6567_s4 + $0xe8] sm:$0xff] %vm2460_vm15, %v2425_v14  ;;  %v3353_v2 = vpop.f32.mrb[16].mxu0  ;;  %v7399_v14 = vld [vmem:[#allocation52_spill] sm:$0xff] }
 0x97f   :  { %v2430_v40 = vsel %vm2394_vm11, %v3353_v2, %v7379_v0  ;;  %v2107_v52 = vpop.f32.mrb[17].mxu0 }
 0x980   :  { %2495 = vst.msk [vmem:[%s6567_s4 + $0x110] sm:$0xff] %vm2460_vm15, %v2430_v40  ;;  %v2428_v16 = vsel %vm2394_vm11, %v2107_v52, %v7380_v54  ;;  %v3354_v56 = vpop.f32.mrb[18].mxu0  ;;  %v7400_v40 = vld [vmem:[#allocation67_spill] sm:$0xff] }
 0x981   :  { %2493 = vst.msk [vmem:[%s6567_s4 + $0x100] sm:$0xff] %vm2460_vm15, %v2428_v16  ;;  %v2431_v4 = vsel %vm2394_vm11, %v3354_v56, %v7381_v32  ;;  %v3385_v27 = vpop.f32.mrb[16].mxu1  ;;  %v2110_v31 = vpop.f32.mrb[19].mxu0  ;;  %v7401_v16 = vld [vmem:[#allocation70_spill] sm:$0xff] }
 0x982   :  { %2496 = vst.msk [vmem:[%s6567_s4 + $0x118] sm:$0xff] %vm2460_vm15, %v2431_v4  ;;  %v2446_v62 = vsel %vm2395_vm2, %v3385_v27, %v7382_v21  ;;  %v2429_v45 = vsel %vm2394_vm11, %v2110_v31, %v7383_v18  ;;  %v2204_v51 = vpop.f32.mrb[17].mxu1  ;;  %v7402_v4 = vld [vmem:[#allocation68_spill] sm:$0xff]  ;;  %v7403_v21 = vld [vmem:[#allocation57_spill] sm:$0xff] }
 0x983   :  { %2511 = vst.msk [vmem:[%s6567_s4 + $0x190] sm:$0xff] %vm2460_vm15, %v2446_v62  ;;  %2494 = vst.msk [vmem:[%s6567_s4 + $0x108] sm:$0xff] %vm2460_vm15, %v2429_v45  ;;  %v2444_v11 = vsel %vm2395_vm2, %v2204_v51, %v7384_v36  ;;  %v3386_v49 = vpop.f32.mrb[18].mxu1  ;;  %v7404_v45 = vld [vmem:[#allocation55_spill] sm:$0xff] }
 0x984   :  { %2509 = vst.msk [vmem:[%s6567_s4 + $0x180] sm:$0xff] %vm2460_vm15, %v2444_v11  ;;  %v2447_v34 = vsel %vm2395_vm2, %v3386_v49, %v7385_v30  ;;  %v2207_v17 = vpop.f32.mrb[19].mxu1  ;;  %v7405_v11 = vld [vmem:[#allocation58_spill] sm:$0xff] }
 0x985   :  { %2512 = vst.msk [vmem:[%s6567_s4 + $0x198] sm:$0xff] %vm2460_vm15, %v2447_v34  ;;  %v2445_v5 = vsel %vm2395_vm2, %v2207_v17, %v7386_v13  ;;  %v7406_v17 = vld [vmem:[#allocation73_spill] sm:$0xff] }
 0x986   :  { %2510 = vst.msk [vmem:[%s6567_s4 + $0x188] sm:$0xff] %vm2460_vm15, %v2445_v5  ;;  %v3357_v35 = vpop.f32.mrb[20].mxu0  ;;  %v7407_v5 = vld [vmem:[#allocation56_spill] sm:$0xff] }
 0x987   :  { %v2434_v23 = vsel %vm2394_vm11, %v3357_v35, %v7387_v37  ;;  %v2123_v25 = vpop.f32.mrb[21].mxu0 }
 0x988   :  { %2499 = vst.msk [vmem:[%s6567_s4 + $0x130] sm:$0xff] %vm2460_vm15, %v2434_v23  ;;  %v2432_v46 = vsel %vm2394_vm11, %v2123_v25, %v7388_v57  ;;  %v3358_v61 = vpop.f32.mrb[22].mxu0  ;;  %v7408_v23 = vld [vmem:[#allocation71_spill] sm:$0xff] }
 0x989   :  { %2497 = vst.msk [vmem:[%s6567_s4 + $0x120] sm:$0xff] %vm2460_vm15, %v2432_v46  ;;  %v2435_v3 = vsel %vm2394_vm11, %v3358_v61, %v7389_v42  ;;  %v3389_v38 = vpop.f32.mrb[20].mxu1  ;;  %v2126_v20 = vpop.f32.mrb[23].mxu0  ;;  %v7410_v42 = vld [vmem:[#allocation72_spill] sm:$0xff] }
 0x98a   :  { %2500 = vst.msk [vmem:[%s6567_s4 + $0x138] sm:$0xff] %vm2460_vm15, %v2435_v3  ;;  %v2450_v19 = vsel %vm2395_vm2, %v3389_v38, %v7390_v43  ;;  %v2433_v48 = vsel %vm2394_vm11, %v2126_v20, %v7391_v24  ;;  %v2220_v60 = vpop.f32.mrb[21].mxu1 }
 0x98b   :  { %2515 = vst.msk [vmem:[%s6567_s4 + $0x1b0] sm:$0xff] %vm2460_vm15, %v2450_v19  ;;  %2498 = vst.msk [vmem:[%s6567_s4 + $0x128] sm:$0xff] %vm2460_vm15, %v2433_v48  ;;  %v2448_v12 = vsel %vm2395_vm2, %v2220_v60, %v7392_v41  ;;  %v3390_v6 = vpop.f32.mrb[22].mxu1 }
 0x98c   :  { %2513 = vst.msk [vmem:[%s6567_s4 + $0x1a0] sm:$0xff] %vm2460_vm15, %v2448_v12  ;;  %v2451_v58 = vsel %vm2395_vm2, %v3390_v6, %v7393_v53  ;;  %v2223_v55 = vpop.f32.mrb[23].mxu1 }
 0x98d   :  { %2516 = vst.msk [vmem:[%s6567_s4 + $0x1b8] sm:$0xff] %vm2460_vm15, %v2451_v58  ;;  %v2449_v47 = vsel %vm2395_vm2, %v2223_v55, %v7394_v39 }
 0x98e   :  { %2514 = vst.msk [vmem:[%s6567_s4 + $0x1a8] sm:$0xff] %vm2460_vm15, %v2449_v47  ;;  %v3361_v50 = vpop.f32.mrb[24].mxu0 }
 0x98f   :  { %v2438_v63 = vsel %vm2394_vm11, %v3361_v50, %v7395_v22  ;;  %v2139_v26 = vpop.f32.mrb[25].mxu0 }
 0x990   :  { %2503 = vst.msk [vmem:[%s6567_s4 + $0x150] sm:$0xff] %vm2460_vm15, %v2438_v63  ;;  %v2436_v29 = vsel %vm2394_vm11, %v2139_v26, %v7396_v44  ;;  %v3362_v33 = vpop.f32.mrb[26].mxu0 }
 0x991   :  { %2501 = vst.msk [vmem:[%s6567_s4 + $0x140] sm:$0xff] %vm2460_vm15, %v2436_v29  ;;  %v2439_v59 = vsel %vm2394_vm11, %v3362_v33, %v7397_v15  ;;  %v3393_v8 = vpop.f32.mrb[24].mxu1  ;;  %v2142_v28 = vpop.f32.mrb[27].mxu0 }
 0x992   :  { %2504 = vst.msk [vmem:[%s6567_s4 + $0x158] sm:$0xff] %vm2460_vm15, %v2439_v59  ;;  %v2454_v7 = vsel %vm2395_vm2, %v3393_v8, %v7398_v1  ;;  %v2437_v2 = vsel %vm2394_vm11, %v2142_v28, %v7399_v14  ;;  %v2236_v0 = vpop.f32.mrb[25].mxu1 }
 0x993   :  { %2519 = vst.msk [vmem:[%s6567_s4 + $0x1d0] sm:$0xff] %vm2460_vm15, %v2454_v7  ;;  %2502 = vst.msk [vmem:[%s6567_s4 + $0x148] sm:$0xff] %vm2460_vm15, %v2437_v2  ;;  %v2452_v52 = vsel %vm2395_vm2, %v2236_v0, %v7400_v40  ;;  %v3394_v54 = vpop.f32.mrb[26].mxu1 }
 0x994   :  { %2517 = vst.msk [vmem:[%s6567_s4 + $0x1c0] sm:$0xff] %vm2460_vm15, %v2452_v52  ;;  %v2455_v56 = vsel %vm2395_vm2, %v3394_v54, %v7401_v16  ;;  %v2239_v32 = vpop.f32.mrb[27].mxu1 }
 0x995   :  { %2520 = vst.msk [vmem:[%s6567_s4 + $0x1d8] sm:$0xff] %vm2460_vm15, %v2455_v56  ;;  %v2453_v27 = vsel %vm2395_vm2, %v2239_v32, %v7402_v4 }
 0x996   :  { %2518 = vst.msk [vmem:[%s6567_s4 + $0x1c8] sm:$0xff] %vm2460_vm15, %v2453_v27  ;;  %v3365_v31 = vpop.f32.mrb[28].mxu0 }
 0x997   :  { %v2442_v62 = vsel %vm2394_vm11, %v3365_v31, %v7403_v21  ;;  %v2155_v18 = vpop.f32.mrb[29].mxu0 }
 0x998   :  { %2507 = vst.msk [vmem:[%s6567_s4 + $0x170] sm:$0xff] %vm2460_vm15, %v2442_v62  ;;  %v2440_v51 = vsel %vm2394_vm11, %v2155_v18, %v7404_v45  ;;  %v3366_v36 = vpop.f32.mrb[30].mxu0 }
 0x999   :  { %2505 = vst.msk [vmem:[%s6567_s4 + $0x160] sm:$0xff] %vm2460_vm15, %v2440_v51  ;;  %v2443_v49 = vsel %vm2394_vm11, %v3366_v36, %v7405_v11  ;;  %v3397_v30 = vpop.f32.mrb[28].mxu1  ;;  %v2158_v34 = vpop.f32.mrb[31].mxu0 }
 0x99a   :  { %2508 = vst.msk [vmem:[%s6567_s4 + $0x178] sm:$0xff] %vm2460_vm15, %v2443_v49  ;;  %v2458_v13 = vsel %vm2395_vm2, %v3397_v30, %v7406_v17  ;;  %v2441_v35 = vsel %vm2394_vm11, %v2158_v34, %v7407_v5  ;;  %v2252_v37 = vpop.f32.mrb[29].mxu1 }
 0x99b   :  { %2523 = vst.msk [vmem:[%s6567_s4 + $0x1f0] sm:$0xff] %vm2460_vm15, %v2458_v13  ;;  %2506 = vst.msk [vmem:[%s6567_s4 + $0x168] sm:$0xff] %vm2460_vm15, %v2441_v35  ;;  %v2456_v25 = vsel %vm2395_vm2, %v2252_v37, %v7408_v23  ;;  %v3398_v57 = vpop.f32.mrb[30].mxu1 }
 0x99c   :  { %2521 = vst.msk [vmem:[%s6567_s4 + $0x1e0] sm:$0xff] %vm2460_vm15, %v2456_v25  ;;  %v2459_v46 = vsel %vm2395_vm2, %v3398_v57, %v7409_v9  ;;  %v2255_v61 = vpop.f32.mrb[31].mxu1 }
 0x99d   :  { %2524 = vst.msk [vmem:[%s6567_s4 + $0x1f8] sm:$0xff] %vm2460_vm15, %v2459_v46  ;;  %v2457_v3 = vsel %vm2395_vm2, %v2255_v61, %v7410_v42 }
 0x99e   :  { %2522 = vst.msk [vmem:[%s6567_s4 + $0x1e8] sm:$0xff] %vm2460_vm15, %v2457_v3 }
 0x99f PF:  { %s3608_s20 = smov [#allocation4]   ;;  %s3609_s22 = smov [#allocation6]  }
 0x9a0   :  { %s2541_s21 = sshll.u32 %s3608_s20, 4  ;;  %s2551_s23 = sshll.u32 %s3609_s22, 4  ;;  %s2542_s21 = int_to_ptr.vmem [resolvable:$true] %s2541_s21  ;;  %s2552_s23 = int_to_ptr.vmem [resolvable:$true] %s2551_s23 }
 0x9a1   :  { %s3549_s24 = scalar_lea.vmem %s2542_s21, 64  ;;  %p3554_p3 = scmp.lt.s32.totalorder %s2542_s21, %s2542_s21 }
 0x9a2   :  { %p3550_p2 = scmp.ne.s32.totalorder %s2542_s21, %s3549_s24  ;;  %p3555_p4 = scmp.lt.s32.totalorder %s3549_s24, %s3549_s24 }
 0x9a4   :  { %p3556_p5 = por %p3555_p4, %p3554_p3 }
 0x9a6   :  { %p3557_p6 = pnand %p3556_p5, %p3550_p2 }
 0x9a8   :  { %3560 = shalt.err (!%p3557_p6)
}
 0x9a9   :  { %s3561_s26 = scalar_lea.hbm %s6568_s5, 64 }
 0x9aa   :  { %p3562_p7 = scmp.ne.s32.totalorder %s6568_s5, %s3561_s26  ;;  %p3565_p8 = scmp.lt.u32.totalorder %s3561_s26, %s6568_s5 }
 0x9ac   :  { %p3567_p9 = pnand %p3565_p8, %p3562_p7 }
 0x9ae   :  { %3570 = shalt.err (!%p3567_p9)
}
 0x9af   :  { %2544 = dma.vmem_to_hbm [thread:$0]  %s2542_s21, 64, %s6568_s5, [#allocation5]  }
 0x9b0   :  { %s3571_s3 = scalar_lea.vmem %s2552_s23, 64  ;;  %p3576_p11 = scmp.lt.s32.totalorder %s2552_s23, %s2552_s23 }
 0x9b1   :  { %p3572_p10 = scmp.ne.s32.totalorder %s2552_s23, %s3571_s3  ;;  %p3577_p12 = scmp.lt.s32.totalorder %s3571_s3, %s3571_s3 }
 0x9b3   :  { %p3578_p13 = por %p3577_p12, %p3576_p11 }
 0x9b5   :  { %p3579_p0 = pnand %p3578_p13, %p3572_p10 }
 0x9b7   :  { %3582 = shalt.err (!%p3579_p0)
}
 0x9b8   :  { %s3583_s8 = scalar_lea.hbm %s6569_s6, 64 }
 0x9b9   :  { %p3584_p1 = scmp.ne.s32.totalorder %s6569_s6, %s3583_s8  ;;  %p3587_p2 = scmp.lt.u32.totalorder %s3583_s8, %s6569_s6 }
 0x9bb   :  { %p3589_p3 = pnand %p3587_p2, %p3584_p1 }
 0x9bd   :  { %3592 = shalt.err (!%p3589_p3)
}
 0x9be   :  { %2554 = dma.vmem_to_hbm [thread:$0]  %s2552_s23, 64, %s6569_s6, [#allocation7]  }
 0x9bf   :  { %3593 = dma.done.wait [#allocation5], 64  }
 0x9c0   :  { %3594 = vsyncadd [#allocation5], 4294967232 }
 0x9c1   :  { %3595 = dma.done.wait [#allocation7], 64  }
 0x9c2   :  { %3596 = vsyncadd [#allocation7], 4294967232 }
 0x9c3   :  { %2563 = vsyncpa [#allocation5], 1 }
 0x9c4   :  { %2564 = vsyncpa [#allocation7], 1 }

</bundles_post_ra>
